<compile_context>
chip_gen: v7x
topology: tpu7x:2x2x1
jax: 0.10.0
libtpu: 0.0.40
codegen_flags: <defaults>
</compile_context>

<pallas_src>
import jax
import jax.numpy as jnp
import numpy as np
from jax.experimental import pallas as pl
from jax.experimental.pallas import tpu as pltpu

_LANE = 128
_TM = 128              # row-tile size (sublane direction); fixed — N scaling handled by chunking
_DEFAULT_CHUNK = 2048  # lane-direction chunk width


def _disco_partials_kernel(rows_ref, cols_ref, out_ref,
                           ra_acc, rb_acc, raa_acc, rab_acc, rbb_acc):
    """One (row-tile t, column-chunk c) grid step.

    rows_ref : (3, CHUNK)   column-direction chunk of [inferences, disco_target, wm]
    cols_ref : (TM, 3)      this row tile's [inferences, disco_target, wm] (constant across c)
    out_ref  : (1, 8, 128)  lanes 0..7 = per-tile raw moments, written once at the last chunk
    *_acc    : (TM, 1)      per-row partial sums carried across the chunk axis only
    """
    c = pl.program_id(1)

    @pl.when(c == 0)
    def _init():
        for ref in (ra_acc, rb_acc, raa_acc, rab_acc, rbb_acc):
            ref[...] = jnp.zeros_like(ref)

    rows = rows_ref[...]
    inf_r, tgt_r, wm_r = rows[0:1, :], rows[1:2, :], rows[2:3, :]      # (1, CHUNK)
    cols = cols_ref[...]
    inf_c, tgt_c = cols[:, 0:1], cols[:, 1:2]                          # (TM, 1)

    # (TM, CHUNK) distance slabs rebuilt on the fly — never a full NxN matrix.
    amat = jnp.abs(inf_c - inf_r)
    bmat = jnp.abs(tgt_c - tgt_r)
    wa = amat * wm_r
    wb = bmat * wm_r

    # Lane-direction (fast axis) reductions only; accumulated per row across chunks.
    ra_acc[...] += jnp.sum(wa, axis=1, keepdims=True)                  # sum_j wm_j |x_i - x_j|
    rb_acc[...] += jnp.sum(wb, axis=1, keepdims=True)
    raa_acc[...] += jnp.sum(amat * wa, axis=1, keepdims=True)          # sum_j wm_j a_ij^2
    rab_acc[...] += jnp.sum(amat * wb, axis=1, keepdims=True)          # sum_j wm_j a_ij b_ij
    rbb_acc[...] += jnp.sum(bmat * wb, axis=1, keepdims=True)

    @pl.when(c == pl.num_programs(1) - 1)
    def _emit_tile_partials():
        wm_c = cols[:, 2:3]                                            # (TM, 1)
        ra, rb = ra_acc[...], rb_acc[...]
        parts = (
            jnp.sum(wm_c * ra, keepdims=True),            # T_a   = sum_i wm_i ra_i
            jnp.sum(wm_c * rb, keepdims=True),            # T_b
            jnp.sum(wm_c * ra * rb, keepdims=True),       # T_ab
            jnp.sum(wm_c * ra * ra, keepdims=True),       # T_aa
            jnp.sum(wm_c * rb * rb, keepdims=True),       # T_bb
            jnp.sum(wm_c * rab_acc[...], keepdims=True),  # S2_ab = sum_ij wm_i wm_j a_ij b_ij
            jnp.sum(wm_c * raa_acc[...], keepdims=True),  # S2_aa
            jnp.sum(wm_c * rbb_acc[...], keepdims=True),  # S2_bb
        )
        lane = jax.lax.broadcasted_iota(jnp.int32, out_ref.shape, 2)
        packed = jnp.zeros(out_ref.shape, jnp.float32)
        for idx, p in enumerate(parts):
            packed = jnp.where(lane == idx, p, packed)
        out_ref[...] = packed                                          # one lane-dense write/tile


def single_disco_loss(inferences, labels, disco_target, weights,
                      disco_lambda, dCorr_power=2, chunk_lanes=_DEFAULT_CHUNK):
    """Returns (BCE + lambda*dCorr, BCE, lambda*dCorr), matching SingleDisCoLoss.forward."""
    f32 = jnp.float32
    n = int(inferences.shape[0])

    inf = jnp.asarray(inferences, f32)
    lab = jnp.asarray(labels, f32)
    tgt = jnp.asarray(disco_target, f32)
    wt = jnp.asarray(weights, f32)

    # ---- O(N) pieces in plain XLA (per review): weighted BCE + subset mask/weights ----
    logp = jnp.maximum(jnp.log(inf), -100.0)          # torch clamps log at -100
    log1mp = jnp.maximum(jnp.log1p(-inf), -100.0)
    bce = jnp.mean(wt * -(lab * logp + (1.0 - lab) * log1mp))

    mask = (lab == 0.0).astype(f32)                   # labels == 0 subset as masked weights
    wm = wt * mask
    m_count = jnp.sum(mask)                           # M = |subset|
    sw = jnp.sum(wm)                                  # sum of subset weights

    # ---- pad to the tile/chunk grid (wm = 0 on padding -> contributes nothing) ----
    chunk = max(_LANE, (int(chunk_lanes) // _LANE) * _LANE)
    if n <= chunk:
        npad = ((n + _LANE - 1) // _LANE) * _LANE
        chunk = npad
    else:
        npad = ((n + chunk - 1) // chunk) * chunk
    pad = npad - n
    if pad:
        inf_p = jnp.concatenate([inf, jnp.zeros((pad,), f32)])
        tgt_p = jnp.concatenate([tgt, jnp.zeros((pad,), f32)])
        wm_p = jnp.concatenate([wm, jnp.zeros((pad,), f32)])
    else:
        inf_p, tgt_p, wm_p = inf, tgt, wm

    rows = jnp.stack([inf_p, tgt_p, wm_p], axis=0)    # (3, npad)  lane-direction view
    cols = rows.T                                     # (npad, 3)  row-tile column view

    num_tiles = npad // _TM
    num_chunks = npad // chunk

    partials = pl.pallas_call(
        _disco_partials_kernel,
        out_shape=jax.ShapeDtypeStruct((num_tiles, 8, _LANE), f32),
        grid=(num_tiles, num_chunks),
        in_specs=[
            # column-direction chunk of the 3 rows; re-fetched (double-buffered) per chunk
            pl.BlockSpec((3, chunk), lambda t, c: (0, c)),
            # this row tile's own values; block index constant across the chunk axis, so
            # Pallas fetches it once per row tile
            pl.BlockSpec((_TM, 3), lambda t, c: (t, 0)),
        ],
        # one lane-dense partial-sum block per row tile; resident across the chunk axis
        out_specs=pl.BlockSpec((1, 8, _LANE), lambda t, c: (t, 0, 0)),
        scratch_shapes=[pltpu.VMEM((_TM, 1), f32) for _ in range(5)],
        compiler_params=pltpu.CompilerParams(
            # row tiles are fully independent -> split across TensorCores on v7x;
            # the chunk axis carries the per-row scratch accumulators -> "arbitrary"
            dimension_semantics=("parallel", "arbitrary"),
            # footprint is N-independent (~6 MiB live at chunk=2048); 32 MiB is safe on
            # v5e/v6e (128 MiB physical) and within v7x's 64 MiB physical VMEM
            vmem_limit_bytes=32 * 1024 * 1024,
        ),
    )(rows, cols)

    # ---- O(num_tiles) combine + exact algebraic recovery of the centered dCorr moments ----
    # TODO(synk): for very large N, compensated (Kahan) accumulation of these raw moments
    # would buy extra digits against the f32 cancellation in the un-centering below.
    sums = jnp.sum(partials[:, 0, :8], axis=0)
    t_a, t_b, t_ab, t_aa, t_bb, s2_ab, s2_aa, s2_bb = (sums[k] for k in range(8))

    m = jnp.maximum(m_count, 1.0)    # guard empty subset (reference NaNs here; intentional)
    inv_m2 = 1.0 / (m * m)
    abar = t_a * inv_m2
    bbar = t_b * inv_m2
    lin = 2.0 * sw - 4.0 * m
    quad = (2.0 * m - sw) * (2.0 * m - sw)
    m_ab = (s2_ab + lin * (t_ab * inv_m2) + quad * abar * bbar) * inv_m2
    m_aa = (s2_aa + lin * (t_aa * inv_m2) + quad * abar * abar) * inv_m2
    m_bb = (s2_bb + lin * (t_bb * inv_m2) + quad * bbar * bbar) * inv_m2

    power = dCorr_power
    if power == 1:
        dcorr = m_ab / jnp.sqrt(m_aa * m_bb)
    elif power == 2:
        dcorr = (m_ab * m_ab) / (m_aa * m_bb)
    else:
        dcorr = (m_ab / jnp.sqrt(m_aa * m_bb)) ** power

    ldcorr = jnp.float32(disco_lambda) * dcorr
    total = bce + ldcorr
    return total, bce, ldcorr


def _reference_numpy(inf, lab, tgt, wt, lam, power):
    """Direct NumPy port of the PyTorch module (uses real boolean indexing)."""
    inf, lab, tgt, wt = (np.asarray(a, np.float64) for a in (inf, lab, tgt, wt))
    logp = np.maximum(np.log(inf), -100.0)
    log1mp = np.maximum(np.log(1.0 - inf), -100.0)
    bce = np.mean(wt * -(lab * logp + (1.0 - lab) * log1mp))

    sel = lab == 0.0
    v1, v2, w = inf[sel], tgt[sel], wt[sel]
    amat = np.abs(v1[:, None] - v1[None, :])
    bmat = np.abs(v2[:, None] - v2[None, :])
    amatavg = np.mean(amat * w, axis=1)
    Amat = amat - amatavg[None, :] - amatavg[:, None] + np.mean(amatavg * w)
    bmatavg = np.mean(bmat * w, axis=1)
    Bmat = bmat - bmatavg[None, :] - bmatavg[:, None] + np.mean(bmatavg * w)
    ABavg = np.mean(Amat * Bmat * w, axis=1)
    AAavg = np.mean(Amat * Amat * w, axis=1)
    BBavg = np.mean(Bmat * Bmat * w, axis=1)
    if power == 1:
        dcorr = np.mean(ABavg * w) / np.sqrt(np.mean(AAavg * w) * np.mean(BBavg * w))
    elif power == 2:
        dcorr = np.mean(ABavg * w) ** 2 / (np.mean(AAavg * w) * np.mean(BBavg * w))
    else:
        dcorr = (np.mean(ABavg * w) / np.sqrt(np.mean(AAavg * w) * np.mean(BBavg * w))) ** power
    return bce + lam * dcorr, bce, lam * dcorr


if __name__ == "__main__":
    def _run_case(n, lam, power, key, chunk_lanes=_DEFAULT_CHUNK, rtol=5e-3):
        k1, k2, k3, k4 = jax.random.split(key, 4)
        inferences = jax.random.uniform(k1, (n,), jnp.float32, 0.05, 0.95)
        labels = jax.random.bernoulli(k2, 0.5, (n,)).astype(jnp.float32)
        disco_target = jax.random.uniform(k3, (n,), jnp.float32, 0.0, 1.0)
        weights = jax.random.uniform(k4, (n,), jnp.float32, 0.5, 1.5)

        tot, bce, ld = single_disco_loss(inferences, labels, disco_target, weights,
                                         lam, power, chunk_lanes=chunk_lanes)
        jax.block_until_ready((tot, bce, ld))

        ref_tot, ref_bce, ref_ld = _reference_numpy(
            np.asarray(inferences), np.asarray(labels),
            np.asarray(disco_target), np.asarray(weights), lam, power)
        np.testing.assert_allclose(float(tot), ref_tot, rtol=rtol, atol=1e-5)
        np.testing.assert_allclose(float(bce), ref_bce, rtol=rtol, atol=1e-5)
        np.testing.assert_allclose(float(ld), ref_ld, rtol=rtol, atol=1e-5)

    key = jax.random.PRNGKey(0)
    keys = jax.random.split(key, 4)
    _run_case(128, 0.1, 2, keys[0])                     # 1 tile,  1 chunk
    _run_case(200, 0.2, 1, keys[1])                     # pad->256: 2 tiles, 1 chunk, power=1
    _run_case(200, 0.3, 2, keys[2], chunk_lanes=128)    # 2 tiles x 2 chunks: chunk-carry path
    _run_case(300, 0.15, 3, keys[3], chunk_lanes=128)   # 3 tiles x 3 chunks, generic power

    print("KERNEL_OK")
</pallas_src>

<mosaic_0001>
module attributes {stable_mosaic.version = 11 : i64} {
  func.func @_disco_partials_kernel(%arg0: i32, %arg1: i32, %arg2: memref<3x128xf32, #tpu.memory_space<vmem>>, %arg3: memref<128x3xf32, #tpu.memory_space<vmem>>, %arg4: memref<1x8x128xf32, #tpu.memory_space<vmem>>, %arg5: memref<128x1xf32, #tpu.memory_space<vmem>>, %arg6: memref<128x1xf32, #tpu.memory_space<vmem>>, %arg7: memref<128x1xf32, #tpu.memory_space<vmem>>, %arg8: memref<128x1xf32, #tpu.memory_space<vmem>>, %arg9: memref<128x1xf32, #tpu.memory_space<vmem>>) attributes {dimension_semantics = [#tpu.dimension_semantics<parallel>, #tpu.dimension_semantics<arbitrary>], iteration_bounds = array<i64: 1, 1>, scalar_prefetch = 0 : i64, scratch_operands = 5 : i64, tpu.core_type = #tpu.core_type<tc>, window_params = [{transform_indices = @transform_0, window_bounds = array<i64: 3, 128>}, {transform_indices = @transform_1, window_bounds = array<i64: 128, 3>}, {transform_indices = @transform_2, window_bounds = array<i64: 1, 8, 128>}]} {
    %c0_i32 = arith.constant 0 : i32
    %0 = arith.cmpi eq, %arg1, %c0_i32 : i32
    %1 = arith.extui %0 : i1 to i32
    %c0_i32_0 = arith.constant 0 : i32
    %2 = arith.cmpi ne, %1, %c0_i32_0 : i32
    scf.if %2 {
      %cst_30 = arith.constant 0.000000e+00 : f32
      %53 = vector.broadcast %cst_30 : f32 to vector<128x1xf32>
      %c0_31 = arith.constant 0 : index
      %c0_32 = arith.constant 0 : index
      %54 = vector.load %arg5[%c0_31, %c0_32] : memref<128x1xf32, #tpu.memory_space<vmem>>, vector<128x1xf32>
      tpu.vector_store %arg5[%c0_31, %c0_32], %53 {strides = array<i32>} : memref<128x1xf32, #tpu.memory_space<vmem>>, vector<128x1xf32>,
      %cst_33 = arith.constant 0.000000e+00 : f32
      %55 = vector.broadcast %cst_33 : f32 to vector<128x1xf32>
      %c0_34 = arith.constant 0 : index
      %c0_35 = arith.constant 0 : index
      %56 = vector.load %arg6[%c0_34, %c0_35] : memref<128x1xf32, #tpu.memory_space<vmem>>, vector<128x1xf32>
      tpu.vector_store %arg6[%c0_34, %c0_35], %55 {strides = array<i32>} : memref<128x1xf32, #tpu.memory_space<vmem>>, vector<128x1xf32>,
      %cst_36 = arith.constant 0.000000e+00 : f32
      %57 = vector.broadcast %cst_36 : f32 to vector<128x1xf32>
      %c0_37 = arith.constant 0 : index
      %c0_38 = arith.constant 0 : index
      %58 = vector.load %arg7[%c0_37, %c0_38] : memref<128x1xf32, #tpu.memory_space<vmem>>, vector<128x1xf32>
      tpu.vector_store %arg7[%c0_37, %c0_38], %57 {strides = array<i32>} : memref<128x1xf32, #tpu.memory_space<vmem>>, vector<128x1xf32>,
      %cst_39 = arith.constant 0.000000e+00 : f32
      %59 = vector.broadcast %cst_39 : f32 to vector<128x1xf32>
      %c0_40 = arith.constant 0 : index
      %c0_41 = arith.constant 0 : index
      %60 = vector.load %arg8[%c0_40, %c0_41] : memref<128x1xf32, #tpu.memory_space<vmem>>, vector<128x1xf32>
      tpu.vector_store %arg8[%c0_40, %c0_41], %59 {strides = array<i32>} : memref<128x1xf32, #tpu.memory_space<vmem>>, vector<128x1xf32>,
      %cst_42 = arith.constant 0.000000e+00 : f32
      %61 = vector.broadcast %cst_42 : f32 to vector<128x1xf32>
      %c0_43 = arith.constant 0 : index
      %c0_44 = arith.constant 0 : index
      %62 = vector.load %arg9[%c0_43, %c0_44] : memref<128x1xf32, #tpu.memory_space<vmem>>, vector<128x1xf32>
      tpu.vector_store %arg9[%c0_43, %c0_44], %61 {strides = array<i32>} : memref<128x1xf32, #tpu.memory_space<vmem>>, vector<128x1xf32>,
    } else {
    }
    %c0 = arith.constant 0 : index
    %c0_1 = arith.constant 0 : index
    %3 = vector.load %arg2[%c0, %c0_1] : memref<3x128xf32, #tpu.memory_space<vmem>>, vector<3x128xf32>
    %4 = vector.extract_strided_slice %3 {offsets = [0, 0], sizes = [1, 128], strides = [1, 1]} : vector<3x128xf32> to vector<1x128xf32>
    %5 = vector.extract_strided_slice %3 {offsets = [1, 0], sizes = [1, 128], strides = [1, 1]} : vector<3x128xf32> to vector<1x128xf32>
    %6 = vector.extract_strided_slice %3 {offsets = [2, 0], sizes = [1, 128], strides = [1, 1]} : vector<3x128xf32> to vector<1x128xf32>
    %c0_2 = arith.constant 0 : index
    %c0_3 = arith.constant 0 : index
    %7 = vector.load %arg3[%c0_2, %c0_3] : memref<128x3xf32, #tpu.memory_space<vmem>>, vector<128x3xf32>
    %8 = vector.extract_strided_slice %7 {offsets = [0, 0], sizes = [128, 1], strides = [1, 1]} : vector<128x3xf32> to vector<128x1xf32>
    %9 = vector.extract_strided_slice %7 {offsets = [0, 1], sizes = [128, 1], strides = [1, 1]} : vector<128x3xf32> to vector<128x1xf32>
    %10 = vector.broadcast %8 : vector<128x1xf32> to vector<128x128xf32>
    %11 = vector.broadcast %4 : vector<1x128xf32> to vector<128x128xf32>
    %12 = arith.subf %10, %11 : vector<128x128xf32>
    %13 = math.absf %12 : vector<128x128xf32>
    %14 = vector.broadcast %9 : vector<128x1xf32> to vector<128x128xf32>
    %15 = vector.broadcast %5 : vector<1x128xf32> to vector<128x128xf32>
    %16 = arith.subf %14, %15 : vector<128x128xf32>
    %17 = math.absf %16 : vector<128x128xf32>
    %18 = vector.broadcast %6 : vector<1x128xf32> to vector<128x128xf32>
    %19 = arith.mulf %13, %18 : vector<128x128xf32>
    %20 = vector.broadcast %6 : vector<1x128xf32> to vector<128x128xf32>
    %21 = arith.mulf %17, %20 : vector<128x128xf32>
    %c0_4 = arith.constant 0 : index
    %c0_5 = arith.constant 0 : index
    %22 = vector.load %arg5[%c0_4, %c0_5] : memref<128x1xf32, #tpu.memory_space<vmem>>, vector<128x1xf32>
    %cst = arith.constant dense<0.000000e+00> : vector<128xf32>
    %23 = vector.multi_reduction <add>, %19, %cst [1] : vector<128x128xf32> to vector<128xf32>
    %24 = vector.shape_cast %23 : vector<128xf32> to vector<128x1xf32>
    %25 = arith.addf %22, %24 : vector<128x1xf32>
    %c0_6 = arith.constant 0 : index
    %c0_7 = arith.constant 0 : index
    %26 = vector.load %arg5[%c0_6, %c0_7] : memref<128x1xf32, #tpu.memory_space<vmem>>, vector<128x1xf32>
    tpu.vector_store %arg5[%c0_6, %c0_7], %25 {strides = array<i32>} : memref<128x1xf32, #tpu.memory_space<vmem>>, vector<128x1xf32>,
    %c0_8 = arith.constant 0 : index
    %c0_9 = arith.constant 0 : index
    %27 = vector.load %arg6[%c0_8, %c0_9] : memref<128x1xf32, #tpu.memory_space<vmem>>, vector<128x1xf32>
    %cst_10 = arith.constant dense<0.000000e+00> : vector<128xf32>
    %28 = vector.multi_reduction <add>, %21, %cst_10 [1] : vector<128x128xf32> to vector<128xf32>
    %29 = vector.shape_cast %28 : vector<128xf32> to vector<128x1xf32>
    %30 = arith.addf %27, %29 : vector<128x1xf32>
    %c0_11 = arith.constant 0 : index
    %c0_12 = arith.constant 0 : index
    %31 = vector.load %arg6[%c0_11, %c0_12] : memref<128x1xf32, #tpu.memory_space<vmem>>, vector<128x1xf32>
    tpu.vector_store %arg6[%c0_11, %c0_12], %30 {strides = array<i32>} : memref<128x1xf32, #tpu.memory_space<vmem>>, vector<128x1xf32>,
    %c0_13 = arith.constant 0 : index
    %c0_14 = arith.constant 0 : index
    %32 = vector.load %arg7[%c0_13, %c0_14] : memref<128x1xf32, #tpu.memory_space<vmem>>, vector<128x1xf32>
    %33 = arith.mulf %13, %19 : vector<128x128xf32>
    %cst_15 = arith.constant dense<0.000000e+00> : vector<128xf32>
    %34 = vector.multi_reduction <add>, %33, %cst_15 [1] : vector<128x128xf32> to vector<128xf32>
    %35 = vector.shape_cast %34 : vector<128xf32> to vector<128x1xf32>
    %36 = arith.addf %32, %35 : vector<128x1xf32>
    %c0_16 = arith.constant 0 : index
    %c0_17 = arith.constant 0 : index
    %37 = vector.load %arg7[%c0_16, %c0_17] : memref<128x1xf32, #tpu.memory_space<vmem>>, vector<128x1xf32>
    tpu.vector_store %arg7[%c0_16, %c0_17], %36 {strides = array<i32>} : memref<128x1xf32, #tpu.memory_space<vmem>>, vector<128x1xf32>,
    %c0_18 = arith.constant 0 : index
    %c0_19 = arith.constant 0 : index
    %38 = vector.load %arg8[%c0_18, %c0_19] : memref<128x1xf32, #tpu.memory_space<vmem>>, vector<128x1xf32>
    %39 = arith.mulf %13, %21 : vector<128x128xf32>
    %cst_20 = arith.constant dense<0.000000e+00> : vector<128xf32>
    %40 = vector.multi_reduction <add>, %39, %cst_20 [1] : vector<128x128xf32> to vector<128xf32>
    %41 = vector.shape_cast %40 : vector<128xf32> to vector<128x1xf32>
    %42 = arith.addf %38, %41 : vector<128x1xf32>
    %c0_21 = arith.constant 0 : index
    %c0_22 = arith.constant 0 : index
    %43 = vector.load %arg8[%c0_21, %c0_22] : memref<128x1xf32, #tpu.memory_space<vmem>>, vector<128x1xf32>
    tpu.vector_store %arg8[%c0_21, %c0_22], %42 {strides = array<i32>} : memref<128x1xf32, #tpu.memory_space<vmem>>, vector<128x1xf32>,
    %c0_23 = arith.constant 0 : index
    %c0_24 = arith.constant 0 : index
    %44 = vector.load %arg9[%c0_23, %c0_24] : memref<128x1xf32, #tpu.memory_space<vmem>>, vector<128x1xf32>
    %45 = arith.mulf %17, %21 : vector<128x128xf32>
    %cst_25 = arith.constant dense<0.000000e+00> : vector<128xf32>
    %46 = vector.multi_reduction <add>, %45, %cst_25 [1] : vector<128x128xf32> to vector<128xf32>
    %47 = vector.shape_cast %46 : vector<128xf32> to vector<128x1xf32>
    %48 = arith.addf %44, %47 : vector<128x1xf32>
    %c0_26 = arith.constant 0 : index
    %c0_27 = arith.constant 0 : index
    %49 = vector.load %arg9[%c0_26, %c0_27] : memref<128x1xf32, #tpu.memory_space<vmem>>, vector<128x1xf32>
    tpu.vector_store %arg9[%c0_26, %c0_27], %48 {strides = array<i32>} : memref<128x1xf32, #tpu.memory_space<vmem>>, vector<128x1xf32>,
    %c0_i32_28 = arith.constant 0 : i32
    %50 = arith.cmpi eq, %arg1, %c0_i32_28 : i32
    %51 = arith.extui %50 : i1 to i32
    %c0_i32_29 = arith.constant 0 : i32
    %52 = arith.cmpi ne, %51, %c0_i32_29 : i32
    scf.if %52 {
      %53 = vector.extract_strided_slice %7 {offsets = [0, 2], sizes = [128, 1], strides = [1, 1]} : vector<128x3xf32> to vector<128x1xf32>
      %c0_30 = arith.constant 0 : index
      %c0_31 = arith.constant 0 : index
      %54 = vector.load %arg5[%c0_30, %c0_31] : memref<128x1xf32, #tpu.memory_space<vmem>>, vector<128x1xf32>
      %c0_32 = arith.constant 0 : index
      %c0_33 = arith.constant 0 : index
      %55 = vector.load %arg6[%c0_32, %c0_33] : memref<128x1xf32, #tpu.memory_space<vmem>>, vector<128x1xf32>
      %56 = arith.mulf %53, %54 : vector<128x1xf32>
      %57 = vector.shape_cast %56 : vector<128x1xf32> to vector<1x128x1xf32>
      %cst_34 = arith.constant dense<0.000000e+00> : vector<1xf32>
      %58 = vector.multi_reduction <add>, %57, %cst_34 [1, 2] : vector<1x128x1xf32> to vector<1xf32>
      %59 = vector.shape_cast %58 : vector<1xf32> to vector<1x1x1xf32>
      %60 = vector.extract %59[0, 0, 0] : f32 from vector<1x1x1xf32>
      %61 = vector.broadcast %60 : f32 to vector<1x1xf32>
      %62 = arith.mulf %53, %55 : vector<128x1xf32>
      %63 = vector.shape_cast %62 : vector<128x1xf32> to vector<1x128x1xf32>
      %cst_35 = arith.constant dense<0.000000e+00> : vector<1xf32>
      %64 = vector.multi_reduction <add>, %63, %cst_35 [1, 2] : vector<1x128x1xf32> to vector<1xf32>
      %65 = vector.shape_cast %64 : vector<1xf32> to vector<1x1x1xf32>
      %66 = vector.extract %65[0, 0, 0] : f32 from vector<1x1x1xf32>
      %67 = vector.broadcast %66 : f32 to vector<1x1xf32>
      %68 = arith.mulf %53, %54 : vector<128x1xf32>
      %69 = arith.mulf %68, %55 : vector<128x1xf32>
      %70 = vector.shape_cast %69 : vector<128x1xf32> to vector<1x128x1xf32>
      %cst_36 = arith.constant dense<0.000000e+00> : vector<1xf32>
      %71 = vector.multi_reduction <add>, %70, %cst_36 [1, 2] : vector<1x128x1xf32> to vector<1xf32>
      %72 = vector.shape_cast %71 : vector<1xf32> to vector<1x1x1xf32>
      %73 = vector.extract %72[0, 0, 0] : f32 from vector<1x1x1xf32>
      %74 = vector.broadcast %73 : f32 to vector<1x1xf32>
      %75 = arith.mulf %53, %54 : vector<128x1xf32>
      %76 = arith.mulf %75, %54 : vector<128x1xf32>
      %77 = vector.shape_cast %76 : vector<128x1xf32> to vector<1x128x1xf32>
      %cst_37 = arith.constant dense<0.000000e+00> : vector<1xf32>
      %78 = vector.multi_reduction <add>, %77, %cst_37 [1, 2] : vector<1x128x1xf32> to vector<1xf32>
      %79 = vector.shape_cast %78 : vector<1xf32> to vector<1x1x1xf32>
      %80 = vector.extract %79[0, 0, 0] : f32 from vector<1x1x1xf32>
      %81 = vector.broadcast %80 : f32 to vector<1x1xf32>
      %82 = arith.mulf %53, %55 : vector<128x1xf32>
      %83 = arith.mulf %82, %55 : vector<128x1xf32>
      %84 = vector.shape_cast %83 : vector<128x1xf32> to vector<1x128x1xf32>
      %cst_38 = arith.constant dense<0.000000e+00> : vector<1xf32>
      %85 = vector.multi_reduction <add>, %84, %cst_38 [1, 2] : vector<1x128x1xf32> to vector<1xf32>
      %86 = vector.shape_cast %85 : vector<1xf32> to vector<1x1x1xf32>
      %87 = vector.extract %86[0, 0, 0] : f32 from vector<1x1x1xf32>
      %88 = vector.broadcast %87 : f32 to vector<1x1xf32>
      %c0_39 = arith.constant 0 : index
      %c0_40 = arith.constant 0 : index
      %89 = vector.load %arg8[%c0_39, %c0_40] : memref<128x1xf32, #tpu.memory_space<vmem>>, vector<128x1xf32>
      %90 = arith.mulf %53, %89 : vector<128x1xf32>
      %91 = vector.shape_cast %90 : vector<128x1xf32> to vector<1x128x1xf32>
      %cst_41 = arith.constant dense<0.000000e+00> : vector<1xf32>
      %92 = vector.multi_reduction <add>, %91, %cst_41 [1, 2] : vector<1x128x1xf32> to vector<1xf32>
      %93 = vector.shape_cast %92 : vector<1xf32> to vector<1x1x1xf32>
      %94 = vector.extract %93[0, 0, 0] : f32 from vector<1x1x1xf32>
      %95 = vector.broadcast %94 : f32 to vector<1x1xf32>
      %c0_42 = arith.constant 0 : index
      %c0_43 = arith.constant 0 : index
      %96 = vector.load %arg7[%c0_42, %c0_43] : memref<128x1xf32, #tpu.memory_space<vmem>>, vector<128x1xf32>
      %97 = arith.mulf %53, %96 : vector<128x1xf32>
      %98 = vector.shape_cast %97 : vector<128x1xf32> to vector<1x128x1xf32>
      %cst_44 = arith.constant dense<0.000000e+00> : vector<1xf32>
      %99 = vector.multi_reduction <add>, %98, %cst_44 [1, 2] : vector<1x128x1xf32> to vector<1xf32>
      %100 = vector.shape_cast %99 : vector<1xf32> to vector<1x1x1xf32>
      %101 = vector.extract %100[0, 0, 0] : f32 from vector<1x1x1xf32>
      %102 = vector.broadcast %101 : f32 to vector<1x1xf32>
      %c0_45 = arith.constant 0 : index
      %c0_46 = arith.constant 0 : index
      %103 = vector.load %arg9[%c0_45, %c0_46] : memref<128x1xf32, #tpu.memory_space<vmem>>, vector<128x1xf32>
      %104 = arith.mulf %53, %103 : vector<128x1xf32>
      %105 = vector.shape_cast %104 : vector<128x1xf32> to vector<1x128x1xf32>
      %cst_47 = arith.constant dense<0.000000e+00> : vector<1xf32>
      %106 = vector.multi_reduction <add>, %105, %cst_47 [1, 2] : vector<1x128x1xf32> to vector<1xf32>
      %107 = vector.shape_cast %106 : vector<1xf32> to vector<1x1x1xf32>
      %108 = vector.extract %107[0, 0, 0] : f32 from vector<1x1x1xf32>
      %109 = vector.broadcast %108 : f32 to vector<1x1xf32>
      %110 = tpu.iota {dimensions = array<i32: 2>} : vector<1x8x128xi32>
      %cst_48 = arith.constant 0.000000e+00 : f32
      %111 = vector.broadcast %cst_48 : f32 to vector<1x8x128xf32>
      %c0_i32_49 = arith.constant 0 : i32
      %112 = vector.broadcast %c0_i32_49 : i32 to vector<1x8x128xi32>
      %113 = arith.cmpi eq, %110, %112 : vector<1x8x128xi32>
      %114 = vector.shape_cast %61 : vector<1x1xf32> to vector<1x1x1xf32>
      %115 = vector.broadcast %114 : vector<1x1x1xf32> to vector<1x8x128xf32>
      %116 = arith.select %113, %115, %111 : vector<1x8x128xi1>, vector<1x8x128xf32>
      %c1_i32 = arith.constant 1 : i32
      %117 = vector.broadcast %c1_i32 : i32 to vector<1x8x128xi32>
      %118 = arith.cmpi eq, %110, %117 : vector<1x8x128xi32>
      %119 = vector.shape_cast %67 : vector<1x1xf32> to vector<1x1x1xf32>
      %120 = vector.broadcast %119 : vector<1x1x1xf32> to vector<1x8x128xf32>
      %121 = arith.select %118, %120, %116 : vector<1x8x128xi1>, vector<1x8x128xf32>
      %c2_i32 = arith.constant 2 : i32
      %122 = vector.broadcast %c2_i32 : i32 to vector<1x8x128xi32>
      %123 = arith.cmpi eq, %110, %122 : vector<1x8x128xi32>
      %124 = vector.shape_cast %74 : vector<1x1xf32> to vector<1x1x1xf32>
      %125 = vector.broadcast %124 : vector<1x1x1xf32> to vector<1x8x128xf32>
      %126 = arith.select %123, %125, %121 : vector<1x8x128xi1>, vector<1x8x128xf32>
      %c3_i32 = arith.constant 3 : i32
      %127 = vector.broadcast %c3_i32 : i32 to vector<1x8x128xi32>
      %128 = arith.cmpi eq, %110, %127 : vector<1x8x128xi32>
      %129 = vector.shape_cast %81 : vector<1x1xf32> to vector<1x1x1xf32>
      %130 = vector.broadcast %129 : vector<1x1x1xf32> to vector<1x8x128xf32>
      %131 = arith.select %128, %130, %126 : vector<1x8x128xi1>, vector<1x8x128xf32>
      %c4_i32 = arith.constant 4 : i32
      %132 = vector.broadcast %c4_i32 : i32 to vector<1x8x128xi32>
      %133 = arith.cmpi eq, %110, %132 : vector<1x8x128xi32>
      %134 = vector.shape_cast %88 : vector<1x1xf32> to vector<1x1x1xf32>
      %135 = vector.broadcast %134 : vector<1x1x1xf32> to vector<1x8x128xf32>
      %136 = arith.select %133, %135, %131 : vector<1x8x128xi1>, vector<1x8x128xf32>
      %c5_i32 = arith.constant 5 : i32
      %137 = vector.broadcast %c5_i32 : i32 to vector<1x8x128xi32>
      %138 = arith.cmpi eq, %110, %137 : vector<1x8x128xi32>
      %139 = vector.shape_cast %95 : vector<1x1xf32> to vector<1x1x1xf32>
      %140 = vector.broadcast %139 : vector<1x1x1xf32> to vector<1x8x128xf32>
      %141 = arith.select %138, %140, %136 : vector<1x8x128xi1>, vector<1x8x128xf32>
      %c6_i32 = arith.constant 6 : i32
      %142 = vector.broadcast %c6_i32 : i32 to vector<1x8x128xi32>
      %143 = arith.cmpi eq, %110, %142 : vector<1x8x128xi32>
      %144 = vector.shape_cast %102 : vector<1x1xf32> to vector<1x1x1xf32>
      %145 = vector.broadcast %144 : vector<1x1x1xf32> to vector<1x8x128xf32>
      %146 = arith.select %143, %145, %141 : vector<1x8x128xi1>, vector<1x8x128xf32>
      %c7_i32 = arith.constant 7 : i32
      %147 = vector.broadcast %c7_i32 : i32 to vector<1x8x128xi32>
      %148 = arith.cmpi eq, %110, %147 : vector<1x8x128xi32>
      %149 = vector.shape_cast %109 : vector<1x1xf32> to vector<1x1x1xf32>
      %150 = vector.broadcast %149 : vector<1x1x1xf32> to vector<1x8x128xf32>
      %151 = arith.select %148, %150, %146 : vector<1x8x128xi1>, vector<1x8x128xf32>
      %c0_50 = arith.constant 0 : index
      %c0_51 = arith.constant 0 : index
      %c0_52 = arith.constant 0 : index
      %152 = vector.load %arg4[%c0_50, %c0_51, %c0_52] : memref<1x8x128xf32, #tpu.memory_space<vmem>>, vector<1x8x128xf32>
      tpu.vector_store %arg4[%c0_50, %c0_51, %c0_52], %151 {strides = array<i32>} : memref<1x8x128xf32, #tpu.memory_space<vmem>>, vector<1x8x128xf32>,
    } else {
    }
    return
  }
  func.func @transform_0(%arg0: i32, %arg1: i32) -> (i32, i32) {
    %c0_i32 = arith.constant 0 : i32
    %c0_i32_0 = arith.constant 0 : i32
    return %c0_i32, %arg1 : i32, i32
  }
  func.func @transform_1(%arg0: i32, %arg1: i32) -> (i32, i32) {
    %c0_i32 = arith.constant 0 : i32
    %c0_i32_0 = arith.constant 0 : i32
    return %arg0, %c0_i32 : i32, i32
  }
  func.func @transform_2(%arg0: i32, %arg1: i32) -> (i32, i32, i32) {
    %c0_i32 = arith.constant 0 : i32
    %c0_i32_0 = arith.constant 0 : i32
    %c0_i32_1 = arith.constant 0 : i32
    return %arg0, %c0_i32, %c0_i32_0 : i32, i32, i32
  }
}

</mosaic_0001>

<bundles_post_ra>
// kernel: tpu_custom_call.1
= control target key start
LH: loop header
LB: loop body
LE: loop exit
PB: predicated region body
PF: predicated region fallthrough
CT: control target
= control target key end

     0   :  { %v2299_v2 = vmov 0   ;;  %s3815_s0 = inlined_call_operand.vmem [shape: f32[3,128], index: 0, kind: input, shape index: {}]   ;;  %s3816_s1 = inlined_call_operand.vmem [shape: f32[128,3], index: 1, kind: input, shape index: {}]   ;;  %s3817_s2 = inlined_call_operand.hbm [shape: f32[1,8,128], index: 2, kind: output, shape index: {}]  }
   0x1   :  { %v100_v0 = vld [vmem:[%s3816_s1 + $0x10] sm:$0xff]  ;;  %v98_v1 = vld [vmem:[%s3816_s1] sm:$0xff]  ;;  %2242 = vset.pattern.permute.xlu1 %v2299_v2  ;;  %2241 = vset.pattern.permute.xlu0 %v2299_v2  ;;  %v101_v3 = vld [vmem:[%s3816_s1 + $0x18] sm:$0xff] }
   0x2   :  { %126 = vperm.xlu1 %2242, %v100_v0   ;;  %116 = vperm.xlu0 %2241, %v98_v1   ;;  %v99_v4 = vld [vmem:[%s3816_s1 + $0x8] sm:$0xff] }
   0x3   :  { %7 = vsyncpa [#allocation8], 0  ;;  %v103_v5 = vld [vmem:[%s3816_s1 + $0x28] sm:$0xff]  ;;  %v102_v6 = vld [vmem:[%s3816_s1 + $0x20] sm:$0xff]  ;;  %v2300_v17 = vmov 1   ;;  %v3818_v18 = vlaneseq  ;;  %vm16_vm0 = vcmask 7168  }
   0x4   :  { %v105_v7 = vld [vmem:[%s3816_s1 + $0x38] sm:$0xff]  ;;  %v104_v8 = vld [vmem:[%s3816_s1 + $0x30] sm:$0xff]  ;;  %v107_v9 = vld [vmem:[%s3816_s1 + $0x48] sm:$0xff]  ;;  %v2301_v56 = vmov 0.0   ;;  %s2303_s17 = smov 126   ;;  %s2304_s26 = smov [#allocation7]  }
   0x5   :  { %v106_v10 = vld [vmem:[%s3816_s1 + $0x40] sm:$0xff]  ;;  %v109_v11 = vld [vmem:[%s3816_s1 + $0x58] sm:$0xff]  ;;  %v108_v12 = vld [vmem:[%s3816_s1 + $0x50] sm:$0xff]  ;;  %v2369_v19 = vshrl.u32 %v3818_v18, 7  ;;  %17 = vst.msk [vmem:[#allocation2] sm:$0xff] %vm16_vm0, %v2301_v56 }
   0x6   :  { %131 = vperm.xlu1 %2242, %v101_v3   ;;  %121 = vperm.xlu0 %2241, %v99_v4   ;;  %v111_v13 = vld [vmem:[%s3816_s1 + $0x68] sm:$0xff]  ;;  %v110_v14 = vld [vmem:[%s3816_s1 + $0x60] sm:$0xff]  ;;  %v113_v15 = vld [vmem:[%s3816_s1 + $0x78] sm:$0xff]  ;;  %18 = vst.msk [vmem:[#allocation2 + $0x8] sm:$0xff] %vm16_vm0, %v2301_v56 }
   0x7   :  { %v112_v16 = vld [vmem:[%s3816_s1 + $0x70] sm:$0xff]  ;;  %v196_v20 = vsub.s32 0, %v2369_v19  ;;  %v2375_v21 = vld [vmem:[%s3815_s0] sm:$0x7]  ;;  %v332_v22 = vsub.s32 2, %v2369_v19  ;;  %19 = vst.msk [vmem:[#allocation2 + $0x10] sm:$0xff] %vm16_vm0, %v2301_v56 }
   0x8   :  { %20 = vst.msk [vmem:[#allocation2 + $0x18] sm:$0xff] %vm16_vm0, %v2301_v56  ;;  %21 = vst.msk [vmem:[#allocation2 + $0x20] sm:$0xff] %vm16_vm0, %v2301_v56  ;;  %s2302_s0 = smov 2  }
   0x9   :  { %v2379_v23 = vrot.slane %v2375_v21, %v196_v20  ;;  %v2382_v26 = vrot.slane %v2375_v21, %v332_v22  ;;  %22 = vst.msk [vmem:[#allocation2 + $0x28] sm:$0xff] %vm16_vm0, %v2301_v56  ;;  %23 = vst.msk [vmem:[#allocation2 + $0x30] sm:$0xff] %vm16_vm0, %v2301_v56  ;;  %v296_v20 = vsub.s32 1, %v2369_v19 }
   0xa   :  { %141 = vperm.xlu1 %2242, %v103_v5   ;;  %136 = vperm.xlu0 %2241, %v102_v6   ;;  %24 = vst.msk [vmem:[#allocation2 + $0x38] sm:$0xff] %vm16_vm0, %v2301_v56  ;;  %25 = vst.msk [vmem:[#allocation2 + $0x40] sm:$0xff] %vm16_vm0, %v2301_v56 }
   0xb   :  { %26 = vst.msk [vmem:[#allocation2 + $0x48] sm:$0xff] %vm16_vm0, %v2301_v56  ;;  %27 = vst.msk [vmem:[#allocation2 + $0x50] sm:$0xff] %vm16_vm0, %v2301_v56 }
   0xc   :  { %28 = vst.msk [vmem:[#allocation2 + $0x58] sm:$0xff] %vm16_vm0, %v2301_v56  ;;  %29 = vst.msk [vmem:[#allocation2 + $0x60] sm:$0xff] %vm16_vm0, %v2301_v56 }
   0xd   :  { %30 = vst.msk [vmem:[#allocation2 + $0x68] sm:$0xff] %vm16_vm0, %v2301_v56  ;;  %31 = vst.msk [vmem:[#allocation2 + $0x70] sm:$0xff] %vm16_vm0, %v2301_v56 }
   0xe   :  { %151 = vperm.xlu1 %2242, %v105_v7   ;;  %146 = vperm.xlu0 %2241, %v104_v8   ;;  %32 = vst.msk [vmem:[#allocation2 + $0x78] sm:$0xff] %vm16_vm0, %v2301_v56  ;;  %33 = vst.msk [vmem:[#allocation3] sm:$0xff] %vm16_vm0, %v2301_v56 }
   0xf   :  { %34 = vst.msk [vmem:[#allocation3 + $0x8] sm:$0xff] %vm16_vm0, %v2301_v56  ;;  %35 = vst.msk [vmem:[#allocation3 + $0x10] sm:$0xff] %vm16_vm0, %v2301_v56 }
  0x10   :  { %36 = vst.msk [vmem:[#allocation3 + $0x18] sm:$0xff] %vm16_vm0, %v2301_v56  ;;  %37 = vst.msk [vmem:[#allocation3 + $0x20] sm:$0xff] %vm16_vm0, %v2301_v56 }
  0x11   :  { %38 = vst.msk [vmem:[#allocation3 + $0x28] sm:$0xff] %vm16_vm0, %v2301_v56  ;;  %39 = vst.msk [vmem:[#allocation3 + $0x30] sm:$0xff] %vm16_vm0, %v2301_v56 }
  0x12   :  { %161 = vperm.xlu1 %2242, %v107_v9   ;;  %156 = vperm.xlu0 %2241, %v106_v10   ;;  %40 = vst.msk [vmem:[#allocation3 + $0x38] sm:$0xff] %vm16_vm0, %v2301_v56  ;;  %41 = vst.msk [vmem:[#allocation3 + $0x40] sm:$0xff] %vm16_vm0, %v2301_v56 }
  0x13   :  { %42 = vst.msk [vmem:[#allocation3 + $0x48] sm:$0xff] %vm16_vm0, %v2301_v56  ;;  %43 = vst.msk [vmem:[#allocation3 + $0x50] sm:$0xff] %vm16_vm0, %v2301_v56 }
  0x14   :  { %44 = vst.msk [vmem:[#allocation3 + $0x58] sm:$0xff] %vm16_vm0, %v2301_v56  ;;  %45 = vst.msk [vmem:[#allocation3 + $0x60] sm:$0xff] %vm16_vm0, %v2301_v56 }
  0x15   :  { %46 = vst.msk [vmem:[#allocation3 + $0x68] sm:$0xff] %vm16_vm0, %v2301_v56  ;;  %47 = vst.msk [vmem:[#allocation3 + $0x70] sm:$0xff] %vm16_vm0, %v2301_v56 }
  0x16   :  { %171 = vperm.xlu1 %2242, %v109_v11   ;;  %166 = vperm.xlu0 %2241, %v108_v12   ;;  %48 = vst.msk [vmem:[#allocation3 + $0x78] sm:$0xff] %vm16_vm0, %v2301_v56  ;;  %49 = vst.msk [vmem:[#allocation4] sm:$0xff] %vm16_vm0, %v2301_v56 }
  0x17   :  { %50 = vst.msk [vmem:[#allocation4 + $0x8] sm:$0xff] %vm16_vm0, %v2301_v56  ;;  %51 = vst.msk [vmem:[#allocation4 + $0x10] sm:$0xff] %vm16_vm0, %v2301_v56 }
  0x18   :  { %52 = vst.msk [vmem:[#allocation4 + $0x18] sm:$0xff] %vm16_vm0, %v2301_v56  ;;  %53 = vst.msk [vmem:[#allocation4 + $0x20] sm:$0xff] %vm16_vm0, %v2301_v56 }
  0x19   :  { %54 = vst.msk [vmem:[#allocation4 + $0x28] sm:$0xff] %vm16_vm0, %v2301_v56  ;;  %55 = vst.msk [vmem:[#allocation4 + $0x30] sm:$0xff] %vm16_vm0, %v2301_v56 }
  0x1a   :  { %181 = vperm.xlu1 %2242, %v111_v13   ;;  %176 = vperm.xlu0 %2241, %v110_v14   ;;  %56 = vst.msk [vmem:[#allocation4 + $0x38] sm:$0xff] %vm16_vm0, %v2301_v56  ;;  %57 = vst.msk [vmem:[#allocation4 + $0x40] sm:$0xff] %vm16_vm0, %v2301_v56 }
  0x1b   :  { %58 = vst.msk [vmem:[#allocation4 + $0x48] sm:$0xff] %vm16_vm0, %v2301_v56  ;;  %59 = vst.msk [vmem:[#allocation4 + $0x50] sm:$0xff] %vm16_vm0, %v2301_v56 }
  0x1c   :  { %60 = vst.msk [vmem:[#allocation4 + $0x58] sm:$0xff] %vm16_vm0, %v2301_v56  ;;  %61 = vst.msk [vmem:[#allocation4 + $0x60] sm:$0xff] %vm16_vm0, %v2301_v56 }
  0x1d   :  { %62 = vst.msk [vmem:[#allocation4 + $0x68] sm:$0xff] %vm16_vm0, %v2301_v56  ;;  %63 = vst.msk [vmem:[#allocation4 + $0x70] sm:$0xff] %vm16_vm0, %v2301_v56 }
  0x1e   :  { %191 = vperm.xlu1 %2242, %v113_v15   ;;  %186 = vperm.xlu0 %2241, %v112_v16   ;;  %64 = vst.msk [vmem:[#allocation4 + $0x78] sm:$0xff] %vm16_vm0, %v2301_v56  ;;  %65 = vst.msk [vmem:[#allocation5] sm:$0xff] %vm16_vm0, %v2301_v56 }
  0x1f   :  { %66 = vst.msk [vmem:[#allocation5 + $0x8] sm:$0xff] %vm16_vm0, %v2301_v56  ;;  %67 = vst.msk [vmem:[#allocation5 + $0x10] sm:$0xff] %vm16_vm0, %v2301_v56 }
  0x20   :  { %68 = vst.msk [vmem:[#allocation5 + $0x18] sm:$0xff] %vm16_vm0, %v2301_v56  ;;  %69 = vst.msk [vmem:[#allocation5 + $0x20] sm:$0xff] %vm16_vm0, %v2301_v56 }
  0x21   :  { %70 = vst.msk [vmem:[#allocation5 + $0x28] sm:$0xff] %vm16_vm0, %v2301_v56  ;;  %71 = vst.msk [vmem:[#allocation5 + $0x30] sm:$0xff] %vm16_vm0, %v2301_v56 }
  0x22   :  { %2244 = vset.pattern.permute.xlu1 %v2300_v17  ;;  %2243 = vset.pattern.permute.xlu0 %v2300_v17  ;;  %72 = vst.msk [vmem:[#allocation5 + $0x38] sm:$0xff] %vm16_vm0, %v2301_v56  ;;  %73 = vst.msk [vmem:[#allocation5 + $0x40] sm:$0xff] %vm16_vm0, %v2301_v56 }
  0x23   :  { %235 = vperm.xlu1 %2244, %v99_v4   ;;  %231 = vperm.xlu0 %2243, %v98_v1   ;;  %74 = vst.msk [vmem:[#allocation5 + $0x48] sm:$0xff] %vm16_vm0, %v2301_v56  ;;  %75 = vst.msk [vmem:[#allocation5 + $0x50] sm:$0xff] %vm16_vm0, %v2301_v56 }
  0x24   :  { %76 = vst.msk [vmem:[#allocation5 + $0x58] sm:$0xff] %vm16_vm0, %v2301_v56  ;;  %77 = vst.msk [vmem:[#allocation5 + $0x60] sm:$0xff] %vm16_vm0, %v2301_v56 }
  0x25   :  { %78 = vst.msk [vmem:[#allocation5 + $0x68] sm:$0xff] %vm16_vm0, %v2301_v56  ;;  %79 = vst.msk [vmem:[#allocation5 + $0x70] sm:$0xff] %vm16_vm0, %v2301_v56 }
  0x26   :  { %80 = vst.msk [vmem:[#allocation5 + $0x78] sm:$0xff] %vm16_vm0, %v2301_v56  ;;  %81 = vst.msk [vmem:[#allocation6] sm:$0xff] %vm16_vm0, %v2301_v56 }
  0x27   :  { %239 = vperm.xlu1 %2244, %v100_v0   ;;  %243 = vperm.xlu0 %2243, %v101_v3   ;;  %82 = vst.msk [vmem:[#allocation6 + $0x8] sm:$0xff] %vm16_vm0, %v2301_v56  ;;  %83 = vst.msk [vmem:[#allocation6 + $0x10] sm:$0xff] %vm16_vm0, %v2301_v56 }
  0x28   :  { %84 = vst.msk [vmem:[#allocation6 + $0x18] sm:$0xff] %vm16_vm0, %v2301_v56  ;;  %85 = vst.msk [vmem:[#allocation6 + $0x20] sm:$0xff] %vm16_vm0, %v2301_v56 }
  0x29   :  { %86 = vst.msk [vmem:[#allocation6 + $0x28] sm:$0xff] %vm16_vm0, %v2301_v56  ;;  %87 = vst.msk [vmem:[#allocation6 + $0x30] sm:$0xff] %vm16_vm0, %v2301_v56 }
  0x2a   :  { %88 = vst.msk [vmem:[#allocation6 + $0x38] sm:$0xff] %vm16_vm0, %v2301_v56  ;;  %89 = vst.msk [vmem:[#allocation6 + $0x40] sm:$0xff] %vm16_vm0, %v2301_v56 }
  0x2b   :  { %247 = vperm.xlu1 %2244, %v102_v6   ;;  %251 = vperm.xlu0 %2243, %v103_v5   ;;  %90 = vst.msk [vmem:[#allocation6 + $0x48] sm:$0xff] %vm16_vm0, %v2301_v56  ;;  %91 = vst.msk [vmem:[#allocation6 + $0x50] sm:$0xff] %vm16_vm0, %v2301_v56 }
  0x2c   :  { %92 = vst.msk [vmem:[#allocation6 + $0x58] sm:$0xff] %vm16_vm0, %v2301_v56  ;;  %93 = vst.msk [vmem:[#allocation6 + $0x60] sm:$0xff] %vm16_vm0, %v2301_v56 }
  0x2d   :  { %94 = vst.msk [vmem:[#allocation6 + $0x68] sm:$0xff] %vm16_vm0, %v2301_v56  ;;  %95 = vst.msk [vmem:[#allocation6 + $0x70] sm:$0xff] %vm16_vm0, %v2301_v56 }
  0x2e   :  { %96 = vst.msk [vmem:[#allocation6 + $0x78] sm:$0xff] %vm16_vm0, %v2301_v56 }
  0x2f   :  { %255 = vperm.xlu1 %2244, %v104_v8   ;;  %259 = vperm.xlu0 %2243, %v105_v7  }
  0x33   :  { %263 = vperm.xlu1 %2244, %v106_v10   ;;  %267 = vperm.xlu0 %2243, %v107_v9  }
  0x37   :  { %271 = vperm.xlu1 %2244, %v108_v12   ;;  %275 = vperm.xlu0 %2243, %v109_v11  }
  0x3b   :  { %279 = vperm.xlu1 %2244, %v110_v14   ;;  %283 = vperm.xlu0 %2243, %v111_v13  }
  0x3f   :  { %287 = vperm.xlu1 %2244, %v112_v16   ;;  %291 = vperm.xlu0 %2243, %v113_v15  }
  0x81   :  { %v127_v24 = vpop.permute.xlu1 %126  ;;  %v117_v25 = vpop.permute.xlu0 %116 }
  0x82   :  { %v198_v27 = vsub.f32 %v117_v25, %v2379_v23  ;;  %v200_v29 = vsub.f32 %v127_v24, %v2379_v23 }
  0x84   :  { %v2385_v28 = vand.u32 2147483647, %v198_v27  ;;  %v2399_v38 = vand.u32 2147483647, %v200_v29 }
  0x85   :  { %v132_v30 = vpop.permute.xlu1 %131  ;;  %v122_v31 = vpop.permute.xlu0 %121 }
  0x86   :  { %v201_v32 = vsub.f32 %v132_v30, %v2379_v23  ;;  %v199_v33 = vsub.f32 %v122_v31, %v2379_v23  ;;  %v334_v34 = vmul.f32 %v2382_v26, %v2385_v28  ;;  %v2419_v49 = vmul.f32 %v2382_v26, %v2399_v38 }
  0x88   :  { %v2392_v35 = vand.u32 2147483647, %v201_v32  ;;  %v2394_v36 = vand.u32 2147483647, %v199_v33  ;;  %382 = vadd.xlane.f32.xlu1 %v334_v34  ;;  %v2397_v37 = vmul.f32 %v334_v34, %v2385_v28  ;;  %v2657_v33 = vrot.slane %v2375_v21, %v296_v20 }
  0x89   :  { %v142_v39 = vpop.permute.xlu1 %141  ;;  %v137_v40 = vpop.permute.xlu0 %136 }
  0x8a   :  { %v203_v41 = vsub.f32 %v142_v39, %v2379_v23  ;;  %v202_v42 = vsub.f32 %v137_v40, %v2379_v23  ;;  %v2405_v43 = vmul.f32 %v2382_v26, %v2394_v36  ;;  %v337_v44 = vmul.f32 %v2382_v26, %v2392_v35 }
  0x8c   :  { %v2409_v45 = vand.u32 2147483647, %v203_v41  ;;  %384 = vadd.xlane.f32.xlu0 %v2405_v43  ;;  %388 = vadd.xlane.f32.xlu1 %v337_v44  ;;  %v2413_v46 = vmul.f32 %v337_v44, %v2392_v35  ;;  %v2421_v50 = vand.u32 2147483647, %v202_v42 }
  0x8d   :  { %v152_v47 = vpop.permute.xlu1 %151  ;;  %v2415_v48 = vpop.permute.xlu0 %146 }
  0x8e   :  { %v205_v51 = vsub.f32 %v152_v47, %v2379_v23  ;;  %v204_v52 = vsub.f32 %v2415_v48, %v2379_v23  ;;  %v339_v53 = vmul.f32 %v2382_v26, %v2409_v45  ;;  %v2603_v62 = vmul.f32 %v2382_v26, %v2421_v50 }
  0x90   :  { %v2428_v54 = vand.u32 2147483647, %v205_v51  ;;  %386 = vadd.xlane.f32.xlu0 %v2419_v49  ;;  %392 = vadd.xlane.f32.xlu1 %v339_v53  ;;  %v2432_v55 = vmul.f32 %v339_v53, %v2409_v45  ;;  %v2597_v57 = vand.u32 2147483647, %v204_v52 }
  0x91   :  { %v162_v58 = vpop.permute.xlu1 %161  ;;  %v157_v59 = vpop.permute.xlu0 %156 }
  0x92   :  { %v207_v60 = vsub.f32 %v162_v58, %v2379_v23  ;;  %v206_v61 = vsub.f32 %v157_v59, %v2379_v23  ;;  %v341_v63 = vmul.f32 %v2382_v26, %v2428_v54  ;;  %v2615_v4 = vmul.f32 %v2382_v26, %v2597_v57 }
  0x94   :  { %v2607_v0 = vand.u32 2147483647, %v207_v60  ;;  %390 = vadd.xlane.f32.xlu0 %v2603_v62  ;;  %396 = vadd.xlane.f32.xlu1 %v341_v63  ;;  %v2611_v1 = vmul.f32 %v341_v63, %v2428_v54  ;;  %v2617_v5 = vand.u32 2147483647, %v206_v61 }
  0x95   :  { %v172_v2 = vpop.permute.xlu1 %171  ;;  %v167_v3 = vpop.permute.xlu0 %166 }
  0x96   :  { %v209_v6 = vsub.f32 %v172_v2, %v2379_v23  ;;  %v208_v7 = vsub.f32 %v167_v3, %v2379_v23  ;;  %v343_v8 = vmul.f32 %v2382_v26, %v2607_v0  ;;  %v2635_v16 = vmul.f32 %v2382_v26, %v2617_v5 }
  0x98   :  { %v2623_v9 = vand.u32 2147483647, %v209_v6  ;;  %394 = vadd.xlane.f32.xlu0 %v2615_v4  ;;  %400 = vadd.xlane.f32.xlu1 %v343_v8  ;;  %v2627_v10 = vmul.f32 %v343_v8, %v2607_v0  ;;  %v2629_v11 = vand.u32 2147483647, %v208_v7 }
  0x99   :  { %v182_v12 = vpop.permute.xlu1 %181  ;;  %v177_v13 = vpop.permute.xlu0 %176 }
  0x9a   :  { %v211_v14 = vsub.f32 %v182_v12, %v2379_v23  ;;  %v210_v15 = vsub.f32 %v177_v13, %v2379_v23  ;;  %v345_v17 = vmul.f32 %v2382_v26, %v2623_v9  ;;  %v2648_v29 = vmul.f32 %v2382_v26, %v2629_v11 }
  0x9c   :  { %v2640_v22 = vand.u32 2147483647, %v211_v14  ;;  %398 = vadd.xlane.f32.xlu0 %v2635_v16  ;;  %404 = vadd.xlane.f32.xlu1 %v345_v17  ;;  %v2644_v24 = vmul.f32 %v345_v17, %v2623_v9  ;;  %v2650_v30 = vand.u32 2147483647, %v210_v15 }
  0x9d   :  { %v192_v25 = vpop.permute.xlu1 %191  ;;  %v187_v27 = vpop.permute.xlu0 %186 }
  0x9e   :  { %v213_v31 = vsub.f32 %v192_v25, %v2379_v23  ;;  %v212_v19 = vsub.f32 %v187_v27, %v2379_v23  ;;  %v347_v32 = vmul.f32 %v2382_v26, %v2640_v22  ;;  %v2669_v23 = vmul.f32 %v2382_v26, %v2650_v30 }
  0xa0   :  { %v2659_v34 = vand.u32 2147483647, %v213_v31  ;;  %402 = vadd.xlane.f32.xlu0 %v2648_v29  ;;  %408 = vadd.xlane.f32.xlu1 %v347_v32  ;;  %v2663_v39 = vmul.f32 %v347_v32, %v2640_v22  ;;  %v2665_v40 = vand.u32 2147483647, %v212_v19 }
  0xa2   :  { %v236_v41 = vpop.permute.xlu1 %235  ;;  %v232_v42 = vpop.permute.xlu0 %231  ;;  %v349_v21 = vmul.f32 %v2382_v26, %v2659_v34  ;;  %v2681_v58 = vmul.f32 %v2382_v26, %v2665_v40 }
  0xa3   :  { %v299_v44 = vsub.f32 %v236_v41, %v2657_v33  ;;  %v298_v47 = vsub.f32 %v232_v42, %v2657_v33 }
  0xa4   :  { %406 = vadd.xlane.f32.xlu0 %v2669_v23  ;;  %412 = vadd.xlane.f32.xlu1 %v349_v21  ;;  %v2677_v48 = vmul.f32 %v349_v21, %v2659_v34 }
  0xa5   :  { %v315_v51 = vand.u32 2147483647, %v299_v44  ;;  %v314_v52 = vand.u32 2147483647, %v298_v47 }
  0xa6   :  { %v240_v53 = vpop.permute.xlu1 %239  ;;  %v244_v56 = vpop.permute.xlu0 %243 }
  0xa7   :  { %v300_v59 = vsub.f32 %v240_v53, %v2657_v33  ;;  %v301_v60 = vsub.f32 %v244_v56, %v2657_v33  ;;  %v2686_v61 = vmul.f32 %v2382_v26, %v315_v51  ;;  %v2689_v63 = vmul.f32 %v2382_v26, %v314_v52 }
  0xa8   :  { %410 = vadd.xlane.f32.xlu0 %v2681_v58 }
  0xa9   :  { %v316_v2 = vand.u32 2147483647, %v300_v59  ;;  %v317_v3 = vand.u32 2147483647, %v301_v60  ;;  %465 = vadd.xlane.f32.xlu1 %v2686_v61  ;;  %v2694_v8 = vmul.f32 %v2686_v61, %v315_v51  ;;  %v2697_v12 = vmul.f32 %v2689_v63, %v314_v52 }
  0xaa   :  { %v248_v6 = vpop.permute.xlu1 %247  ;;  %v252_v7 = vpop.permute.xlu0 %251 }
  0xab   :  { %v302_v13 = vsub.f32 %v248_v6, %v2657_v33  ;;  %v303_v14 = vsub.f32 %v252_v7, %v2657_v33  ;;  %v2702_v15 = vmul.f32 %v2382_v26, %v317_v3  ;;  %v2705_v17 = vmul.f32 %v2382_v26, %v316_v2 }
  0xac   :  { %463 = vadd.xlane.f32.xlu0 %v2689_v63 }
  0xad   :  { %v318_v20 = vand.u32 2147483647, %v302_v13  ;;  %v319_v25 = vand.u32 2147483647, %v303_v14  ;;  %469 = vadd.xlane.f32.xlu1 %v2702_v15  ;;  %v2710_v19 = vmul.f32 %v2702_v15, %v317_v3  ;;  %v2713_v32 = vmul.f32 %v2705_v17, %v316_v2 }
  0xae   :  { %v256_v27 = vpop.permute.xlu1 %255  ;;  %v260_v31 = vpop.permute.xlu0 %259 }
  0xaf   :  { %v304_v41 = vsub.f32 %v256_v27, %v2657_v33  ;;  %v305_v42 = vsub.f32 %v260_v31, %v2657_v33  ;;  %v2718_v21 = vmul.f32 %v2382_v26, %v319_v25  ;;  %v2721_v44 = vmul.f32 %v2382_v26, %v318_v20 }
  0xb0   :  { %467 = vadd.xlane.f32.xlu0 %v2705_v17 }
  0xb1   :  { %v320_v47 = vand.u32 2147483647, %v304_v41  ;;  %v321_v51 = vand.u32 2147483647, %v305_v42  ;;  %473 = vadd.xlane.f32.xlu1 %v2718_v21  ;;  %v2726_v56 = vmul.f32 %v2718_v21, %v319_v25  ;;  %v2729_v59 = vmul.f32 %v2721_v44, %v318_v20 }
  0xb2   :  { %v264_v52 = vpop.permute.xlu1 %263  ;;  %v268_v53 = vpop.permute.xlu0 %267 }
  0xb3   :  { %3839 = vst [vmem:[#allocation10_spill] sm:$0xff] %v2726_v56  ;;  %3840 = vst [vmem:[#allocation11_spill] sm:$0xff] %v2729_v59  ;;  %v306_v60 = vsub.f32 %v264_v52, %v2657_v33  ;;  %v307_v2 = vsub.f32 %v268_v53, %v2657_v33  ;;  %v2734_v3 = vmul.f32 %v2382_v26, %v321_v51 }
  0xb4   :  { %v2737_v6 = vmul.f32 %v2382_v26, %v320_v47  ;;  %471 = vadd.xlane.f32.xlu0 %v2721_v44 }
  0xb5   :  { %v322_v7 = vand.u32 2147483647, %v306_v60  ;;  %v323_v13 = vand.u32 2147483647, %v307_v2  ;;  %477 = vadd.xlane.f32.xlu1 %v2734_v3  ;;  %v2742_v20 = vmul.f32 %v2734_v3, %v321_v51 }
  0xb6   :  { %v272_v14 = vpop.permute.xlu1 %271  ;;  %v276_v25 = vpop.permute.xlu0 %275  ;;  %v2745_v27 = vmul.f32 %v2737_v6, %v320_v47 }
  0xb7   :  { %3841 = vst [vmem:[#allocation12_spill] sm:$0xff] %v2742_v20  ;;  %v308_v31 = vsub.f32 %v272_v14, %v2657_v33  ;;  %v309_v41 = vsub.f32 %v276_v25, %v2657_v33  ;;  %v2750_v42 = vmul.f32 %v2382_v26, %v323_v13  ;;  %v2753_v52 = vmul.f32 %v2382_v26, %v322_v7 }
  0xb8   :  { %3842 = vst [vmem:[#allocation13_spill] sm:$0xff] %v2745_v27  ;;  %475 = vadd.xlane.f32.xlu0 %v2737_v6 }
  0xb9   :  { %v324_v53 = vand.u32 2147483647, %v308_v31  ;;  %v325_v60 = vand.u32 2147483647, %v309_v41  ;;  %481 = vadd.xlane.f32.xlu1 %v2750_v42  ;;  %v2758_v47 = vmul.f32 %v2750_v42, %v323_v13  ;;  %v2761_v14 = vmul.f32 %v2753_v52, %v322_v7 }
  0xba   :  { %v280_v51 = vpop.permute.xlu1 %279  ;;  %v284_v2 = vpop.permute.xlu0 %283 }
  0xbb   :  { %3843 = vst [vmem:[#allocation14_spill] sm:$0xff] %v2758_v47  ;;  %3844 = vst [vmem:[#allocation15_spill] sm:$0xff] %v2761_v14  ;;  %v310_v25 = vsub.f32 %v280_v51, %v2657_v33  ;;  %v311_v18 = vsub.f32 %v284_v2, %v2657_v33  ;;  %v2766_v27 = vmul.f32 %v2382_v26, %v325_v60 }
  0xbc   :  { %v2769_v31 = vmul.f32 %v2382_v26, %v324_v53  ;;  %479 = vadd.xlane.f32.xlu0 %v2753_v52 }
  0xbd   :  { %v326_v41 = vand.u32 2147483647, %v310_v25  ;;  %v327_v20 = vand.u32 2147483647, %v311_v18  ;;  %485 = vadd.xlane.f32.xlu1 %v2766_v27  ;;  %v2774_v7 = vmul.f32 %v2766_v27, %v325_v60 }
  0xbe   :  { %v288_v13 = vpop.permute.xlu1 %287  ;;  %v292_v47 = vpop.permute.xlu0 %291  ;;  %v2777_v51 = vmul.f32 %v2769_v31, %v324_v53 }
  0xbf   :  { %v312_v2 = vsub.f32 %v288_v13, %v2657_v33  ;;  %v313_v14 = vsub.f32 %v292_v47, %v2657_v33  ;;  %v2782_v59 = vmul.f32 %v2382_v26, %v327_v20  ;;  %v2785_v25 = vmul.f32 %v2382_v26, %v326_v41 }
  0xc0   :  { %3845 = vst [vmem:[#allocation16_spill] sm:$0xff] %v2777_v51  ;;  %483 = vadd.xlane.f32.xlu0 %v2769_v31 }
  0xc1   :  { %v328_v18 = vand.u32 2147483647, %v312_v2  ;;  %v329_v56 = vand.u32 2147483647, %v313_v14  ;;  %489 = vadd.xlane.f32.xlu1 %v2782_v59  ;;  %v2790_v60 = vmul.f32 %v2782_v59, %v327_v20  ;;  %v2793_v53 = vmul.f32 %v2785_v25, %v326_v41  ;;  %v375_v41 = vld [vmem:[#allocation2 + $0x48] sm:$0xff] }
  0xc2   :  { %v544_v20 = vmul.f32 %v2405_v43, %v2394_v36  ;;  %v549_v43 = vmul.f32 %v2615_v4, %v2597_v57  ;;  %v642_v4 = vmul.f32 %v2702_v15, %v2392_v35  ;;  %v648_v35 = vmul.f32 %v2750_v42, %v2607_v0  ;;  %v3851_v15 = vld [vmem:[#allocation15_spill] sm:$0xff] }
  0xc3   :  { %v365_v33 = vmul.f32 %v2382_v26, %v329_v56  ;;  %v364_v47 = vmul.f32 %v2382_v26, %v328_v18  ;;  %v545_v26 = vmul.f32 %v2419_v49, %v2399_v38  ;;  %v555_v49 = vmul.f32 %v2669_v23, %v2650_v30 }
  0xc4   :  { %487 = vadd.xlane.f32.xlu0 %v2785_v25 }
  0xc5   :  { %493 = vadd.xlane.f32.xlu1 %v365_v33  ;;  %v653_v13 = vmul.f32 %v364_v47, %v2665_v40  ;;  %v2799_v51 = vmul.f32 %v365_v33, %v329_v56  ;;  %v2801_v14 = vmul.f32 %v364_v47, %v328_v18  ;;  %v547_v56 = vmul.f32 %v2603_v62, %v2421_v50 }
  0xc6   :  { %v640_v62 = vmul.f32 %v2686_v61, %v2394_v36  ;;  %v643_v36 = vmul.f32 %v2721_v44, %v2421_v50  ;;  %v649_v50 = vmul.f32 %v2769_v31, %v2629_v11  ;;  %v654_v0 = vmul.f32 %v365_v33, %v2659_v34  ;;  %v367_v34 = vld [vmem:[#allocation2 + $0x8] sm:$0xff]  ;;  %v370_v44 = vld [vmem:[#allocation2 + $0x20] sm:$0xff]  ;;  %v372_v31 = vld [vmem:[#allocation2 + $0x30] sm:$0xff] }
  0xc7   :  { %v374_v33 = vld [vmem:[#allocation2 + $0x40] sm:$0xff] }
  0xc8   :  { %491 = vadd.xlane.f32.xlu0 %v364_v47  ;;  %v377_v47 = vld [vmem:[#allocation2 + $0x58] sm:$0xff] }
  0xc9   :  { %561 = vadd.xlane.f32.xlu1 %v544_v20 }
  0xcc   :  { %559 = vadd.xlane.f32.xlu0 %v2397_v37  ;;  %v551_v37 = vmul.f32 %v2635_v16, %v2617_v5  ;;  %v644_v16 = vmul.f32 %v2718_v21, %v2409_v45  ;;  %v650_v45 = vmul.f32 %v2766_v27, %v2623_v9  ;;  %v366_v9 = vld [vmem:[#allocation2] sm:$0xff] }
  0xcd   :  { %565 = vadd.xlane.f32.xlu1 %v2413_v46  ;;  %v553_v46 = vmul.f32 %v2648_v29, %v2629_v11  ;;  %v3847_v11 = vld [vmem:[#allocation11_spill] sm:$0xff] }
  0xd0   :  { %563 = vadd.xlane.f32.xlu0 %v545_v26 }
  0xd1   :  { %569 = vadd.xlane.f32.xlu1 %v2432_v55  ;;  %v557_v55 = vmul.f32 %v2681_v58, %v2665_v40  ;;  %v3849_v40 = vld [vmem:[#allocation13_spill] sm:$0xff] }
  0xd4   :  { %567 = vadd.xlane.f32.xlu0 %v547_v56  ;;  %v376_v56 = vld [vmem:[#allocation2 + $0x50] sm:$0xff] }
  0xd5   :  { %573 = vadd.xlane.f32.xlu1 %v2611_v1  ;;  %v639_v1 = vmul.f32 %v2689_v63, %v2385_v28  ;;  %v645_v28 = vmul.f32 %v2737_v6, %v2597_v57  ;;  %v651_v57 = vmul.f32 %v2785_v25, %v2650_v30 }
  0xd8   :  { %571 = vadd.xlane.f32.xlu0 %v549_v43 }
  0xd9   :  { %577 = vadd.xlane.f32.xlu1 %v2627_v10  ;;  %v641_v10 = vmul.f32 %v2705_v17, %v2399_v38  ;;  %v647_v38 = vmul.f32 %v2753_v52, %v2617_v5  ;;  %v3846_v5 = vld [vmem:[#allocation10_spill] sm:$0xff] }
  0xdc   :  { %575 = vadd.xlane.f32.xlu0 %v551_v37 }
  0xdd   :  { %581 = vadd.xlane.f32.xlu1 %v2644_v24  ;;  %v646_v24 = vmul.f32 %v2734_v3, %v2428_v54  ;;  %v652_v54 = vmul.f32 %v2782_v59, %v2640_v22  ;;  %v3848_v22 = vld [vmem:[#allocation12_spill] sm:$0xff] }
  0xde   :  { %v373_v59 = vld [vmem:[#allocation2 + $0x38] sm:$0xff] }
  0xdf   :  { %v3852_v3 = vld [vmem:[#allocation16_spill] sm:$0xff] }
  0xe0   :  { %579 = vadd.xlane.f32.xlu0 %v553_v46 }
  0xe1   :  { %585 = vadd.xlane.f32.xlu1 %v2663_v39  ;;  %v369_v39 = vld [vmem:[#allocation2 + $0x18] sm:$0xff] }
  0xe4   :  { %583 = vadd.xlane.f32.xlu0 %v555_v49  ;;  %v378_v49 = vld [vmem:[#allocation2 + $0x60] sm:$0xff] }
  0xe5   :  { %589 = vadd.xlane.f32.xlu1 %v2677_v48  ;;  %v3850_v48 = vld [vmem:[#allocation14_spill] sm:$0xff] }
  0xe8   :  { %587 = vadd.xlane.f32.xlu0 %v557_v55  ;;  %v381_v55 = vld [vmem:[#allocation2 + $0x78] sm:$0xff] }
  0xe9   :  { %657 = vadd.xlane.f32.xlu1 %v640_v62 }
  0xec   :  { %655 = vadd.xlane.f32.xlu0 %v639_v1 }
  0xed   :  { %661 = vadd.xlane.f32.xlu1 %v642_v4 }
  0xf0   :  { %659 = vadd.xlane.f32.xlu0 %v641_v10  ;;  %v380_v10 = vld [vmem:[#allocation2 + $0x70] sm:$0xff] }
  0xf1   :  { %665 = vadd.xlane.f32.xlu1 %v644_v16  ;;  %v448_v16 = vld [vmem:[#allocation3 + $0x8] sm:$0xff] }
  0xf4   :  { %663 = vadd.xlane.f32.xlu0 %v643_v36 }
  0xf5   :  { %669 = vadd.xlane.f32.xlu1 %v646_v24 }
  0xf8   :  { %667 = vadd.xlane.f32.xlu0 %v645_v28 }
  0xf9   :  { %673 = vadd.xlane.f32.xlu1 %v648_v35 }
  0xfc   :  { %671 = vadd.xlane.f32.xlu0 %v647_v38 }
  0xfd   :  { %677 = vadd.xlane.f32.xlu1 %v650_v45  ;;  %v447_v45 = vld [vmem:[#allocation3] sm:$0xff] }
 0x100   :  { %675 = vadd.xlane.f32.xlu0 %v649_v50  ;;  %v450_v50 = vld [vmem:[#allocation3 + $0x18] sm:$0xff] }
 0x101   :  { %681 = vadd.xlane.f32.xlu1 %v652_v54 }
 0x104   :  { %679 = vadd.xlane.f32.xlu0 %v651_v57 }
 0x105   :  { %685 = vadd.xlane.f32.xlu1 %v654_v0 }
 0x108   :  { %683 = vadd.xlane.f32.xlu0 %v653_v13 }
 0x109   :  { %753 = vadd.xlane.f32.xlu1 %v2694_v8  ;;  %v368_v8 = vld [vmem:[#allocation2 + $0x10] sm:$0xff] }
 0x10c   :  { %751 = vadd.xlane.f32.xlu0 %v2697_v12  ;;  %v371_v12 = vld [vmem:[#allocation2 + $0x28] sm:$0xff] }
 0x10d   :  { %757 = vadd.xlane.f32.xlu1 %v2710_v19 }
 0x110   :  { %755 = vadd.xlane.f32.xlu0 %v2713_v32 }
 0x111   :  { %761 = vadd.xlane.f32.xlu1 %v3846_v5 }
 0x114   :  { %759 = vadd.xlane.f32.xlu0 %v3847_v11  ;;  %v449_v11 = vld [vmem:[#allocation3 + $0x10] sm:$0xff] }
 0x115   :  { %765 = vadd.xlane.f32.xlu1 %v3848_v22  ;;  %v383_v29 = vpop.xlane.xlu1 %382  ;;  %v452_v22 = vld [vmem:[#allocation3 + $0x28] sm:$0xff] }
 0x116   :  { %v414_v30 = vadd.f32 %v383_v29, %v366_v9 }
 0x118   :  { %431 = vst.msk [vmem:[#allocation2] sm:$0xff] %vm16_vm0, %v414_v30  ;;  %763 = vadd.xlane.f32.xlu0 %v3849_v40 }
 0x119   :  { %v385_v23 = vpop.xlane.xlu0 %384  ;;  %769 = vadd.xlane.f32.xlu1 %v3850_v48  ;;  %v389_v58 = vpop.xlane.xlu1 %388  ;;  %v451_v48 = vld [vmem:[#allocation3 + $0x20] sm:$0xff] }
 0x11a   :  { %v415_v61 = vadd.f32 %v385_v23, %v367_v34  ;;  %v417_v63 = vadd.f32 %v389_v58, %v369_v39  ;;  %v454_v58 = vld [vmem:[#allocation3 + $0x38] sm:$0xff] }
 0x11c   :  { %432 = vst.msk [vmem:[#allocation2 + $0x8] sm:$0xff] %vm16_vm0, %v415_v61  ;;  %434 = vst.msk [vmem:[#allocation2 + $0x18] sm:$0xff] %vm16_vm0, %v417_v63  ;;  %767 = vadd.xlane.f32.xlu0 %v3851_v15 }
 0x11d   :  { %v387_v17 = vpop.xlane.xlu0 %386  ;;  %773 = vadd.xlane.f32.xlu1 %v2774_v7  ;;  %v393_v19 = vpop.xlane.xlu1 %392 }
 0x11e   :  { %v416_v32 = vadd.f32 %v387_v17, %v368_v8  ;;  %v419_v21 = vadd.f32 %v393_v19, %v371_v12  ;;  %v453_v19 = vld [vmem:[#allocation3 + $0x30] sm:$0xff] }
 0x11f   :  { %v818_v34 = vld [vmem:[#allocation2] sm:$0xff] }
 0x120   :  { %433 = vst.msk [vmem:[#allocation2 + $0x10] sm:$0xff] %vm16_vm0, %v416_v32  ;;  %436 = vst.msk [vmem:[#allocation2 + $0x28] sm:$0xff] %vm16_vm0, %v419_v21  ;;  %771 = vadd.xlane.f32.xlu0 %v3852_v3  ;;  %v456_v32 = vld [vmem:[#allocation3 + $0x48] sm:$0xff] }
 0x121   :  { %v391_v6 = vpop.xlane.xlu0 %390  ;;  %777 = vadd.xlane.f32.xlu1 %v2790_v60  ;;  %v397_v27 = vpop.xlane.xlu1 %396 }
 0x122   :  { %v418_v42 = vadd.f32 %v391_v6, %v370_v44  ;;  %v421_v52 = vadd.f32 %v397_v27, %v373_v59 }
 0x123   :  { %v819_v24 = vld [vmem:[#allocation2 + $0x8] sm:$0xff]  ;;  %v821_v8 = vld [vmem:[#allocation2 + $0x18] sm:$0xff] }
 0x124   :  { %435 = vst.msk [vmem:[#allocation2 + $0x20] sm:$0xff] %vm16_vm0, %v418_v42  ;;  %438 = vst.msk [vmem:[#allocation2 + $0x38] sm:$0xff] %vm16_vm0, %v421_v52  ;;  %775 = vadd.xlane.f32.xlu0 %v2793_v53  ;;  %v379_v53 = vld [vmem:[#allocation2 + $0x68] sm:$0xff]  ;;  %v455_v42 = vld [vmem:[#allocation3 + $0x40] sm:$0xff] }
 0x125   :  { %v395_v7 = vpop.xlane.xlu0 %394  ;;  %781 = vadd.xlane.f32.xlu1 %v2799_v51  ;;  %v401_v2 = vpop.xlane.xlu1 %400  ;;  %v458_v52 = vld [vmem:[#allocation3 + $0x58] sm:$0xff] }
 0x126   :  { %v420_v25 = vadd.f32 %v395_v7, %v372_v31  ;;  %v423_v18 = vadd.f32 %v401_v2, %v375_v41 }
 0x127   :  { %v820_v57 = vld [vmem:[#allocation2 + $0x10] sm:$0xff]  ;;  %v823_v59 = vld [vmem:[#allocation2 + $0x28] sm:$0xff] }
 0x128   :  { %437 = vst.msk [vmem:[#allocation2 + $0x30] sm:$0xff] %vm16_vm0, %v420_v25  ;;  %440 = vst.msk [vmem:[#allocation2 + $0x48] sm:$0xff] %vm16_vm0, %v423_v18  ;;  %779 = vadd.xlane.f32.xlu0 %v2801_v14 }
 0x129   :  { %v399_v60 = vpop.xlane.xlu0 %398  ;;  %v405_v13 = vpop.xlane.xlu1 %404 }
 0x12a   :  { %v422_v20 = vadd.f32 %v399_v60, %v374_v33  ;;  %v425_v26 = vadd.f32 %v405_v13, %v377_v47  ;;  %v457_v33 = vld [vmem:[#allocation3 + $0x50] sm:$0xff]  ;;  %v460_v47 = vld [vmem:[#allocation3 + $0x68] sm:$0xff] }
 0x12b   :  { %v822_v30 = vld [vmem:[#allocation2 + $0x20] sm:$0xff]  ;;  %v825_v7 = vld [vmem:[#allocation2 + $0x38] sm:$0xff] }
 0x12c   :  { %439 = vst.msk [vmem:[#allocation2 + $0x40] sm:$0xff] %vm16_vm0, %v422_v20  ;;  %442 = vst.msk [vmem:[#allocation2 + $0x58] sm:$0xff] %vm16_vm0, %v425_v26 }
 0x12d   :  { %v403_v51 = vpop.xlane.xlu0 %402  ;;  %v409_v43 = vpop.xlane.xlu1 %408 }
 0x12e   :  { %v424_v37 = vadd.f32 %v403_v51, %v376_v56  ;;  %v427_v46 = vadd.f32 %v409_v43, %v379_v53  ;;  %v459_v51 = vld [vmem:[#allocation3 + $0x60] sm:$0xff]  ;;  %v462_v43 = vld [vmem:[#allocation3 + $0x78] sm:$0xff] }
 0x12f   :  { %v824_v63 = vld [vmem:[#allocation2 + $0x30] sm:$0xff]  ;;  %v827_v20 = vld [vmem:[#allocation2 + $0x48] sm:$0xff] }
 0x130   :  { %441 = vst.msk [vmem:[#allocation2 + $0x50] sm:$0xff] %vm16_vm0, %v424_v37  ;;  %444 = vst.msk [vmem:[#allocation2 + $0x68] sm:$0xff] %vm16_vm0, %v427_v46 }
 0x131   :  { %v407_v14 = vpop.xlane.xlu0 %406  ;;  %v413_v62 = vpop.xlane.xlu1 %412 }
 0x132   :  { %v426_v1 = vadd.f32 %v407_v14, %v378_v49  ;;  %v429_v4 = vadd.f32 %v413_v62, %v381_v55 }
 0x133   :  { %v826_v44 = vld [vmem:[#allocation2 + $0x40] sm:$0xff]  ;;  %v829_v49 = vld [vmem:[#allocation2 + $0x58] sm:$0xff] }
 0x134   :  { %443 = vst.msk [vmem:[#allocation2 + $0x60] sm:$0xff] %vm16_vm0, %v426_v1  ;;  %446 = vst.msk [vmem:[#allocation2 + $0x78] sm:$0xff] %vm16_vm0, %v429_v4  ;;  %v461_v1 = vld [vmem:[#allocation3 + $0x70] sm:$0xff]  ;;  %v528_v4 = vld [vmem:[#allocation4 + $0x8] sm:$0xff] }
 0x135   :  { %v411_v36 = vpop.xlane.xlu0 %410 }
 0x136   :  { %v428_v28 = vadd.f32 %v411_v36, %v380_v10  ;;  %v466_v35 = vpop.xlane.xlu1 %465  ;;  %868 = vrot.lane.b32.xlu1 %v819_v24, %s2302_s0 }
 0x137   :  { %v496_v38 = vadd.f32 %v466_v35, %v448_v16  ;;  %v828_v41 = vld [vmem:[#allocation2 + $0x50] sm:$0xff]  ;;  %v831_v36 = vld [vmem:[#allocation2 + $0x68] sm:$0xff] }
 0x138   :  { %445 = vst.msk [vmem:[#allocation2 + $0x70] sm:$0xff] %vm16_vm0, %v428_v28 }
 0x139   :  { %512 = vst.msk [vmem:[#allocation3 + $0x8] sm:$0xff] %vm16_vm0, %v496_v38  ;;  %v464_v54 = vpop.xlane.xlu0 %463  ;;  %v527_v38 = vld [vmem:[#allocation4] sm:$0xff] }
 0x13a   :  { %v495_v0 = vadd.f32 %v464_v54, %v447_v45  ;;  %v470_v5 = vpop.xlane.xlu1 %469  ;;  %870 = vrot.lane.b32.xlu1 %v820_v57, %s2302_s0  ;;  %v530_v45 = vld [vmem:[#allocation4 + $0x18] sm:$0xff] }
 0x13b   :  { %v498_v9 = vadd.f32 %v470_v5, %v450_v50  ;;  %v830_v13 = vld [vmem:[#allocation2 + $0x60] sm:$0xff]  ;;  %v833_v54 = vld [vmem:[#allocation2 + $0x78] sm:$0xff] }
 0x13c   :  { %511 = vst.msk [vmem:[#allocation3] sm:$0xff] %vm16_vm0, %v495_v0 }
 0x13d   :  { %514 = vst.msk [vmem:[#allocation3 + $0x18] sm:$0xff] %vm16_vm0, %v498_v9  ;;  %v468_v29 = vpop.xlane.xlu0 %467  ;;  %v529_v9 = vld [vmem:[#allocation4 + $0x10] sm:$0xff] }
 0x13e   :  { %v497_v39 = vadd.f32 %v468_v29, %v449_v11  ;;  %v474_v40 = vpop.xlane.xlu1 %473  ;;  %874 = vrot.lane.b32.xlu1 %v822_v30, %s2302_s0  ;;  %866 = vrot.lane.b32.xlu0 %v818_v34, %s2302_s0  ;;  %v532_v11 = vld [vmem:[#allocation4 + $0x28] sm:$0xff] }
 0x13f   :  { %v500_v23 = vadd.f32 %v474_v40, %v452_v22  ;;  %v832_v46 = vld [vmem:[#allocation2 + $0x70] sm:$0xff] }
 0x140   :  { %513 = vst.msk [vmem:[#allocation3 + $0x10] sm:$0xff] %vm16_vm0, %v497_v39 }
 0x141   :  { %516 = vst.msk [vmem:[#allocation3 + $0x28] sm:$0xff] %vm16_vm0, %v500_v23  ;;  %v472_v61 = vpop.xlane.xlu0 %471  ;;  %v531_v23 = vld [vmem:[#allocation4 + $0x20] sm:$0xff] }
 0x142   :  { %v499_v12 = vadd.f32 %v472_v61, %v451_v48  ;;  %v478_v15 = vpop.xlane.xlu1 %477  ;;  %878 = vrot.lane.b32.xlu1 %v824_v63, %s2302_s0  ;;  %872 = vrot.lane.b32.xlu0 %v821_v8, %s2302_s0  ;;  %v534_v48 = vld [vmem:[#allocation4 + $0x38] sm:$0xff]  ;;  %v835_v61 = vld [vmem:[#allocation3 + $0x8] sm:$0xff] }
 0x143   :  { %v502_v17 = vadd.f32 %v478_v15, %v454_v58  ;;  %v834_v29 = vld [vmem:[#allocation3] sm:$0xff]  ;;  %v533_v15 = vld [vmem:[#allocation4 + $0x30] sm:$0xff] }
 0x144   :  { %515 = vst.msk [vmem:[#allocation3 + $0x20] sm:$0xff] %vm16_vm0, %v499_v12 }
 0x145   :  { %518 = vst.msk [vmem:[#allocation3 + $0x38] sm:$0xff] %vm16_vm0, %v502_v17  ;;  %v476_v21 = vpop.xlane.xlu0 %475  ;;  %v536_v17 = vld [vmem:[#allocation4 + $0x48] sm:$0xff] }
 0x146   :  { %v501_v3 = vadd.f32 %v476_v21, %v453_v19  ;;  %v482_v6 = vpop.xlane.xlu1 %481  ;;  %882 = vrot.lane.b32.xlu1 %v826_v44, %s2302_s0  ;;  %876 = vrot.lane.b32.xlu0 %v823_v59, %s2302_s0 }
 0x147   :  { %v504_v27 = vadd.f32 %v482_v6, %v456_v32  ;;  %v836_v32 = vld [vmem:[#allocation3 + $0x10] sm:$0xff]  ;;  %v538_v6 = vld [vmem:[#allocation4 + $0x58] sm:$0xff] }
 0x148   :  { %517 = vst.msk [vmem:[#allocation3 + $0x30] sm:$0xff] %vm16_vm0, %v501_v3  ;;  %v535_v3 = vld [vmem:[#allocation4 + $0x40] sm:$0xff] }
 0x149   :  { %520 = vst.msk [vmem:[#allocation3 + $0x48] sm:$0xff] %vm16_vm0, %v504_v27  ;;  %v480_v31 = vpop.xlane.xlu0 %479 }
 0x14a   :  { %v503_v2 = vadd.f32 %v480_v31, %v455_v42  ;;  %v486_v25 = vpop.xlane.xlu1 %485  ;;  %886 = vrot.lane.b32.xlu1 %v828_v41, %s2302_s0  ;;  %880 = vrot.lane.b32.xlu0 %v825_v7, %s2302_s0  ;;  %v837_v42 = vld [vmem:[#allocation3 + $0x18] sm:$0xff]  ;;  %v537_v7 = vld [vmem:[#allocation4 + $0x50] sm:$0xff] }
 0x14b   :  { %v506_v18 = vadd.f32 %v486_v25, %v458_v52 }
 0x14c   :  { %519 = vst.msk [vmem:[#allocation3 + $0x40] sm:$0xff] %vm16_vm0, %v503_v2  ;;  %v540_v2 = vld [vmem:[#allocation4 + $0x68] sm:$0xff] }
 0x14d   :  { %522 = vst.msk [vmem:[#allocation3 + $0x58] sm:$0xff] %vm16_vm0, %v506_v18  ;;  %v484_v60 = vpop.xlane.xlu0 %483  ;;  %v838_v18 = vld [vmem:[#allocation3 + $0x20] sm:$0xff] }
 0x14e   :  { %v505_v26 = vadd.f32 %v484_v60, %v457_v33  ;;  %v490_v56 = vpop.xlane.xlu1 %489  ;;  %890 = vrot.lane.b32.xlu1 %v830_v13, %s2302_s0  ;;  %884 = vrot.lane.b32.xlu0 %v827_v20, %s2302_s0  ;;  %v539_v13 = vld [vmem:[#allocation4 + $0x60] sm:$0xff]  ;;  %v542_v20 = vld [vmem:[#allocation4 + $0x78] sm:$0xff] }
 0x14f   :  { %v508_v53 = vadd.f32 %v490_v56, %v460_v47  ;;  %v839_v56 = vld [vmem:[#allocation3 + $0x28] sm:$0xff] }
 0x150   :  { %521 = vst.msk [vmem:[#allocation3 + $0x50] sm:$0xff] %vm16_vm0, %v505_v26  ;;  %v843_v16 = vld [vmem:[#allocation3 + $0x48] sm:$0xff] }
 0x151   :  { %524 = vst.msk [vmem:[#allocation3 + $0x68] sm:$0xff] %vm16_vm0, %v508_v53  ;;  %v488_v37 = vpop.xlane.xlu0 %487 }
 0x152   :  { %v507_v55 = vadd.f32 %v488_v37, %v459_v51  ;;  %v494_v14 = vpop.xlane.xlu1 %493  ;;  %894 = vrot.lane.b32.xlu1 %v832_v46, %s2302_s0  ;;  %888 = vrot.lane.b32.xlu0 %v829_v49, %s2302_s0  ;;  %v541_v37 = vld [vmem:[#allocation4 + $0x70] sm:$0xff]  ;;  %v624_v46 = vld [vmem:[#allocation5 + $0x8] sm:$0xff] }
 0x153   :  { %v510_v62 = vadd.f32 %v494_v14, %v462_v43 }
 0x154   :  { %523 = vst.msk [vmem:[#allocation3 + $0x60] sm:$0xff] %vm16_vm0, %v507_v55  ;;  %v840_v55 = vld [vmem:[#allocation3 + $0x30] sm:$0xff] }
 0x155   :  { %526 = vst.msk [vmem:[#allocation3 + $0x78] sm:$0xff] %vm16_vm0, %v510_v62  ;;  %v492_v10 = vpop.xlane.xlu0 %491 }
 0x156   :  { %v509_v24 = vadd.f32 %v492_v10, %v461_v1  ;;  %v562_v28 = vpop.xlane.xlu1 %561  ;;  %1068 = vrot.lane.b32.xlu1 %v843_v16, %s2302_s0  ;;  %892 = vrot.lane.b32.xlu0 %v831_v36, %s2302_s0  ;;  %v626_v10 = vld [vmem:[#allocation5 + $0x18] sm:$0xff] }
 0x157   :  { %v592_v35 = vadd.f32 %v562_v28, %v528_v4  ;;  %v623_v4 = vld [vmem:[#allocation5] sm:$0xff]  ;;  %v841_v36 = vld [vmem:[#allocation3 + $0x38] sm:$0xff] }
 0x158   :  { %525 = vst.msk [vmem:[#allocation3 + $0x70] sm:$0xff] %vm16_vm0, %v509_v24 }
 0x159   :  { %608 = vst.msk [vmem:[#allocation4 + $0x8] sm:$0xff] %vm16_vm0, %v592_v35  ;;  %v560_v50 = vpop.xlane.xlu0 %559 }
 0x15a   :  { %v591_v57 = vadd.f32 %v560_v50, %v527_v38  ;;  %v566_v0 = vpop.xlane.xlu1 %565  ;;  %896 = vrot.lane.b32.xlu0 %v833_v54, %s2302_s0  ;;  %v625_v38 = vld [vmem:[#allocation5 + $0x10] sm:$0xff]  ;;  %v842_v54 = vld [vmem:[#allocation3 + $0x40] sm:$0xff] }
 0x15b   :  { %v594_v5 = vadd.f32 %v566_v0, %v530_v45  ;;  %v628_v45 = vld [vmem:[#allocation5 + $0x28] sm:$0xff] }
 0x15c   :  { %607 = vst.msk [vmem:[#allocation4] sm:$0xff] %vm16_vm0, %v591_v57 }
 0x15d   :  { %610 = vst.msk [vmem:[#allocation4 + $0x18] sm:$0xff] %vm16_vm0, %v594_v5  ;;  %v564_v22 = vpop.xlane.xlu0 %563 }
 0x15e   :  { %v593_v30 = vadd.f32 %v564_v22, %v529_v9  ;;  %v570_v34 = vpop.xlane.xlu1 %569  ;;  %1050 = vrot.lane.b32.xlu0 %v834_v29, %s2302_s0  ;;  %v627_v9 = vld [vmem:[#allocation5 + $0x20] sm:$0xff]  ;;  %v844_v29 = vld [vmem:[#allocation3 + $0x50] sm:$0xff] }
 0x15f   :  { %v596_v39 = vadd.f32 %v570_v34, %v532_v11  ;;  %v848_v40 = vld [vmem:[#allocation3 + $0x70] sm:$0xff]  ;;  %v630_v11 = vld [vmem:[#allocation5 + $0x38] sm:$0xff] }
 0x160   :  { %609 = vst.msk [vmem:[#allocation4 + $0x10] sm:$0xff] %vm16_vm0, %v593_v30  ;;  %1078 = vrot.lane.b32.xlu1 %v848_v40, %s2302_s0  ;;  %v629_v40 = vld [vmem:[#allocation5 + $0x30] sm:$0xff] }
 0x161   :  { %612 = vst.msk [vmem:[#allocation4 + $0x28] sm:$0xff] %vm16_vm0, %v596_v39  ;;  %v568_v58 = vpop.xlane.xlu0 %567 }
 0x162   :  { %v595_v63 = vadd.f32 %v568_v58, %v531_v23  ;;  %v574_v8 = vpop.xlane.xlu1 %573  ;;  %1052 = vrot.lane.b32.xlu0 %v835_v61, %s2302_s0  ;;  %v632_v23 = vld [vmem:[#allocation5 + $0x48] sm:$0xff]  ;;  %v845_v58 = vld [vmem:[#allocation3 + $0x58] sm:$0xff] }
 0x163   :  { %v598_v12 = vadd.f32 %v574_v8, %v534_v48 }
 0x164   :  { %611 = vst.msk [vmem:[#allocation4 + $0x20] sm:$0xff] %vm16_vm0, %v595_v63 }
 0x165   :  { %614 = vst.msk [vmem:[#allocation4 + $0x38] sm:$0xff] %vm16_vm0, %v598_v12  ;;  %v572_v19 = vpop.xlane.xlu0 %571  ;;  %v631_v12 = vld [vmem:[#allocation5 + $0x40] sm:$0xff] }
 0x166   :  { %v597_v21 = vadd.f32 %v572_v19, %v533_v15  ;;  %v578_v44 = vpop.xlane.xlu1 %577  ;;  %1054 = vrot.lane.b32.xlu0 %v836_v32, %s2302_s0  ;;  %v634_v15 = vld [vmem:[#allocation5 + $0x58] sm:$0xff]  ;;  %v846_v19 = vld [vmem:[#allocation3 + $0x60] sm:$0xff] }
 0x167   :  { %v600_v59 = vadd.f32 %v578_v44, %v536_v17 }
 0x168   :  { %613 = vst.msk [vmem:[#allocation4 + $0x30] sm:$0xff] %vm16_vm0, %v597_v21 }
 0x169   :  { %616 = vst.msk [vmem:[#allocation4 + $0x48] sm:$0xff] %vm16_vm0, %v600_v59  ;;  %v576_v27 = vpop.xlane.xlu0 %575  ;;  %v633_v59 = vld [vmem:[#allocation5 + $0x50] sm:$0xff] }
 0x16a   :  { %v599_v52 = vadd.f32 %v576_v27, %v535_v3  ;;  %v582_v31 = vpop.xlane.xlu1 %581  ;;  %1056 = vrot.lane.b32.xlu0 %v837_v42, %s2302_s0  ;;  %v636_v3 = vld [vmem:[#allocation5 + $0x68] sm:$0xff] }
 0x16b   :  { %v602_v41 = vadd.f32 %v582_v31, %v538_v6  ;;  %v847_v27 = vld [vmem:[#allocation3 + $0x68] sm:$0xff] }
 0x16c   :  { %615 = vst.msk [vmem:[#allocation4 + $0x40] sm:$0xff] %vm16_vm0, %v599_v52 }
 0x16d   :  { %618 = vst.msk [vmem:[#allocation4 + $0x58] sm:$0xff] %vm16_vm0, %v602_v41  ;;  %v580_v25 = vpop.xlane.xlu0 %579  ;;  %v635_v41 = vld [vmem:[#allocation5 + $0x60] sm:$0xff] }
 0x16e   :  { %v601_v33 = vadd.f32 %v580_v25, %v537_v7  ;;  %v586_v47 = vpop.xlane.xlu1 %585  ;;  %1058 = vrot.lane.b32.xlu0 %v838_v18, %s2302_s0  ;;  %v638_v7 = vld [vmem:[#allocation5 + $0x78] sm:$0xff] }
 0x16f   :  { %v604_v60 = vadd.f32 %v586_v47, %v540_v2  ;;  %v849_v25 = vld [vmem:[#allocation3 + $0x78] sm:$0xff] }
 0x170   :  { %617 = vst.msk [vmem:[#allocation4 + $0x50] sm:$0xff] %vm16_vm0, %v601_v33 }
 0x171   :  { %620 = vst.msk [vmem:[#allocation4 + $0x68] sm:$0xff] %vm16_vm0, %v604_v60  ;;  %v584_v26 = vpop.xlane.xlu0 %583  ;;  %v637_v60 = vld [vmem:[#allocation5 + $0x70] sm:$0xff] }
 0x172   :  { %v603_v53 = vadd.f32 %v584_v26, %v539_v13  ;;  %v590_v51 = vpop.xlane.xlu1 %589  ;;  %1060 = vrot.lane.b32.xlu0 %v839_v56, %s2302_s0  ;;  %v720_v13 = vld [vmem:[#allocation6 + $0x8] sm:$0xff] }
 0x173   :  { %v606_v43 = vadd.f32 %v590_v51, %v542_v20  ;;  %v719_v51 = vld [vmem:[#allocation6] sm:$0xff] }
 0x174   :  { %619 = vst.msk [vmem:[#allocation4 + $0x60] sm:$0xff] %vm16_vm0, %v603_v53 }
 0x175   :  { %622 = vst.msk [vmem:[#allocation4 + $0x78] sm:$0xff] %vm16_vm0, %v606_v43  ;;  %v588_v49 = vpop.xlane.xlu0 %587  ;;  %v722_v43 = vld [vmem:[#allocation6 + $0x18] sm:$0xff] }
 0x176   :  { %v605_v14 = vadd.f32 %v588_v49, %v541_v37  ;;  %v658_v62 = vpop.xlane.xlu1 %657  ;;  %1062 = vrot.lane.b32.xlu0 %v840_v55, %s2302_s0 }
 0x177   :  { %v688_v1 = vadd.f32 %v658_v62, %v624_v46  ;;  %v724_v62 = vld [vmem:[#allocation6 + $0x28] sm:$0xff] }
 0x178   :  { %621 = vst.msk [vmem:[#allocation4 + $0x70] sm:$0xff] %vm16_vm0, %v605_v14  ;;  %v721_v14 = vld [vmem:[#allocation6 + $0x10] sm:$0xff] }
 0x179   :  { %704 = vst.msk [vmem:[#allocation5 + $0x8] sm:$0xff] %vm16_vm0, %v688_v1  ;;  %v656_v16 = vpop.xlane.xlu0 %655 }
 0x17a   :  { %v687_v24 = vadd.f32 %v656_v16, %v623_v4  ;;  %v662_v28 = vpop.xlane.xlu1 %661  ;;  %1064 = vrot.lane.b32.xlu0 %v841_v36, %s2302_s0  ;;  %v723_v36 = vld [vmem:[#allocation6 + $0x20] sm:$0xff] }
 0x17b   :  { %v690_v35 = vadd.f32 %v662_v28, %v626_v10 }
 0x17c   :  { %703 = vst.msk [vmem:[#allocation5] sm:$0xff] %vm16_vm0, %v687_v24  ;;  %v726_v24 = vld [vmem:[#allocation6 + $0x38] sm:$0xff] }
 0x17d   :  { %706 = vst.msk [vmem:[#allocation5 + $0x18] sm:$0xff] %vm16_vm0, %v690_v35  ;;  %v660_v50 = vpop.xlane.xlu0 %659 }
 0x17e   :  { %v689_v57 = vadd.f32 %v660_v50, %v625_v38  ;;  %v666_v0 = vpop.xlane.xlu1 %665  ;;  %1066 = vrot.lane.b32.xlu0 %v842_v54, %s2302_s0  ;;  %v725_v50 = vld [vmem:[#allocation6 + $0x30] sm:$0xff]  ;;  %v728_v54 = vld [vmem:[#allocation6 + $0x48] sm:$0xff] }
 0x17f   :  { %v692_v5 = vadd.f32 %v666_v0, %v628_v45 }
 0x180   :  { %705 = vst.msk [vmem:[#allocation5 + $0x10] sm:$0xff] %vm16_vm0, %v689_v57 }
 0x181   :  { %708 = vst.msk [vmem:[#allocation5 + $0x28] sm:$0xff] %vm16_vm0, %v692_v5  ;;  %v664_v22 = vpop.xlane.xlu0 %663 }
 0x182   :  { %v691_v30 = vadd.f32 %v664_v22, %v627_v9  ;;  %v670_v34 = vpop.xlane.xlu1 %669  ;;  %1070 = vrot.lane.b32.xlu0 %v844_v29, %s2302_s0  ;;  %v730_v22 = vld [vmem:[#allocation6 + $0x58] sm:$0xff] }
 0x183   :  { %v694_v39 = vadd.f32 %v670_v34, %v630_v11  ;;  %v727_v11 = vld [vmem:[#allocation6 + $0x40] sm:$0xff] }
 0x184   :  { %707 = vst.msk [vmem:[#allocation5 + $0x20] sm:$0xff] %vm16_vm0, %v691_v30 }
 0x185   :  { %710 = vst.msk [vmem:[#allocation5 + $0x38] sm:$0xff] %vm16_vm0, %v694_v39  ;;  %v668_v48 = vpop.xlane.xlu0 %667 }
 0x186   :  { %v693_v61 = vadd.f32 %v668_v48, %v629_v40  ;;  %v674_v63 = vpop.xlane.xlu1 %673  ;;  %1072 = vrot.lane.b32.xlu0 %v845_v58, %s2302_s0  ;;  %v729_v40 = vld [vmem:[#allocation6 + $0x50] sm:$0xff] }
 0x187   :  { %v696_v8 = vadd.f32 %v674_v63, %v632_v23  ;;  %v732_v23 = vld [vmem:[#allocation6 + $0x68] sm:$0xff] }
 0x188   :  { %709 = vst.msk [vmem:[#allocation5 + $0x30] sm:$0xff] %vm16_vm0, %v693_v61 }
 0x189   :  { %712 = vst.msk [vmem:[#allocation5 + $0x48] sm:$0xff] %vm16_vm0, %v696_v8  ;;  %v672_v17 = vpop.xlane.xlu0 %671  ;;  %v731_v8 = vld [vmem:[#allocation6 + $0x60] sm:$0xff] }
 0x18a   :  { %v695_v32 = vadd.f32 %v672_v17, %v631_v12  ;;  %v678_v21 = vpop.xlane.xlu1 %677  ;;  %1074 = vrot.lane.b32.xlu0 %v846_v19, %s2302_s0  ;;  %v734_v12 = vld [vmem:[#allocation6 + $0x78] sm:$0xff] }
 0x18b   :  { %v698_v44 = vadd.f32 %v678_v21, %v634_v15  ;;  %v733_v21 = vld [vmem:[#allocation6 + $0x70] sm:$0xff] }
 0x18c   :  { %711 = vst.msk [vmem:[#allocation5 + $0x40] sm:$0xff] %vm16_vm0, %v695_v32 }
 0x18d   :  { %714 = vst.msk [vmem:[#allocation5 + $0x58] sm:$0xff] %vm16_vm0, %v698_v44  ;;  %v676_v6 = vpop.xlane.xlu0 %675 }
 0x18e   :  { %v697_v42 = vadd.f32 %v676_v6, %v633_v59  ;;  %v682_v52 = vpop.xlane.xlu1 %681  ;;  %1076 = vrot.lane.b32.xlu0 %v847_v27, %s2302_s0  ;;  %v2988_v6 = vld [vmem:[%s3816_s1 + $0x8] sm:$0xff] }
 0x18f   :  { %v700_v31 = vadd.f32 %v682_v52, %v636_v3  ;;  %3853 = vst [vmem:[#allocation10_spill] sm:$0xff] %v2988_v6  ;;  %v3002_v52 = vld [vmem:[%s3816_s1] sm:$0xff] }
 0x190   :  { %713 = vst.msk [vmem:[#allocation5 + $0x50] sm:$0xff] %vm16_vm0, %v697_v42  ;;  %3854 = vst [vmem:[#allocation11_spill] sm:$0xff] %v3002_v52 }
 0x191   :  { %716 = vst.msk [vmem:[#allocation5 + $0x68] sm:$0xff] %vm16_vm0, %v700_v31  ;;  %v680_v2 = vpop.xlane.xlu0 %679 }
 0x192   :  { %v699_v18 = vadd.f32 %v680_v2, %v635_v41  ;;  %v686_v33 = vpop.xlane.xlu1 %685  ;;  %1080 = vrot.lane.b32.xlu0 %v849_v25, %s2302_s0  ;;  %v3017_v2 = vld [vmem:[%s3816_s1 + $0x10] sm:$0xff] }
 0x193   :  { %v702_v47 = vadd.f32 %v686_v33, %v638_v7  ;;  %3855 = vst [vmem:[#allocation12_spill] sm:$0xff] %v3017_v2 }
 0x194   :  { %715 = vst.msk [vmem:[#allocation5 + $0x60] sm:$0xff] %vm16_vm0, %v699_v18  ;;  %v3026_v18 = vld [vmem:[%s3816_s1 + $0x18] sm:$0xff] }
 0x195   :  { %718 = vst.msk [vmem:[#allocation5 + $0x78] sm:$0xff] %vm16_vm0, %v702_v47  ;;  %v684_v20 = vpop.xlane.xlu0 %683  ;;  %3856 = vst [vmem:[#allocation13_spill] sm:$0xff] %v3026_v18 }
 0x196   :  { %v701_v26 = vadd.f32 %v684_v20, %v637_v60  ;;  %v754_v56 = vpop.xlane.xlu1 %753 }
 0x197   :  { %v784_v53 = vadd.f32 %v754_v56, %v720_v13  ;;  %v2249_v13 = vld [vmem:[%s3816_s1 + $0x20] sm:$0xff] }
 0x198   :  { %717 = vst.msk [vmem:[#allocation5 + $0x70] sm:$0xff] %vm16_vm0, %v701_v26  ;;  %v3049_v26 = vld [vmem:[%s3816_s1 + $0x28] sm:$0xff] }
 0x199   :  { %800 = vst.msk [vmem:[#allocation6 + $0x8] sm:$0xff] %vm16_vm0, %v784_v53  ;;  %v752_v37 = vpop.xlane.xlu0 %751  ;;  %3857 = vst [vmem:[#allocation14_spill] sm:$0xff] %v3049_v26 }
 0x19a   :  { %v783_v46 = vadd.f32 %v752_v37, %v719_v51  ;;  %v758_v49 = vpop.xlane.xlu1 %757 }
 0x19b   :  { %v786_v55 = vadd.f32 %v758_v49, %v722_v43  ;;  %v2251_v43 = vld [vmem:[%s3816_s1 + $0x30] sm:$0xff] }
 0x19c   :  { %799 = vst.msk [vmem:[#allocation6] sm:$0xff] %vm16_vm0, %v783_v46  ;;  %v3072_v46 = vld [vmem:[%s3816_s1 + $0x38] sm:$0xff] }
 0x19d   :  { %802 = vst.msk [vmem:[#allocation6 + $0x18] sm:$0xff] %vm16_vm0, %v786_v55  ;;  %v756_v1 = vpop.xlane.xlu0 %755  ;;  %3858 = vst [vmem:[#allocation15_spill] sm:$0xff] %v3072_v46 }
 0x19e   :  { %v785_v4 = vadd.f32 %v756_v1, %v721_v14  ;;  %v762_v10 = vpop.xlane.xlu1 %761 }
 0x19f   :  { %v788_v16 = vadd.f32 %v762_v10, %v724_v62  ;;  %v2253_v62 = vld [vmem:[%s3816_s1 + $0x40] sm:$0xff] }
 0x1a0   :  { %801 = vst.msk [vmem:[#allocation6 + $0x10] sm:$0xff] %vm16_vm0, %v785_v4  ;;  %v2254_v4 = vld [vmem:[%s3816_s1 + $0x48] sm:$0xff] }
 0x1a1   :  { %804 = vst.msk [vmem:[#allocation6 + $0x28] sm:$0xff] %vm16_vm0, %v788_v16  ;;  %v760_v28 = vpop.xlane.xlu0 %759 }
 0x1a2   :  { %v787_v35 = vadd.f32 %v760_v28, %v723_v36  ;;  %v766_v38 = vpop.xlane.xlu1 %765 }
 0x1a3   :  { %v790_v45 = vadd.f32 %v766_v38, %v726_v24  ;;  %v2255_v24 = vld [vmem:[%s3816_s1 + $0x50] sm:$0xff] }
 0x1a4   :  { %803 = vst.msk [vmem:[#allocation6 + $0x20] sm:$0xff] %vm16_vm0, %v787_v35  ;;  %v2256_v35 = vld [vmem:[%s3816_s1 + $0x58] sm:$0xff] }
 0x1a5   :  { %806 = vst.msk [vmem:[#allocation6 + $0x38] sm:$0xff] %vm16_vm0, %v790_v45  ;;  %v764_v57 = vpop.xlane.xlu0 %763 }
 0x1a6   :  { %v789_v0 = vadd.f32 %v764_v57, %v725_v50  ;;  %v770_v5 = vpop.xlane.xlu1 %769 }
 0x1a7   :  { %v792_v9 = vadd.f32 %v770_v5, %v728_v54  ;;  %v2257_v54 = vld [vmem:[%s3816_s1 + $0x60] sm:$0xff] }
 0x1a8   :  { %805 = vst.msk [vmem:[#allocation6 + $0x30] sm:$0xff] %vm16_vm0, %v789_v0  ;;  %v2258_v0 = vld [vmem:[%s3816_s1 + $0x68] sm:$0xff] }
 0x1a9   :  { %808 = vst.msk [vmem:[#allocation6 + $0x48] sm:$0xff] %vm16_vm0, %v792_v9  ;;  %v768_v29 = vpop.xlane.xlu0 %767 }
 0x1aa   :  { %v791_v30 = vadd.f32 %v768_v29, %v727_v11  ;;  %v774_v34 = vpop.xlane.xlu1 %773 }
 0x1ab   :  { %v794_v39 = vadd.f32 %v774_v34, %v730_v22  ;;  %v2259_v22 = vld [vmem:[%s3816_s1 + $0x70] sm:$0xff] }
 0x1ac   :  { %807 = vst.msk [vmem:[#allocation6 + $0x40] sm:$0xff] %vm16_vm0, %v791_v30  ;;  %v2260_v30 = vld [vmem:[%s3816_s1 + $0x78] sm:$0xff] }
 0x1ad   :  { %810 = vst.msk [vmem:[#allocation6 + $0x58] sm:$0xff] %vm16_vm0, %v794_v39  ;;  %v772_v48 = vpop.xlane.xlu0 %771 }
 0x1ae   :  { %v793_v58 = vadd.f32 %v772_v48, %v729_v40  ;;  %v778_v61 = vpop.xlane.xlu1 %777 }
 0x1af   :  { %v796_v63 = vadd.f32 %v778_v61, %v732_v23 }
 0x1b0   :  { %809 = vst.msk [vmem:[#allocation6 + $0x50] sm:$0xff] %vm16_vm0, %v793_v58 }
 0x1b1   :  { %812 = vst.msk [vmem:[#allocation6 + $0x68] sm:$0xff] %vm16_vm0, %v796_v63  ;;  %v776_v15 = vpop.xlane.xlu0 %775 }
 0x1b2   :  { %v795_v17 = vadd.f32 %v776_v15, %v731_v8  ;;  %v782_v19 = vpop.xlane.xlu1 %781 }
 0x1b3   :  { %v798_v32 = vadd.f32 %v782_v19, %v734_v12 }
 0x1b4   :  { %811 = vst.msk [vmem:[#allocation6 + $0x60] sm:$0xff] %vm16_vm0, %v795_v17 }
 0x1b5   :  { %814 = vst.msk [vmem:[#allocation6 + $0x78] sm:$0xff] %vm16_vm0, %v798_v32  ;;  %v780_v44 = vpop.xlane.xlu0 %779 }
 0x1b6   :  { %v797_v59 = vadd.f32 %v780_v44, %v733_v21  ;;  %v2983_v3 = vpop.permute.xlu1 %868 }
 0x1b7   :  { %v2992_v27 = vmul.f32 %v2988_v6, %v2983_v3 }
 0x1b8   :  { %813 = vst.msk [vmem:[#allocation6 + $0x70] sm:$0xff] %vm16_vm0, %v797_v59 }
 0x1b9   :  { %948 = vrot.lane.b32.xlu0 %v2992_v27, %s2303_s17  ;;  %v2997_v42 = vpop.permute.xlu0 %866 }
 0x1ba   :  { %v3006_v31 = vmul.f32 %v3002_v52, %v2997_v42  ;;  %v3008_v41 = vpop.permute.xlu1 %870 }
 0x1bb   :  { %v3021_v25 = vmul.f32 %v3017_v2, %v3008_v41 }
 0x1bc   :  { %946 = vrot.lane.b32.xlu1 %v3006_v31, %s2303_s17 }
 0x1bd   :  { %v3012_v7 = vpop.permute.xlu0 %872 }
 0x1be   :  { %v3030_v33 = vmul.f32 %v3026_v18, %v3012_v7  ;;  %v3032_v47 = vpop.permute.xlu1 %874 }
 0x1bf   :  { %v3044_v20 = vmul.f32 %v2249_v13, %v3032_v47 }
 0x1c0   :  { %950 = vrot.lane.b32.xlu1 %v3021_v25, %s2303_s17  ;;  %952 = vrot.lane.b32.xlu0 %v3030_v33, %s2303_s17 }
 0x1c1   :  { %v3038_v60 = vpop.permute.xlu0 %876 }
 0x1c2   :  { %v3053_v56 = vmul.f32 %v3049_v26, %v3038_v60  ;;  %v3055_v53 = vpop.permute.xlu1 %878 }
 0x1c3   :  { %v3067_v37 = vmul.f32 %v2251_v43, %v3055_v53 }
 0x1c4   :  { %954 = vrot.lane.b32.xlu1 %v3044_v20, %s2303_s17  ;;  %956 = vrot.lane.b32.xlu0 %v3053_v56, %s2303_s17 }
 0x1c5   :  { %v3061_v51 = vpop.permute.xlu0 %880 }
 0x1c6   :  { %v3076_v49 = vmul.f32 %v3072_v46, %v3061_v51  ;;  %v3078_v55 = vpop.permute.xlu1 %882 }
 0x1c7   :  { %v3090_v1 = vmul.f32 %v2253_v62, %v3078_v55 }
 0x1c8   :  { %958 = vrot.lane.b32.xlu1 %v3067_v37, %s2303_s17  ;;  %960 = vrot.lane.b32.xlu0 %v3076_v49, %s2303_s17 }
 0x1c9   :  { %v3084_v14 = vpop.permute.xlu0 %884 }
 0x1ca   :  { %v3096_v10 = vmul.f32 %v2254_v4, %v3084_v14  ;;  %v3098_v16 = vpop.permute.xlu1 %886 }
 0x1cb   :  { %v3110_v28 = vmul.f32 %v2255_v24, %v3098_v16 }
 0x1cc   :  { %962 = vrot.lane.b32.xlu1 %v3090_v1, %s2303_s17  ;;  %964 = vrot.lane.b32.xlu0 %v3096_v10, %s2303_s17 }
 0x1cd   :  { %v3104_v36 = vpop.permute.xlu0 %888 }
 0x1ce   :  { %v3116_v38 = vmul.f32 %v2256_v35, %v3104_v36  ;;  %v3118_v45 = vpop.permute.xlu1 %890 }
 0x1cf   :  { %v3130_v57 = vmul.f32 %v2257_v54, %v3118_v45 }
 0x1d0   :  { %966 = vrot.lane.b32.xlu1 %v3110_v28, %s2303_s17  ;;  %968 = vrot.lane.b32.xlu0 %v3116_v38, %s2303_s17 }
 0x1d1   :  { %v3124_v50 = vpop.permute.xlu0 %892 }
 0x1d2   :  { %v3136_v5 = vmul.f32 %v2258_v0, %v3124_v50  ;;  %v3138_v9 = vpop.permute.xlu1 %894 }
 0x1d3   :  { %v3150_v29 = vmul.f32 %v2259_v22, %v3138_v9 }
 0x1d4   :  { %970 = vrot.lane.b32.xlu1 %v3130_v57, %s2303_s17  ;;  %972 = vrot.lane.b32.xlu0 %v3136_v5, %s2303_s17 }
 0x1d5   :  { %v3144_v11 = vpop.permute.xlu0 %896 }
 0x1d6   :  { %v3156_v34 = vmul.f32 %v2260_v30, %v3144_v11 }
 0x1d8   :  { %974 = vrot.lane.b32.xlu1 %v3150_v29, %s2303_s17  ;;  %976 = vrot.lane.b32.xlu0 %v3156_v34, %s2303_s17 }
 0x1d9   :  { %v3162_v39 = vpop.permute.xlu0 %1050 }
 0x1da   :  { %v3166_v40 = vmul.f32 %v3002_v52, %v3162_v39 }
 0x1dc   :  { %1130 = vrot.lane.b32.xlu1 %v3166_v40, %s2303_s17 }
 0x1dd   :  { %v3170_v23 = vpop.permute.xlu0 %1052 }
 0x1de   :  { %v3174_v48 = vmul.f32 %v2988_v6, %v3170_v23 }
 0x1e0   :  { %1132 = vrot.lane.b32.xlu0 %v3174_v48, %s2303_s17 }
 0x1e1   :  { %v3178_v58 = vpop.permute.xlu0 %1054 }
 0x1e2   :  { %v3182_v61 = vmul.f32 %v3017_v2, %v3178_v58 }
 0x1e4   :  { %1134 = vrot.lane.b32.xlu1 %v3182_v61, %s2303_s17 }
 0x1e5   :  { %v3186_v63 = vpop.permute.xlu0 %1056 }
 0x1e6   :  { %v3190_v8 = vmul.f32 %v3026_v18, %v3186_v63 }
 0x1e8   :  { %1136 = vrot.lane.b32.xlu0 %v3190_v8, %s2303_s17 }
 0x1e9   :  { %v3194_v12 = vpop.permute.xlu0 %1058 }
 0x1ea   :  { %v3197_v15 = vmul.f32 %v2249_v13, %v3194_v12  ;;  %v3222_v13 = vpop.permute.xlu1 %1068 }
 0x1eb   :  { %3860 = vst [vmem:[#allocation17_spill] sm:$0xff] %v3222_v13  ;;  %v3229_v18 = vmul.f32 %v2254_v4, %v3222_v13 }
 0x1ec   :  { %1138 = vrot.lane.b32.xlu1 %v3197_v15, %s2303_s17 }
 0x1ed   :  { %v3201_v17 = vpop.permute.xlu0 %1060  ;;  %3861 = vst [vmem:[#allocation18_spill] sm:$0xff] %v3229_v18 }
 0x1ee   :  { %v3205_v19 = vmul.f32 %v3049_v26, %v3201_v17 }
 0x1f0   :  { %1140 = vrot.lane.b32.xlu0 %v3205_v19, %s2303_s17 }
 0x1f1   :  { %v3209_v32 = vpop.permute.xlu0 %1062 }
 0x1f2   :  { %v3212_v21 = vmul.f32 %v2251_v43, %v3209_v32 }
 0x1f4   :  { %1142 = vrot.lane.b32.xlu1 %v3212_v21, %s2303_s17 }
 0x1f5   :  { %v3216_v44 = vpop.permute.xlu0 %1064 }
 0x1f6   :  { %v3220_v59 = vmul.f32 %v3072_v46, %v3216_v44 }
 0x1f8   :  { %3859 = vst [vmem:[#allocation16_spill] sm:$0xff] %v3220_v59  ;;  %1144 = vrot.lane.b32.xlu0 %v3220_v59, %s2303_s17 }
 0x1f9   :  { %v3226_v26 = vpop.permute.xlu0 %1066 }
 0x1fa   :  { %v3232_v43 = vmul.f32 %v2253_v62, %v3226_v26 }
 0x1fc   :  { %3862 = vst [vmem:[#allocation19_spill] sm:$0xff] %v3232_v43  ;;  %1148 = vrot.lane.b32.xlu0 %v3229_v18, %s2303_s17  ;;  %1146 = vrot.lane.b32.xlu1 %v3232_v43, %s2303_s17  ;;  %v3257_v18 = vpop.permute.xlu1 %1078 }
 0x1fd   :  { %v3238_v46 = vpop.permute.xlu0 %1070  ;;  %3866 = vst [vmem:[#allocation23_spill] sm:$0xff] %v3257_v18 }
 0x1fe   :  { %v3241_v6 = vmul.f32 %v2255_v24, %v3238_v46 }
 0x200   :  { %3863 = vst [vmem:[#allocation20_spill] sm:$0xff] %v3241_v6  ;;  %1150 = vrot.lane.b32.xlu1 %v3241_v6, %s2303_s17  ;;  %v3264_v6 = vmul.f32 %v2259_v22, %v3257_v18  ;;  %v1232_v22 = vmul.f32 %v3257_v18, %v3150_v29 }
 0x201   :  { %v3245_v2 = vpop.permute.xlu0 %1072 }
 0x202   :  { %v3248_v4 = vmul.f32 %v2256_v35, %v3245_v2  ;;  %3867 = vst [vmem:[#allocation24_spill] sm:$0xff] %v3264_v6 }
 0x204   :  { %3864 = vst [vmem:[#allocation21_spill] sm:$0xff] %v3248_v4  ;;  %1152 = vrot.lane.b32.xlu0 %v3248_v4, %s2303_s17  ;;  %v1227_v4 = vmul.f32 %v3222_v13, %v3096_v10 }
 0x205   :  { %v3252_v62 = vpop.permute.xlu0 %1074 }
 0x206   :  { %v3255_v52 = vmul.f32 %v2257_v54, %v3252_v62 }
 0x208   :  { %3865 = vst [vmem:[#allocation22_spill] sm:$0xff] %v3255_v52  ;;  %1154 = vrot.lane.b32.xlu1 %v3255_v52, %s2303_s17 }
 0x209   :  { %v3261_v24 = vpop.permute.xlu0 %1076 }
 0x20a   :  { %v3267_v35 = vmul.f32 %v2258_v0, %v3261_v24  ;;  %v1218_v0 = vmul.f32 %v3162_v39, %v3006_v31 }
 0x20c   :  { %3868 = vst [vmem:[#allocation25_spill] sm:$0xff] %v3267_v35  ;;  %1158 = vrot.lane.b32.xlu1 %v3264_v6, %s2303_s17  ;;  %1156 = vrot.lane.b32.xlu0 %v3267_v35, %s2303_s17  ;;  %v1347_v6 = vmul.f32 %v3096_v10, %v3084_v14  ;;  %v1221_v14 = vmul.f32 %v3186_v63, %v3030_v33 }
 0x20d   :  { %v3273_v54 = vpop.permute.xlu0 %1080  ;;  %v1223_v10 = vmul.f32 %v3201_v17, %v3053_v56 }
 0x20e   :  { %v3278_v52 = vmul.f32 %v2260_v30, %v3273_v54  ;;  %v1219_v30 = vmul.f32 %v3170_v23, %v2992_v27 }
 0x210   :  { %3869 = vst [vmem:[#allocation26_spill] sm:$0xff] %v3278_v52  ;;  %1268 = vrot.lane.b32.xlu1 %v1227_v4, %s2303_s17  ;;  %1160 = vrot.lane.b32.xlu0 %v3278_v52, %s2303_s17  ;;  %v1352_v4 = vmul.f32 %v3150_v29, %v3138_v9  ;;  %v1220_v52 = vmul.f32 %v3178_v58, %v3021_v25 }
 0x211   :  { %v1224_v9 = vmul.f32 %v3209_v32, %v3067_v37 }
 0x214   :  { %1278 = vrot.lane.b32.xlu1 %v1232_v22, %s2303_s17  ;;  %1250 = vrot.lane.b32.xlu0 %v1218_v0, %s2303_s17 }
 0x218   :  { %1388 = vrot.lane.b32.xlu1 %v1347_v6, %s2303_s17  ;;  %1252 = vrot.lane.b32.xlu0 %v1219_v30, %s2303_s17  ;;  %v1222_v6 = vmul.f32 %v3194_v12, %v3044_v20 }
 0x21c   :  { %1398 = vrot.lane.b32.xlu1 %v1352_v4, %s2303_s17  ;;  %1254 = vrot.lane.b32.xlu0 %v1220_v52, %s2303_s17  ;;  %v1225_v52 = vmul.f32 %v3216_v44, %v3076_v49  ;;  %v1226_v4 = vmul.f32 %v3226_v26, %v3090_v1 }
 0x220   :  { %1256 = vrot.lane.b32.xlu0 %v1221_v14, %s2303_s17 }
 0x224   :  { %1258 = vrot.lane.b32.xlu0 %v1222_v6, %s2303_s17 }
 0x228   :  { %1260 = vrot.lane.b32.xlu0 %v1223_v10, %s2303_s17 }
 0x22b   :  { %v949_v29 = vpop.permute.xlu0 %948 }
 0x22c   :  { %1262 = vrot.lane.b32.xlu0 %v1224_v9, %s2303_s17  ;;  %v995_v30 = vsel %vm16_vm0, %v949_v29, 0.0 }
 0x22e   :  { %v947_v0 = vpop.permute.xlu1 %946 }
 0x22f   :  { %v994_v22 = vsel %vm16_vm0, %v947_v0, 0.0  ;;  %v1228_v0 = vmul.f32 %v3238_v46, %v3110_v28 }
 0x230   :  { %1264 = vrot.lane.b32.xlu0 %v1225_v52, %s2303_s17  ;;  %v996_v14 = vadd.f32 %v995_v30, %v994_v22 }
 0x232   :  { %v951_v6 = vpop.permute.xlu1 %950  ;;  %v953_v10 = vpop.permute.xlu0 %952 }
 0x233   :  { %v997_v18 = vsel %vm16_vm0, %v951_v6, 0.0  ;;  %v999_v13 = vsel %vm16_vm0, %v953_v10, 0.0 }
 0x234   :  { %v998_v9 = vadd.f32 %v997_v18, %v996_v14  ;;  %1266 = vrot.lane.b32.xlu0 %v1226_v4, %s2303_s17  ;;  %v1229_v18 = vmul.f32 %v3245_v2, %v3116_v38 }
 0x236   :  { %v1000_v35 = vadd.f32 %v999_v13, %v998_v9  ;;  %v955_v52 = vpop.permute.xlu1 %954  ;;  %v957_v43 = vpop.permute.xlu0 %956 }
 0x237   :  { %v1001_v29 = vsel %vm16_vm0, %v955_v52, 0.0  ;;  %v1003_v22 = vsel %vm16_vm0, %v957_v43, 0.0 }
 0x238   :  { %v1002_v59 = vadd.f32 %v1001_v29, %v1000_v35  ;;  %1270 = vrot.lane.b32.xlu0 %v1228_v0, %s2303_s17  ;;  %v1230_v35 = vmul.f32 %v3252_v62, %v3130_v57 }
 0x23a   :  { %v1004_v30 = vadd.f32 %v1003_v22, %v1002_v59  ;;  %v959_v4 = vpop.permute.xlu1 %958  ;;  %v961_v14 = vpop.permute.xlu0 %960  ;;  %v1231_v22 = vmul.f32 %v3261_v24, %v3136_v5 }
 0x23b   :  { %v1005_v6 = vsel %vm16_vm0, %v959_v4, 0.0  ;;  %v1007_v13 = vsel %vm16_vm0, %v961_v14, 0.0 }
 0x23c   :  { %v1006_v10 = vadd.f32 %v1005_v6, %v1004_v30  ;;  %1272 = vrot.lane.b32.xlu0 %v1229_v18, %s2303_s17 }
 0x23e   :  { %v1008_v9 = vadd.f32 %v1007_v13, %v1006_v10  ;;  %v963_v0 = vpop.permute.xlu1 %962  ;;  %v965_v52 = vpop.permute.xlu0 %964  ;;  %v1233_v13 = vmul.f32 %v3273_v54, %v3156_v34 }
 0x23f   :  { %v1009_v43 = vsel %vm16_vm0, %v963_v0, 0.0  ;;  %v1011_v59 = vsel %vm16_vm0, %v965_v52, 0.0 }
 0x240   :  { %v1010_v29 = vadd.f32 %v1009_v43, %v1008_v9  ;;  %1274 = vrot.lane.b32.xlu0 %v1230_v35, %s2303_s17 }
 0x242   :  { %v1012_v30 = vadd.f32 %v1011_v59, %v1010_v29  ;;  %v967_v18 = vpop.permute.xlu1 %966  ;;  %v969_v4 = vpop.permute.xlu0 %968  ;;  %v1338_v59 = vmul.f32 %v3006_v31, %v2997_v42  ;;  %v1340_v42 = vmul.f32 %v3021_v25, %v3008_v41  ;;  %v1341_v31 = vmul.f32 %v3030_v33, %v3012_v7 }
 0x243   :  { %v1013_v14 = vsel %vm16_vm0, %v967_v18, 0.0  ;;  %v1015_v10 = vsel %vm16_vm0, %v969_v4, 0.0  ;;  %v1344_v7 = vmul.f32 %v3067_v37, %v3055_v53 }
 0x244   :  { %v1014_v6 = vadd.f32 %v1013_v14, %v1012_v30  ;;  %1276 = vrot.lane.b32.xlu0 %v1231_v22, %s2303_s17 }
 0x246   :  { %v1016_v9 = vadd.f32 %v1015_v10, %v1014_v6  ;;  %v971_v35 = vpop.permute.xlu1 %970  ;;  %v973_v0 = vpop.permute.xlu0 %972  ;;  %v1339_v10 = vmul.f32 %v2992_v27, %v2983_v3  ;;  %v1343_v3 = vmul.f32 %v3053_v56, %v3038_v60  ;;  %v1345_v56 = vmul.f32 %v3076_v49, %v3061_v51 }
 0x247   :  { %v1017_v52 = vsel %vm16_vm0, %v971_v35, 0.0  ;;  %v1019_v29 = vsel %vm16_vm0, %v973_v0, 0.0  ;;  %v1348_v49 = vmul.f32 %v3110_v28, %v3098_v16  ;;  %v1350_v16 = vmul.f32 %v3130_v57, %v3118_v45 }
 0x248   :  { %v1018_v43 = vadd.f32 %v1017_v52, %v1016_v9  ;;  %1280 = vrot.lane.b32.xlu0 %v1233_v13, %s2303_s17  ;;  %v1342_v13 = vmul.f32 %v3044_v20, %v3032_v47  ;;  %v1353_v45 = vmul.f32 %v3156_v34, %v3144_v11  ;;  %v1459_v11 = vmul.f32 %v3174_v48, %v3170_v23 }
 0x249   :  { %v1463_v48 = vmul.f32 %v3205_v19, %v3201_v17  ;;  %v3870_v17 = vld [vmem:[#allocation16_spill] sm:$0xff] }
 0x24a   :  { %v1020_v30 = vadd.f32 %v1019_v29, %v1018_v43  ;;  %v975_v22 = vpop.permute.xlu1 %974  ;;  %v977_v18 = vpop.permute.xlu0 %976  ;;  %v1465_v19 = vmul.f32 %v3870_v17, %v3216_v44 }
 0x24b   :  { %v1021_v4 = vsel %vm16_vm0, %v975_v22, 0.0  ;;  %v1023_v6 = vsel %vm16_vm0, %v977_v18, 0.0  ;;  %v1346_v22 = vmul.f32 %v3090_v1, %v3078_v55  ;;  %v1349_v55 = vmul.f32 %v3116_v38, %v3104_v36 }
 0x24c   :  { %v1022_v14 = vadd.f32 %v1021_v4, %v1020_v30  ;;  %1370 = vrot.lane.b32.xlu0 %v1338_v59, %s2303_s17  ;;  %v1351_v36 = vmul.f32 %v3136_v5, %v3124_v50  ;;  %v1458_v5 = vmul.f32 %v3166_v40, %v3162_v39  ;;  %v1461_v39 = vmul.f32 %v3190_v8, %v3186_v63 }
 0x24e   :  { %v1024_v9 = vadd.f32 %v1023_v6, %v1022_v14  ;;  %v1131_v35 = vpop.permute.xlu1 %1130 }
 0x24f   :  { %v1178_v33 = vsel %vm16_vm0, %v1131_v35, 0.0 }
 0x250   :  { %1372 = vrot.lane.b32.xlu0 %v1339_v10, %s2303_s17  ;;  %1025 = vadd.xlane.f32.xlu1 %v1024_v9 }
 0x252   :  { %v1133_v27 = vpop.permute.xlu0 %1132 }
 0x253   :  { %v1179_v41 = vsel %vm16_vm0, %v1133_v27, 0.0 }
 0x254   :  { %1374 = vrot.lane.b32.xlu0 %v1340_v42, %s2303_s17  ;;  %v1180_v20 = vadd.f32 %v1179_v41, %v1178_v33 }
 0x256   :  { %v1135_v0 = vpop.permute.xlu1 %1134 }
 0x257   :  { %v1181_v47 = vsel %vm16_vm0, %v1135_v0, 0.0 }
 0x258   :  { %1376 = vrot.lane.b32.xlu0 %v1341_v31, %s2303_s17  ;;  %v1182_v43 = vadd.f32 %v1181_v47, %v1180_v20 }
 0x25a   :  { %v1137_v25 = vpop.permute.xlu0 %1136 }
 0x25b   :  { %v1183_v60 = vsel %vm16_vm0, %v1137_v25, 0.0 }
 0x25c   :  { %1378 = vrot.lane.b32.xlu0 %v1342_v13, %s2303_s17  ;;  %v1184_v30 = vadd.f32 %v1183_v60, %v1182_v43 }
 0x25e   :  { %v1139_v52 = vpop.permute.xlu1 %1138 }
 0x25f   :  { %v1185_v59 = vsel %vm16_vm0, %v1139_v52, 0.0 }
 0x260   :  { %1380 = vrot.lane.b32.xlu0 %v1343_v3, %s2303_s17  ;;  %v1186_v18 = vadd.f32 %v1185_v59, %v1184_v30  ;;  %v1460_v30 = vmul.f32 %v3182_v61, %v3178_v58  ;;  %v1464_v61 = vmul.f32 %v3212_v21, %v3209_v32  ;;  %v3871_v21 = vld [vmem:[#allocation19_spill] sm:$0xff] }
 0x262   :  { %v1141_v29 = vpop.permute.xlu0 %1140 }
 0x263   :  { %v1187_v37 = vsel %vm16_vm0, %v1141_v29, 0.0 }
 0x264   :  { %1382 = vrot.lane.b32.xlu0 %v1344_v7, %s2303_s17  ;;  %v1188_v6 = vadd.f32 %v1187_v37, %v1186_v18  ;;  %v1462_v37 = vmul.f32 %v3197_v15, %v3194_v12 }
 0x266   :  { %v1143_v53 = vpop.permute.xlu1 %1142 }
 0x267   :  { %v1189_v14 = vsel %vm16_vm0, %v1143_v53, 0.0 }
 0x268   :  { %1384 = vrot.lane.b32.xlu0 %v1345_v56, %s2303_s17  ;;  %v1190_v10 = vadd.f32 %v1189_v14, %v1188_v6 }
 0x26a   :  { %v1145_v4 = vpop.permute.xlu0 %1144 }
 0x26b   :  { %v1191_v51 = vsel %vm16_vm0, %v1145_v4, 0.0 }
 0x26c   :  { %1386 = vrot.lane.b32.xlu0 %v1346_v22, %s2303_s17  ;;  %v1192_v31 = vadd.f32 %v1191_v51, %v1190_v10 }
 0x26e   :  { %v1147_v9 = vpop.permute.xlu1 %1146  ;;  %v1149_v13 = vpop.permute.xlu0 %1148 }
 0x26f   :  { %v1193_v42 = vsel %vm16_vm0, %v1147_v9, 0.0  ;;  %v1195_v3 = vsel %vm16_vm0, %v1149_v13, 0.0 }
 0x270   :  { %1390 = vrot.lane.b32.xlu0 %v1348_v49, %s2303_s17  ;;  %v1194_v1 = vadd.f32 %v1193_v42, %v1192_v31  ;;  %v1466_v49 = vmul.f32 %v3871_v21, %v3226_v26  ;;  %v3873_v26 = vld [vmem:[#allocation21_spill] sm:$0xff] }
 0x272   :  { %v1151_v35 = vpop.permute.xlu1 %1150  ;;  %v1196_v28 = vadd.f32 %v1195_v3, %v1194_v1 }
 0x273   :  { %v1197_v0 = vsel %vm16_vm0, %v1151_v35, 0.0 }
 0x274   :  { %1392 = vrot.lane.b32.xlu0 %v1349_v55, %s2303_s17  ;;  %v1198_v38 = vadd.f32 %v1197_v0, %v1196_v28  ;;  %v3872_v55 = vld [vmem:[#allocation20_spill] sm:$0xff]  ;;  %v1469_v28 = vmul.f32 %v3873_v26, %v3245_v2  ;;  %v3875_v2 = vld [vmem:[#allocation25_spill] sm:$0xff] }
 0x275   :  { %v1468_v1 = vmul.f32 %v3872_v55, %v3238_v46 }
 0x276   :  { %v1153_v27 = vpop.permute.xlu0 %1152 }
 0x277   :  { %v1199_v41 = vsel %vm16_vm0, %v1153_v27, 0.0 }
 0x278   :  { %1394 = vrot.lane.b32.xlu0 %v1350_v16, %s2303_s17  ;;  %v1200_v33 = vadd.f32 %v1199_v41, %v1198_v38  ;;  %v3874_v38 = vld [vmem:[#allocation22_spill] sm:$0xff] }
 0x279   :  { %v1470_v46 = vmul.f32 %v3874_v38, %v3252_v62 }
 0x27a   :  { %v1155_v7 = vpop.permute.xlu1 %1154 }
 0x27b   :  { %v1201_v25 = vsel %vm16_vm0, %v1155_v7, 0.0 }
 0x27c   :  { %1396 = vrot.lane.b32.xlu0 %v1351_v36, %s2303_s17  ;;  %v1202_v57 = vadd.f32 %v1201_v25, %v1200_v33 }
 0x27e   :  { %v1159_v47 = vpop.permute.xlu1 %1158  ;;  %v1157_v20 = vpop.permute.xlu0 %1156 }
 0x27f   :  { %v1203_v52 = vsel %vm16_vm0, %v1157_v20, 0.0  ;;  %v1205_v50 = vsel %vm16_vm0, %v1159_v47, 0.0 }
 0x280   :  { %v1204_v60 = vadd.f32 %v1203_v52, %v1202_v57  ;;  %1400 = vrot.lane.b32.xlu0 %v1353_v45, %s2303_s17  ;;  %v1471_v57 = vmul.f32 %v3875_v2, %v3261_v24 }
 0x282   :  { %v1206_v56 = vadd.f32 %v1205_v50, %v1204_v60  ;;  %v1161_v43 = vpop.permute.xlu0 %1160  ;;  %v1269_v27 = vpop.permute.xlu1 %1268 }
 0x283   :  { %v1207_v29 = vsel %vm16_vm0, %v1161_v43, 0.0  ;;  %v1315_v36 = vsel %vm16_vm0, %v1269_v27, 0.0  ;;  %v1578_v43 = vld [vmem:[#allocation5] sm:$0xff] }
 0x284   :  { %v1208_v59 = vadd.f32 %v1207_v29, %v1206_v56  ;;  %1490 = vrot.lane.b32.xlu0 %v1458_v5, %s2303_s17 }
 0x286   :  { %1209 = vadd.xlane.f32.xlu1 %v1208_v59  ;;  %v1251_v34 = vpop.permute.xlu0 %1250  ;;  %v1279_v50 = vpop.permute.xlu1 %1278 }
 0x287   :  { %v1298_v8 = vsel %vm16_vm0, %v1251_v34, 0.0  ;;  %v1325_v59 = vsel %vm16_vm0, %v1279_v50, 0.0 }
 0x288   :  { %1492 = vrot.lane.b32.xlu0 %v1459_v11, %s2303_s17 }
 0x28a   :  { %v1253_v53 = vpop.permute.xlu0 %1252 }
 0x28b   :  { %v1299_v58 = vsel %vm16_vm0, %v1253_v53, 0.0 }
 0x28c   :  { %1494 = vrot.lane.b32.xlu0 %v1460_v30, %s2303_s17  ;;  %v1300_v12 = vadd.f32 %v1299_v58, %v1298_v8  ;;  %v1778_v30 = vld [vmem:[#allocation4] sm:$0xff]  ;;  %v1981_v8 = vld [vmem:[#allocation6 + $0x18] sm:$0xff] }
 0x28e   :  { %v1255_v40 = vpop.permute.xlu0 %1254 }
 0x28f   :  { %v1301_v18 = vsel %vm16_vm0, %v1255_v40, 0.0  ;;  %v1580_v40 = vld [vmem:[#allocation5 + $0x10] sm:$0xff] }
 0x290   :  { %1496 = vrot.lane.b32.xlu0 %v1461_v39, %s2303_s17  ;;  %v1302_v4 = vadd.f32 %v1301_v18, %v1300_v12 }
 0x292   :  { %v1257_v23 = vpop.permute.xlu0 %1256 }
 0x293   :  { %v1303_v15 = vsel %vm16_vm0, %v1257_v23, 0.0  ;;  %v1979_v23 = vld [vmem:[#allocation6 + $0x8] sm:$0xff] }
 0x294   :  { %1498 = vrot.lane.b32.xlu0 %v1462_v37, %s2303_s17  ;;  %v1304_v51 = vadd.f32 %v1303_v15, %v1302_v4  ;;  %v1389_v15 = vpop.permute.xlu1 %1388  ;;  %v1583_v4 = vld [vmem:[#allocation5 + $0x28] sm:$0xff] }
 0x296   :  { %v1259_v22 = vpop.permute.xlu0 %1258 }
 0x297   :  { %v1305_v6 = vsel %vm16_vm0, %v1259_v22, 0.0  ;;  %v1581_v22 = vld [vmem:[#allocation5 + $0x18] sm:$0xff] }
 0x298   :  { %1500 = vrot.lane.b32.xlu0 %v1463_v48, %s2303_s17  ;;  %v1306_v10 = vadd.f32 %v1305_v6, %v1304_v51 }
 0x29a   :  { %v1261_v63 = vpop.permute.xlu0 %1260 }
 0x29b   :  { %v1307_v32 = vsel %vm16_vm0, %v1261_v63, 0.0 }
 0x29c   :  { %1502 = vrot.lane.b32.xlu0 %v1464_v61, %s2303_s17  ;;  %v1308_v31 = vadd.f32 %v1307_v32, %v1306_v10  ;;  %v1781_v61 = vld [vmem:[#allocation4 + $0x18] sm:$0xff] }
 0x29e   :  { %v1263_v14 = vpop.permute.xlu0 %1262 }
 0x29f   :  { %v1309_v42 = vsel %vm16_vm0, %v1263_v14, 0.0 }
 0x2a0   :  { %1504 = vrot.lane.b32.xlu0 %v1465_v19, %s2303_s17  ;;  %v1310_v13 = vadd.f32 %v1309_v42, %v1308_v31 }
 0x2a2   :  { %v1265_v9 = vpop.permute.xlu0 %1264 }
 0x2a3   :  { %v1311_v44 = vsel %vm16_vm0, %v1265_v9, 0.0  ;;  %v1399_v9 = vpop.permute.xlu1 %1398 }
 0x2a4   :  { %1506 = vrot.lane.b32.xlu0 %v1466_v49, %s2303_s17  ;;  %v1312_v16 = vadd.f32 %v1311_v44, %v1310_v13  ;;  %v1783_v49 = vld [vmem:[#allocation4 + $0x28] sm:$0xff] }
 0x2a6   :  { %v1267_v35 = vpop.permute.xlu0 %1266 }
 0x2a7   :  { %v1313_v3 = vsel %vm16_vm0, %v1267_v35, 0.0 }
 0x2a8   :  { %1510 = vrot.lane.b32.xlu0 %v1468_v1, %s2303_s17  ;;  %v1314_v0 = vadd.f32 %v1313_v3, %v1312_v16  ;;  %v1983_v1 = vld [vmem:[#allocation6 + $0x28] sm:$0xff] }
 0x2aa   :  { %v1271_v41 = vpop.permute.xlu0 %1270  ;;  %v1316_v7 = vadd.f32 %v1315_v36, %v1314_v0  ;;  %v1585_v0 = vld [vmem:[#allocation5 + $0x38] sm:$0xff] }
 0x2ab   :  { %v1317_v33 = vsel %vm16_vm0, %v1271_v41, 0.0 }
 0x2ac   :  { %1512 = vrot.lane.b32.xlu0 %v1469_v28, %s2303_s17  ;;  %v1318_v47 = vadd.f32 %v1317_v33, %v1316_v7 }
 0x2ae   :  { %v1273_v25 = vpop.permute.xlu0 %1272 }
 0x2af   :  { %v1319_v45 = vsel %vm16_vm0, %v1273_v25, 0.0  ;;  %v1785_v25 = vld [vmem:[#allocation4 + $0x38] sm:$0xff] }
 0x2b0   :  { %1514 = vrot.lane.b32.xlu0 %v1470_v46, %s2303_s17  ;;  %v1320_v60 = vadd.f32 %v1319_v45, %v1318_v47  ;;  %v1435_v45 = vsel %vm16_vm0, %v1389_v15, 0.0  ;;  %v1591_v15 = vld [vmem:[#allocation5 + $0x68] sm:$0xff] }
 0x2b2   :  { %v1275_v20 = vpop.permute.xlu0 %1274 }
 0x2b3   :  { %v1321_v52 = vsel %vm16_vm0, %v1275_v20, 0.0 }
 0x2b4   :  { %1516 = vrot.lane.b32.xlu0 %v1471_v57, %s2303_s17  ;;  %v1322_v62 = vadd.f32 %v1321_v52, %v1320_v60  ;;  %v1985_v52 = vld [vmem:[#allocation6 + $0x38] sm:$0xff] }
 0x2b6   :  { %v1277_v5 = vpop.permute.xlu0 %1276 }
 0x2b7   :  { %v1323_v56 = vsel %vm16_vm0, %v1277_v5, 0.0 }
 0x2b8   :  { %v1324_v29 = vadd.f32 %v1323_v56, %v1322_v62  ;;  %1610 = vrot.lane.b32.xlu0 %v1578_v43, %s2302_s0  ;;  %v1587_v43 = vld [vmem:[#allocation5 + $0x48] sm:$0xff] }
 0x2ba   :  { %v1326_v11 = vadd.f32 %v1325_v59, %v1324_v29  ;;  %v1281_v24 = vpop.permute.xlu0 %1280 }
 0x2bb   :  { %v1327_v34 = vsel %vm16_vm0, %v1281_v24, 0.0 }
 0x2bc   :  { %v1328_v53 = vadd.f32 %v1327_v34, %v1326_v11  ;;  %1810 = vrot.lane.b32.xlu0 %v1778_v30, %s2302_s0  ;;  %v1787_v34 = vld [vmem:[#allocation4 + $0x48] sm:$0xff] }
 0x2be   :  { %1329 = vadd.xlane.f32.xlu1 %v1328_v53  ;;  %v1371_v39 = vpop.permute.xlu0 %1370  ;;  %v1445_v53 = vsel %vm16_vm0, %v1399_v9, 0.0  ;;  %v1593_v9 = vld [vmem:[#allocation5 + $0x78] sm:$0xff] }
 0x2bf   :  { %v1418_v17 = vsel %vm16_vm0, %v1371_v39, 0.0 }
 0x2c0   :  { %1614 = vrot.lane.b32.xlu0 %v1580_v40, %s2302_s0 }
 0x2c2   :  { %v1373_v37 = vpop.permute.xlu0 %1372 }
 0x2c3   :  { %v1419_v18 = vsel %vm16_vm0, %v1373_v37, 0.0 }
 0x2c4   :  { %2012 = vrot.lane.b32.xlu0 %v1979_v23, %s2302_s0  ;;  %v1420_v14 = vadd.f32 %v1419_v18, %v1418_v17  ;;  %v1987_v23 = vld [vmem:[#allocation6 + $0x48] sm:$0xff]  ;;  %v1989_v18 = vld [vmem:[#allocation6 + $0x58] sm:$0xff]  ;;  %v3876_v17 = vld [vmem:[#allocation17_spill] sm:$0xff] }
 0x2c6   :  { %v1375_v48 = vpop.permute.xlu0 %1374 }
 0x2c7   :  { %v1421_v19 = vsel %vm16_vm0, %v1375_v48, 0.0 }
 0x2c8   :  { %1616 = vrot.lane.b32.xlu0 %v1581_v22, %s2302_s0  ;;  %v1422_v51 = vadd.f32 %v1421_v19, %v1420_v14  ;;  %v3877_v19 = vld [vmem:[#allocation18_spill] sm:$0xff] }
 0x2ca   :  { %v1377_v58 = vpop.permute.xlu0 %1376 }
 0x2cb   :  { %v1423_v6 = vsel %vm16_vm0, %v1377_v58, 0.0  ;;  %v1589_v58 = vld [vmem:[#allocation5 + $0x58] sm:$0xff] }
 0x2cc   :  { %1816 = vrot.lane.b32.xlu0 %v1781_v61, %s2302_s0  ;;  %v1424_v10 = vadd.f32 %v1423_v6, %v1422_v51  ;;  %v1791_v6 = vld [vmem:[#allocation4 + $0x68] sm:$0xff] }
 0x2ce   :  { %v1379_v63 = vpop.permute.xlu0 %1378 }
 0x2cf   :  { %v1425_v21 = vsel %vm16_vm0, %v1379_v63, 0.0  ;;  %v1789_v63 = vld [vmem:[#allocation4 + $0x58] sm:$0xff] }
 0x2d0   :  { %2016 = vrot.lane.b32.xlu0 %v1981_v8, %s2302_s0  ;;  %v1426_v31 = vadd.f32 %v1425_v21, %v1424_v10  ;;  %v1991_v21 = vld [vmem:[#allocation6 + $0x68] sm:$0xff] }
 0x2d1   :  { %v1779_v10 = vld [vmem:[#allocation4 + $0x8] sm:$0xff] }
 0x2d2   :  { %v1381_v12 = vpop.permute.xlu0 %1380 }
 0x2d3   :  { %v1427_v42 = vsel %vm16_vm0, %v1381_v12, 0.0 }
 0x2d4   :  { %1620 = vrot.lane.b32.xlu0 %v1583_v4, %s2302_s0  ;;  %v1428_v13 = vadd.f32 %v1427_v42, %v1426_v31  ;;  %v1467_v4 = vmul.f32 %v3877_v19, %v3876_v17  ;;  %v1978_v31 = vld [vmem:[#allocation6] sm:$0xff] }
 0x2d6   :  { %v1383_v32 = vpop.permute.xlu0 %1382 }
 0x2d7   :  { %v1429_v55 = vsel %vm16_vm0, %v1383_v32, 0.0  ;;  %v1579_v32 = vld [vmem:[#allocation5 + $0x8] sm:$0xff] }
 0x2d8   :  { %1820 = vrot.lane.b32.xlu0 %v1783_v49, %s2302_s0  ;;  %v1430_v16 = vadd.f32 %v1429_v55, %v1428_v13  ;;  %v1793_v55 = vld [vmem:[#allocation4 + $0x78] sm:$0xff] }
 0x2da   :  { %v1385_v44 = vpop.permute.xlu0 %1384 }
 0x2db   :  { %v1431_v35 = vsel %vm16_vm0, %v1385_v44, 0.0 }
 0x2dc   :  { %2020 = vrot.lane.b32.xlu0 %v1983_v1, %s2302_s0  ;;  %v1432_v41 = vadd.f32 %v1431_v35, %v1430_v16 }
 0x2dd   :  { %v1026_v3 = vpop.xlane.xlu1 %1025 }
 0x2de   :  { %v1027_v26 = vrot.slane %v1026_v3, 4  ;;  %v1387_v28 = vpop.permute.xlu0 %1386 }
 0x2df   :  { %v1433_v27 = vsel %vm16_vm0, %v1387_v28, 0.0  ;;  %v1980_v28 = vld [vmem:[#allocation6 + $0x10] sm:$0xff] }
 0x2e0   :  { %v1028_v36 = vadd.f32 %v1027_v26, %v1026_v3  ;;  %1624 = vrot.lane.b32.xlu0 %v1585_v0, %s2302_s0  ;;  %v1434_v38 = vadd.f32 %v1433_v27, %v1432_v41  ;;  %v1780_v3 = vld [vmem:[#allocation4 + $0x10] sm:$0xff] }
 0x2e2   :  { %v1391_v46 = vpop.permute.xlu0 %1390  ;;  %v1029_v7 = vrot.slane %v1028_v36, 2  ;;  %v1436_v2 = vadd.f32 %v1435_v45, %v1434_v38 }
 0x2e3   :  { %v1437_v20 = vsel %vm16_vm0, %v1391_v46, 0.0 }
 0x2e4   :  { %1824 = vrot.lane.b32.xlu0 %v1785_v25, %s2302_s0  ;;  %v1030_v33 = vadd.f32 %v1029_v7, %v1028_v36  ;;  %v1438_v62 = vadd.f32 %v1437_v20, %v1436_v2  ;;  %v1582_v36 = vld [vmem:[#allocation5 + $0x20] sm:$0xff]  ;;  %v1584_v2 = vld [vmem:[#allocation5 + $0x30] sm:$0xff] }
 0x2e5   :  { %v1782_v7 = vld [vmem:[#allocation4 + $0x20] sm:$0xff] }
 0x2e6   :  { %v1393_v57 = vpop.permute.xlu0 %1392  ;;  %v1031_v47 = vrot.slane %v1030_v33, 1 }
 0x2e7   :  { %v1439_v50 = vsel %vm16_vm0, %v1393_v57, 0.0  ;;  %v3878_v57 = vld [vmem:[#allocation11_spill] sm:$0xff] }
 0x2e8   :  { %2024 = vrot.lane.b32.xlu0 %v1985_v52, %s2302_s0  ;;  %v1032_v60 = vadd.f32 %v1031_v47, %v1030_v33  ;;  %v1440_v29 = vadd.f32 %v1439_v50, %v1438_v62  ;;  %v1982_v33 = vld [vmem:[#allocation6 + $0x20] sm:$0xff]  ;;  %v1784_v52 = vld [vmem:[#allocation4 + $0x30] sm:$0xff] }
 0x2e9   :  { %v1984_v62 = vld [vmem:[#allocation6 + $0x30] sm:$0xff] }
 0x2ea   :  { %2219 = vpush %v1032_v60  ;;  %v1395_v5 = vpop.permute.xlu0 %1394 }
 0x2eb   :  { %v1441_v56 = vsel %vm16_vm0, %v1395_v5, 0.0  ;;  %v3879_v5 = vld [vmem:[#allocation12_spill] sm:$0xff] }
 0x2ec   :  { %1628 = vrot.lane.b32.xlu0 %v1587_v43, %s2302_s0  ;;  %v1442_v59 = vadd.f32 %v1441_v56, %v1440_v29  ;;  %v1586_v29 = vld [vmem:[#allocation5 + $0x40] sm:$0xff] }
 0x2ee   :  { %v1397_v11 = vpop.permute.xlu0 %1396 }
 0x2ef   :  { %v1443_v24 = vsel %vm16_vm0, %v1397_v11, 0.0 }
 0x2f0   :  { %v1444_v30 = vadd.f32 %v1443_v24, %v1442_v59  ;;  %1828 = vrot.lane.b32.xlu0 %v1787_v34, %s2302_s0  ;;  %v3880_v59 = vld [vmem:[#allocation10_spill] sm:$0xff]  ;;  %v1786_v34 = vld [vmem:[#allocation4 + $0x40] sm:$0xff] }
 0x2f2   :  { %v1446_v39 = vadd.f32 %v1445_v53, %v1444_v30  ;;  %v1401_v40 = vpop.permute.xlu0 %1400  ;;  %v3881_v30 = vld [vmem:[#allocation13_spill] sm:$0xff] }
 0x2f3   :  { %v1447_v37 = vsel %vm16_vm0, %v1401_v40, 0.0  ;;  %v1986_v40 = vld [vmem:[#allocation6 + $0x40] sm:$0xff] }
 0x2f4   :  { %v1448_v48 = vadd.f32 %v1447_v37, %v1446_v39  ;;  %2028 = vrot.lane.b32.xlu0 %v1987_v23, %s2302_s0 }
 0x2f6   :  { %1449 = vadd.xlane.f32.xlu1 %v1448_v48  ;;  %v3495_v22 = vpop.permute.xlu0 %1490  ;;  %v1588_v48 = vld [vmem:[#allocation5 + $0x50] sm:$0xff] }
 0x2f8   :  { %1632 = vrot.lane.b32.xlu0 %v1589_v58, %s2302_s0 }
 0x2fa   :  { %v3498_v61 = vpop.permute.xlu0 %1492 }
 0x2fc   :  { %1832 = vrot.lane.b32.xlu0 %v1789_v63, %s2302_s0 }
 0x2fe   :  { %v3501_v8 = vpop.permute.xlu0 %1494 }
 0x300   :  { %2032 = vrot.lane.b32.xlu0 %v1989_v18, %s2302_s0  ;;  %v1788_v18 = vld [vmem:[#allocation4 + $0x50] sm:$0xff] }
 0x302   :  { %v3504_v12 = vpop.permute.xlu0 %1496 }
 0x304   :  { %1636 = vrot.lane.b32.xlu0 %v1591_v15, %s2302_s0  ;;  %v3882_v15 = vld [vmem:[#allocation14_spill] sm:$0xff] }
 0x306   :  { %v3509_v14 = vpop.permute.xlu0 %1498 }
 0x307   :  { %1508 = vrot.lane.b32.xlu1 %v1467_v4, %s2303_s17  ;;  %v1988_v4 = vld [vmem:[#allocation6 + $0x50] sm:$0xff] }
 0x308   :  { %1836 = vrot.lane.b32.xlu0 %v1791_v6, %s2302_s0 }
 0x30a   :  { %v3513_v51 = vpop.permute.xlu0 %1500 }
 0x30b   :  { %1612 = vrot.lane.b32.xlu1 %v1579_v32, %s2302_s0 }
 0x30c   :  { %2036 = vrot.lane.b32.xlu0 %v1991_v21, %s2302_s0 }
 0x30e   :  { %v3517_v49 = vpop.permute.xlu0 %1502 }
 0x30f   :  { %1812 = vrot.lane.b32.xlu1 %v1779_v10, %s2302_s0 }
 0x310   :  { %1640 = vrot.lane.b32.xlu0 %v1593_v9, %s2302_s0 }
 0x312   :  { %v3521_v42 = vpop.permute.xlu0 %1504 }
 0x313   :  { %v1210_v44 = vpop.xlane.xlu1 %1209  ;;  %2010 = vrot.lane.b32.xlu1 %v1978_v31, %s2302_s0  ;;  %v1590_v31 = vld [vmem:[#allocation5 + $0x60] sm:$0xff] }
 0x314   :  { %v1211_v1 = vrot.slane %v1210_v44, 4  ;;  %1840 = vrot.lane.b32.xlu0 %v1793_v55, %s2302_s0 }
 0x316   :  { %v1212_v13 = vadd.f32 %v1211_v1, %v1210_v44  ;;  %v3525_v35 = vpop.permute.xlu0 %1506 }
 0x317   :  { %1814 = vrot.lane.b32.xlu1 %v1780_v3, %s2302_s0 }
 0x318   :  { %v1213_v16 = vrot.slane %v1212_v13, 2 }
 0x31a   :  { %v3528_v26 = vpop.permute.xlu0 %1510  ;;  %v1214_v27 = vadd.f32 %v1213_v16, %v1212_v13  ;;  %v1790_v13 = vld [vmem:[#allocation4 + $0x60] sm:$0xff]  ;;  %v3883_v16 = vld [vmem:[#allocation15_spill] sm:$0xff] }
 0x31b   :  { %2014 = vrot.lane.b32.xlu1 %v1980_v28, %s2302_s0 }
 0x31c   :  { %v1215_v0 = vrot.slane %v1214_v27, 1 }
 0x31e   :  { %v3531_v41 = vpop.permute.xlu0 %1512  ;;  %v1216_v38 = vadd.f32 %v1215_v0, %v1214_v27 }
 0x31f   :  { %1618 = vrot.lane.b32.xlu1 %v1582_v36, %s2302_s0  ;;  %v1990_v36 = vld [vmem:[#allocation6 + $0x60] sm:$0xff] }
 0x320   :  { %2221 = vpush %v1216_v38 }
 0x322   :  { %v3534_v46 = vpop.permute.xlu0 %1514 }
 0x323   :  { %1818 = vrot.lane.b32.xlu1 %v1782_v7, %s2302_s0  ;;  %v2261_v7 = vld [vmem:[%s3816_s1 + $0x38] sm:$0xff] }
 0x326   :  { %v3537_v25 = vpop.permute.xlu0 %1516 }
 0x327   :  { %2018 = vrot.lane.b32.xlu1 %v1982_v33, %s2302_s0 }
 0x32a   :  { %v1611_v45 = vpop.permute.xlu0 %1610 }
 0x32b   :  { %v1658_v47 = vmul.f32 %v3878_v57, %v1611_v45  ;;  %1622 = vrot.lane.b32.xlu1 %v1584_v2, %s2302_s0  ;;  %v1592_v2 = vld [vmem:[#allocation5 + $0x70] sm:$0xff] }
 0x32d   :  { %1690 = vrot.lane.b32.xlu0 %v1658_v47, %s2303_s17 }
 0x32e   :  { %v1811_v20 = vpop.permute.xlu0 %1810 }
 0x32f   :  { %v1858_v60 = vmul.f32 %v3878_v57, %v1811_v20  ;;  %1822 = vrot.lane.b32.xlu1 %v1784_v52, %s2302_s0  ;;  %v1792_v20 = vld [vmem:[#allocation4 + $0x70] sm:$0xff]  ;;  %v2262_v52 = vld [vmem:[%s3816_s1 + $0x48] sm:$0xff] }
 0x331   :  { %1890 = vrot.lane.b32.xlu0 %v1858_v60, %s2303_s17 }
 0x332   :  { %v1615_v50 = vpop.permute.xlu0 %1614 }
 0x333   :  { %v1660_v56 = vmul.f32 %v3879_v5, %v1615_v50  ;;  %2022 = vrot.lane.b32.xlu1 %v1984_v62, %s2302_s0  ;;  %v1992_v62 = vld [vmem:[#allocation6 + $0x70] sm:$0xff] }
 0x335   :  { %1694 = vrot.lane.b32.xlu0 %v1660_v56, %s2303_s17 }
 0x336   :  { %v2013_v43 = vpop.permute.xlu0 %2012 }
 0x337   :  { %v2059_v11 = vmul.f32 %v3880_v59, %v2013_v43  ;;  %1626 = vrot.lane.b32.xlu1 %v1586_v29, %s2302_s0  ;;  %v1993_v43 = vld [vmem:[#allocation6 + $0x78] sm:$0xff] }
 0x339   :  { %2092 = vrot.lane.b32.xlu0 %v2059_v11, %s2303_s17  ;;  %v2263_v11 = vld [vmem:[%s3816_s1 + $0x58] sm:$0xff] }
 0x33a   :  { %v1617_v24 = vpop.permute.xlu0 %1616 }
 0x33b   :  { %v1661_v53 = vmul.f32 %v3881_v30, %v1617_v24  ;;  %1826 = vrot.lane.b32.xlu1 %v1786_v34, %s2302_s0 }
 0x33d   :  { %1696 = vrot.lane.b32.xlu0 %v1661_v53, %s2303_s17 }
 0x33e   :  { %v1817_v39 = vpop.permute.xlu0 %1816 }
 0x33f   :  { %v1861_v37 = vmul.f32 %v3881_v30, %v1817_v39  ;;  %2026 = vrot.lane.b32.xlu1 %v1986_v40, %s2302_s0 }
 0x341   :  { %1896 = vrot.lane.b32.xlu0 %v1861_v37, %s2303_s17  ;;  %v3598_v37 = vld [vmem:[%s3816_s1 + $0x68] sm:$0xff] }
 0x342   :  { %v2017_v23 = vpop.permute.xlu0 %2016 }
 0x343   :  { %v2061_v58 = vmul.f32 %v3881_v30, %v2017_v23  ;;  %1630 = vrot.lane.b32.xlu1 %v1588_v48, %s2302_s0  ;;  %v3884_v48 = vld [vmem:[#allocation23_spill] sm:$0xff] }
 0x345   :  { %2096 = vrot.lane.b32.xlu0 %v2061_v58, %s2303_s17  ;;  %v3885_v58 = vld [vmem:[#allocation24_spill] sm:$0xff] }
 0x346   :  { %v1621_v63 = vpop.permute.xlu0 %1620 }
 0x347   :  { %v1663_v17 = vmul.f32 %v3882_v15, %v1621_v63  ;;  %1830 = vrot.lane.b32.xlu1 %v1788_v18, %s2302_s0  ;;  %v1472_v63 = vmul.f32 %v3885_v58, %v3884_v48 }
 0x349   :  { %1700 = vrot.lane.b32.xlu0 %v1663_v17, %s2303_s17 }
 0x34a   :  { %v1821_v19 = vpop.permute.xlu0 %1820 }
 0x34b   :  { %v1863_v6 = vmul.f32 %v3882_v15, %v1821_v19  ;;  %v1330_v32 = vpop.xlane.xlu1 %1329  ;;  %2030 = vrot.lane.b32.xlu1 %v1988_v4, %s2302_s0 }
 0x34c   :  { %v1331_v21 = vrot.slane %v1330_v32, 4 }
 0x34d   :  { %1900 = vrot.lane.b32.xlu0 %v1863_v6, %s2303_s17 }
 0x34e   :  { %v1332_v10 = vadd.f32 %v1331_v21, %v1330_v32  ;;  %v2021_v9 = vpop.permute.xlu0 %2020  ;;  %v2265_v21 = vld [vmem:[%s3816_s1 + $0x8] sm:$0xff] }
 0x34f   :  { %v2063_v44 = vmul.f32 %v3882_v15, %v2021_v9  ;;  %1634 = vrot.lane.b32.xlu1 %v1590_v31, %s2302_s0 }
 0x350   :  { %v1333_v55 = vrot.slane %v1332_v10, 2 }
 0x351   :  { %2100 = vrot.lane.b32.xlu0 %v2063_v44, %s2303_s17 }
 0x352   :  { %v1625_v1 = vpop.permute.xlu0 %1624  ;;  %v1334_v3 = vadd.f32 %v1333_v55, %v1332_v10 }
 0x353   :  { %v1665_v28 = vmul.f32 %v3883_v16, %v1625_v1  ;;  %1834 = vrot.lane.b32.xlu1 %v1790_v13, %s2302_s0  ;;  %v2266_v13 = vld [vmem:[%s3816_s1] sm:$0xff] }
 0x354   :  { %v1335_v27 = vrot.slane %v1334_v3, 1 }
 0x355   :  { %1704 = vrot.lane.b32.xlu0 %v1665_v28, %s2303_s17  ;;  %v2267_v28 = vld [vmem:[%s3816_s1 + $0x10] sm:$0xff] }
 0x356   :  { %v1825_v0 = vpop.permute.xlu0 %1824  ;;  %v1336_v38 = vadd.f32 %v1335_v27, %v1334_v3 }
 0x357   :  { %v1865_v33 = vmul.f32 %v2261_v7, %v1825_v0  ;;  %2034 = vrot.lane.b32.xlu1 %v1990_v36, %s2302_s0 }
 0x358   :  { %2223 = vpush %v1336_v38 }
 0x359   :  { %1904 = vrot.lane.b32.xlu0 %v1865_v33, %s2303_s17 }
 0x35a   :  { %v2025_v45 = vpop.permute.xlu0 %2024 }
 0x35b   :  { %v2065_v57 = vmul.f32 %v2261_v7, %v2025_v45  ;;  %1638 = vrot.lane.b32.xlu1 %v1592_v2, %s2302_s0  ;;  %v2268_v7 = vld [vmem:[%s3816_s1 + $0x20] sm:$0xff] }
 0x35d   :  { %2104 = vrot.lane.b32.xlu0 %v2065_v57, %s2303_s17 }
 0x35e   :  { %v1629_v47 = vpop.permute.xlu0 %1628 }
 0x35f   :  { %v1667_v60 = vmul.f32 %v2262_v52, %v1629_v47  ;;  %1838 = vrot.lane.b32.xlu1 %v1792_v20, %s2302_s0 }
 0x361   :  { %1708 = vrot.lane.b32.xlu0 %v1667_v60, %s2303_s17 }
 0x362   :  { %v1829_v50 = vpop.permute.xlu0 %1828 }
 0x363   :  { %v1867_v5 = vmul.f32 %v2262_v52, %v1829_v50  ;;  %2038 = vrot.lane.b32.xlu1 %v1992_v62, %s2302_s0 }
 0x365   :  { %1908 = vrot.lane.b32.xlu0 %v1867_v5, %s2303_s17 }
 0x366   :  { %v2029_v56 = vpop.permute.xlu0 %2028 }
 0x367   :  { %v2067_v29 = vmul.f32 %v2262_v52, %v2029_v56  ;;  %2040 = vrot.lane.b32.xlu1 %v1993_v43, %s2302_s0  ;;  %v2269_v52 = vld [vmem:[%s3816_s1 + $0x30] sm:$0xff]  ;;  %s2211_s0 = sshll.u32 %s2304_s26, 4  ;;  %s2212_s0 = int_to_ptr.vmem [resolvable:$true] %s2211_s0 }
 0x368   :  { %s2275_s28 = scalar_lea.vmem %s2212_s0, 128  ;;  %p2280_p1 = scmp.lt.s32.totalorder %s2212_s0, %s2212_s0 }
 0x369   :  { %2108 = vrot.lane.b32.xlu0 %v2067_v29, %s2303_s17  ;;  %v2270_v29 = vld [vmem:[%s3816_s1 + $0x40] sm:$0xff]  ;;  %p2276_p0 = scmp.ne.s32.totalorder %s2212_s0, %s2275_s28  ;;  %p2281_p2 = scmp.lt.s32.totalorder %s2275_s28, %s2275_s28 }
 0x36a   :  { %v1633_v59 = vpop.permute.xlu0 %1632 }
 0x36b   :  { %v1669_v24 = vmul.f32 %v2263_v11, %v1633_v59  ;;  %p2282_p3 = por %p2281_p2, %p2280_p1 }
 0x36d   :  { %1712 = vrot.lane.b32.xlu0 %v1669_v24, %s2303_s17  ;;  %p2283_p4 = pnand %p2282_p3, %p2276_p0 }
 0x36e   :  { %v1833_v34 = vpop.permute.xlu0 %1832 }
 0x36f   :  { %v1869_v30 = vmul.f32 %v2263_v11, %v1833_v34 }
 0x371   :  { %1912 = vrot.lane.b32.xlu0 %v1869_v30, %s2303_s17 }
 0x372   :  { %v2033_v53 = vpop.permute.xlu0 %2032 }
 0x373   :  { %v2069_v39 = vmul.f32 %v2263_v11, %v2033_v53 }
 0x375   :  { %2112 = vrot.lane.b32.xlu0 %v2069_v39, %s2303_s17 }
 0x376   :  { %v1637_v40 = vpop.permute.xlu0 %1636 }
 0x377   :  { %v1671_v23 = vmul.f32 %v3598_v37, %v1637_v40 }
 0x379   :  { %1716 = vrot.lane.b32.xlu0 %v1671_v23, %s2303_s17  ;;  %v2271_v23 = vld [vmem:[%s3816_s1 + $0x50] sm:$0xff] }
 0x37a   :  { %v1837_v34 = vpop.permute.xlu0 %1836 }
 0x37d   :  { %1518 = vrot.lane.b32.xlu0 %v1472_v63, %s2303_s17 }
 0x37e   :  { %v2037_v40 = vpop.permute.xlu0 %2036 }
 0x383   :  { %v1450_v18 = vpop.xlane.xlu1 %1449 }
 0x384   :  { %v1451_v15 = vrot.slane %v1450_v18, 4 }
 0x386   :  { %v1452_v17 = vadd.f32 %v1451_v15, %v1450_v18  ;;  %v1641_v18 = vpop.permute.xlu0 %1640 }
 0x387   :  { %v3605_v19 = vpop.permute.xlu1 %1508 }
 0x388   :  { %v1453_v4 = vrot.slane %v1452_v17, 2 }
 0x38a   :  { %v1454_v6 = vadd.f32 %v1453_v4, %v1452_v17 }
 0x38b   :  { %v1613_v32 = vpop.permute.xlu1 %1612 }
 0x38c   :  { %v1659_v10 = vmul.f32 %v2265_v21, %v1613_v32  ;;  %v1455_v9 = vrot.slane %v1454_v6, 1  ;;  %v2272_v32 = vld [vmem:[%s3816_s1 + $0x60] sm:$0xff] }
 0x38e   :  { %1692 = vrot.lane.b32.xlu1 %v1659_v10, %s2303_s17  ;;  %v1456_v31 = vadd.f32 %v1455_v9, %v1454_v6  ;;  %v1841_v6 = vpop.permute.xlu0 %1840 }
 0x38f   :  { %v1813_v44 = vpop.permute.xlu1 %1812 }
 0x390   :  { %v1859_v55 = vmul.f32 %v2265_v21, %v1813_v44  ;;  %2225 = vpush %v1456_v31 }
 0x392   :  { %1892 = vrot.lane.b32.xlu1 %v1859_v55, %s2303_s17 }
 0x393   :  { %v2011_v1 = vpop.permute.xlu1 %2010 }
 0x394   :  { %v2058_v3 = vmul.f32 %v2266_v13, %v2011_v1 }
 0x396   :  { %2090 = vrot.lane.b32.xlu1 %v2058_v3, %s2303_s17  ;;  %v1871_v3 = vmul.f32 %v3598_v37, %v1837_v34 }
 0x397   :  { %v1815_v16 = vpop.permute.xlu1 %1814 }
 0x398   :  { %v1860_v27 = vmul.f32 %v2267_v28, %v1815_v16  ;;  %v2273_v16 = vld [vmem:[%s3816_s1 + $0x70] sm:$0xff] }
 0x39a   :  { %1894 = vrot.lane.b32.xlu1 %v1860_v27, %s2303_s17 }
 0x39b   :  { %v2015_v0 = vpop.permute.xlu1 %2014 }
 0x39c   :  { %v2060_v36 = vmul.f32 %v2267_v28, %v2015_v0  ;;  %v3886_v0 = vld [vmem:[#allocation26_spill] sm:$0xff] }
 0x39e   :  { %2094 = vrot.lane.b32.xlu1 %v2060_v36, %s2303_s17  ;;  %v1473_v36 = vmul.f32 %v3886_v0, %v3273_v54 }
 0x39f   :  { %v1619_v38 = vpop.permute.xlu1 %1618  ;;  %v1691_v9 = vpop.permute.xlu0 %1690 }
 0x3a0   :  { %v1662_v33 = vmul.f32 %v2268_v7, %v1619_v38  ;;  %v2071_v38 = vmul.f32 %v3598_v37, %v2037_v40 }
 0x3a2   :  { %1698 = vrot.lane.b32.xlu1 %v1662_v33, %s2303_s17 }
 0x3a3   :  { %v1819_v45 = vpop.permute.xlu1 %1818  ;;  %v3650_v1 = vpop.permute.xlu0 %1890 }
 0x3a4   :  { %v1862_v2 = vmul.f32 %v2268_v7, %v1819_v45  ;;  %v2274_v45 = vld [vmem:[%s3816_s1 + $0x78] sm:$0xff]  ;;  %s2220_s1 = spop %2219 }
 0x3a5   :  { %v1873_v54 = vmul.f32 %v2274_v45, %v1841_v6 }
 0x3a6   :  { %1898 = vrot.lane.b32.xlu1 %v1862_v2, %s2303_s17  ;;  %v1673_v2 = vmul.f32 %v2274_v45, %v1641_v18 }
 0x3a7   :  { %v2019_v57 = vpop.permute.xlu1 %2018 }
 0x3a8   :  { %v2062_v47 = vmul.f32 %v2268_v7, %v2019_v57  ;;  %v1695_v7 = vpop.permute.xlu0 %1694 }
 0x3aa   :  { %2098 = vrot.lane.b32.xlu1 %v2062_v47, %s2303_s17 }
 0x3ab   :  { %v1623_v20 = vpop.permute.xlu1 %1622 }
 0x3ac   :  { %v1664_v60 = vmul.f32 %v2269_v52, %v1623_v20  ;;  %v3667_v47 = vpop.permute.xlu0 %2092 }
 0x3ae   :  { %1702 = vrot.lane.b32.xlu1 %v1664_v60, %s2303_s17 }
 0x3af   :  { %v1823_v50 = vpop.permute.xlu1 %1822 }
 0x3b0   :  { %v1864_v62 = vmul.f32 %v2269_v52, %v1823_v50 }
 0x3b2   :  { %1902 = vrot.lane.b32.xlu1 %v1864_v62, %s2303_s17 }
 0x3b3   :  { %v2023_v5 = vpop.permute.xlu1 %2022 }
 0x3b4   :  { %v2064_v56 = vmul.f32 %v2269_v52, %v2023_v5  ;;  %v1697_v52 = vpop.permute.xlu0 %1696 }
 0x3b6   :  { %2102 = vrot.lane.b32.xlu1 %v2064_v56, %s2303_s17 }
 0x3b7   :  { %v1627_v43 = vpop.permute.xlu1 %1626 }
 0x3b8   :  { %v1666_v59 = vmul.f32 %v2270_v29, %v1627_v43  ;;  %v1897_v50 = vpop.permute.xlu0 %1896 }
 0x3ba   :  { %1706 = vrot.lane.b32.xlu1 %v1666_v59, %s2303_s17 }
 0x3bb   :  { %v1827_v11 = vpop.permute.xlu1 %1826 }
 0x3bc   :  { %v1866_v24 = vmul.f32 %v2270_v29, %v1827_v11  ;;  %v3674_v62 = vpop.permute.xlu0 %2096 }
 0x3be   :  { %1906 = vrot.lane.b32.xlu1 %v1866_v24, %s2303_s17 }
 0x3bf   :  { %v2027_v30 = vpop.permute.xlu1 %2026 }
 0x3c0   :  { %v2066_v53 = vmul.f32 %v2270_v29, %v2027_v30  ;;  %v1701_v5 = vpop.permute.xlu0 %1700 }
 0x3c2   :  { %2106 = vrot.lane.b32.xlu1 %v2066_v53, %s2303_s17 }
 0x3c3   :  { %v1631_v39 = vpop.permute.xlu1 %1630 }
 0x3c4   :  { %v1668_v48 = vmul.f32 %v2271_v23, %v1631_v39  ;;  %v3676_v43 = vpop.permute.xlu0 %1900 }
 0x3c6   :  { %1710 = vrot.lane.b32.xlu1 %v1668_v48, %s2303_s17 }
 0x3c7   :  { %v1831_v58 = vpop.permute.xlu1 %1830 }
 0x3c8   :  { %v1868_v63 = vmul.f32 %v2271_v23, %v1831_v58  ;;  %v3678_v11 = vpop.permute.xlu0 %2100 }
 0x3ca   :  { %1910 = vrot.lane.b32.xlu1 %v1868_v63, %s2303_s17 }
 0x3cb   :  { %v2031_v15 = vpop.permute.xlu1 %2030 }
 0x3cc   :  { %v2068_v17 = vmul.f32 %v2271_v23, %v2031_v15  ;;  %v3680_v34 = vpop.permute.xlu0 %1704 }
 0x3ce   :  { %2110 = vrot.lane.b32.xlu1 %v2068_v17, %s2303_s17 }
 0x3cf   :  { %v1635_v4 = vpop.permute.xlu1 %1634 }
 0x3d0   :  { %v1670_v21 = vmul.f32 %v2272_v32, %v1635_v4  ;;  %v3682_v39 = vpop.permute.xlu0 %1904 }
 0x3d2   :  { %1714 = vrot.lane.b32.xlu1 %v1670_v21, %s2303_s17  ;;  %v1539_v21 = vsel %vm16_vm0, %v3498_v61, 0.0 }
 0x3d3   :  { %v1835_v10 = vpop.permute.xlu1 %1834 }
 0x3d4   :  { %v1870_v31 = vmul.f32 %v2272_v32, %v1835_v10  ;;  %v3684_v23 = vpop.permute.xlu0 %2104  ;;  %v1738_v10 = vsel %vm16_vm0, %v1691_v9, 0.0 }
 0x3d6   :  { %1914 = vrot.lane.b32.xlu1 %v1870_v31, %s2303_s17 }
 0x3d7   :  { %v2035_v44 = vpop.permute.xlu1 %2034 }
 0x3d8   :  { %v2070_v55 = vmul.f32 %v2272_v32, %v2035_v44  ;;  %v3686_v63 = vpop.permute.xlu0 %1708 }
 0x3da   :  { %2114 = vrot.lane.b32.xlu1 %v2070_v55, %s2303_s17  ;;  %v1538_v55 = vsel %vm16_vm0, %v3495_v22, 0.0 }
 0x3db   :  { %v1639_v13 = vpop.permute.xlu1 %1638 }
 0x3dc   :  { %v1672_v28 = vmul.f32 %v2273_v16, %v1639_v13  ;;  %v3690_v15 = vpop.permute.xlu0 %1908  ;;  %v1541_v13 = vsel %vm16_vm0, %v3501_v8, 0.0  ;;  %v1547_v8 = vsel %vm16_vm0, %v3513_v51, 0.0 }
 0x3de   :  { %1718 = vrot.lane.b32.xlu0 %v1672_v28, %s2303_s17  ;;  %1916 = vrot.lane.b32.xlu1 %v1871_v3, %s2303_s17  ;;  %v1540_v3 = vadd.f32 %v1539_v21, %v1538_v55  ;;  %v1741_v28 = vsel %vm16_vm0, %v1695_v7, 0.0  ;;  %v1743_v7 = vsel %vm16_vm0, %v1697_v52, 0.0  ;;  %v1551_v52 = vsel %vm16_vm0, %v3521_v42, 0.0 }
 0x3df   :  { %v1839_v27 = vpop.permute.xlu1 %1838 }
 0x3e0   :  { %v1872_v57 = vmul.f32 %v2273_v16, %v1839_v27  ;;  %v3695_v32 = vpop.permute.xlu0 %2108  ;;  %v1542_v27 = vadd.f32 %v1541_v13, %v1540_v3 }
 0x3e2   :  { %1520 = vrot.lane.b32.xlu0 %v1473_v36, %s2303_s17  ;;  %2116 = vrot.lane.b32.xlu1 %v2071_v38, %s2303_s17  ;;  %v1545_v36 = vsel %vm16_vm0, %v3509_v14, 0.0  ;;  %v1549_v14 = vsel %vm16_vm0, %v3517_v49, 0.0 }
 0x3e3   :  { %v2039_v33 = vpop.permute.xlu1 %2038 }
 0x3e4   :  { %v2072_v37 = vmul.f32 %v2273_v16, %v2039_v33  ;;  %v1543_v16 = vsel %vm16_vm0, %v3504_v12, 0.0  ;;  %v3709_v0 = vpop.permute.xlu0 %1712  ;;  %v1938_v12 = vsel %vm16_vm0, %v3650_v1, 0.0 }
 0x3e5   :  { %v1544_v38 = vadd.f32 %v1543_v16, %v1542_v27 }
 0x3e6   :  { %1918 = vrot.lane.b32.xlu1 %v1872_v57, %s2303_s17  ;;  %1720 = vrot.lane.b32.xlu0 %v1673_v2, %s2303_s17 }
 0x3e7   :  { %v2041_v20 = vpop.permute.xlu1 %2040  ;;  %v1546_v2 = vadd.f32 %v1545_v36, %v1544_v38  ;;  %v1947_v36 = vsel %vm16_vm0, %v3676_v43, 0.0  ;;  %v2147_v43 = vsel %vm16_vm0, %v3678_v11, 0.0 }
 0x3e8   :  { %v2073_v60 = vmul.f32 %v2274_v45, %v2041_v20  ;;  %v3726_v51 = vpop.permute.xlu0 %1912 }
 0x3ea   :  { %2118 = vrot.lane.b32.xlu1 %v2072_v37, %s2303_s17  ;;  %1920 = vrot.lane.b32.xlu0 %v1873_v54, %s2303_s17 }
 0x3ee   :  { %2120 = vrot.lane.b32.xlu1 %v2073_v60, %s2303_s17  ;;  %v1548_v60 = vadd.f32 %v1547_v8, %v1546_v2  ;;  %s2222_s17 = spop %2221 }
 0x3ef   :  { %s2224_s21 = spop %2223 }
 0x3f0   :  { %s2226_s22 = spop %2225 }
 0x400   :  { %v1693_v56 = vpop.permute.xlu1 %1692 }
 0x401   :  { %v1739_v6 = vsel %vm16_vm0, %v1693_v56, 0.0 }
 0x402   :  { %v1740_v31 = vadd.f32 %v1739_v6, %v1738_v10  ;;  %v1553_v6 = vsel %vm16_vm0, %v3525_v35, 0.0  ;;  %v1747_v10 = vsel %vm16_vm0, %v1701_v5, 0.0 }
 0x404   :  { %v1893_v29 = vpop.permute.xlu1 %1892  ;;  %v1742_v61 = vadd.f32 %v1741_v28, %v1740_v31  ;;  %v3741_v28 = vpop.permute.xlu0 %2112 }
 0x405   :  { %v1939_v22 = vsel %vm16_vm0, %v1893_v29, 0.0  ;;  %v2139_v29 = vsel %vm16_vm0, %v3667_v47, 0.0 }
 0x406   :  { %v1940_v57 = vadd.f32 %v1939_v22, %v1938_v12  ;;  %v1744_v54 = vadd.f32 %v1743_v7, %v1742_v61  ;;  %v1751_v22 = vsel %vm16_vm0, %v3680_v34, 0.0 }
 0x408   :  { %v2091_v59 = vpop.permute.xlu1 %2090 }
 0x409   :  { %v2138_v20 = vsel %vm16_vm0, %v2091_v59, 0.0  ;;  %v1943_v59 = vsel %vm16_vm0, %v1897_v50, 0.0  ;;  %v2143_v50 = vsel %vm16_vm0, %v3674_v62, 0.0  ;;  %v1557_v62 = vsel %vm16_vm0, %v3528_v26, 0.0 }
 0x40a   :  { %v2140_v49 = vadd.f32 %v2139_v29, %v2138_v20  ;;  %v1755_v26 = vsel %vm16_vm0, %v3686_v63, 0.0 }
 0x40c   :  { %v1895_v24 = vpop.permute.xlu1 %1894 }
 0x40d   :  { %v1941_v33 = vsel %vm16_vm0, %v1895_v24, 0.0 }
 0x40e   :  { %v1942_v56 = vadd.f32 %v1941_v33, %v1940_v57 }
 0x410   :  { %v2095_v30 = vpop.permute.xlu1 %2094  ;;  %v1944_v3 = vadd.f32 %v1943_v59, %v1942_v56 }
 0x411   :  { %v2141_v24 = vsel %vm16_vm0, %v2095_v30, 0.0  ;;  %v1555_v30 = vsel %vm16_vm0, %v3605_v19, 0.0 }
 0x412   :  { %v2142_v13 = vadd.f32 %v2141_v24, %v2140_v49  ;;  %v1759_v49 = vsel %vm16_vm0, %v3709_v0, 0.0  ;;  %v2155_v0 = vsel %vm16_vm0, %v3695_v32, 0.0 }
 0x414   :  { %v1699_v53 = vpop.permute.xlu1 %1698 }
 0x415   :  { %v1745_v45 = vsel %vm16_vm0, %v1699_v53, 0.0  ;;  %v1550_v53 = vadd.f32 %v1549_v14, %v1548_v60  ;;  %v1951_v14 = vsel %vm16_vm0, %v3682_v39, 0.0  ;;  %v2151_v39 = vsel %vm16_vm0, %v3684_v23, 0.0 }
 0x416   :  { %v1746_v1 = vadd.f32 %v1745_v45, %v1744_v54  ;;  %v1717_v45 = vpop.permute.xlu0 %1716 }
 0x417   :  { %v1552_v42 = vadd.f32 %v1551_v52, %v1550_v53  ;;  %v1561_v53 = vsel %vm16_vm0, %v3534_v46, 0.0 }
 0x418   :  { %v1899_v40 = vpop.permute.xlu1 %1898  ;;  %v1748_v47 = vadd.f32 %v1747_v10, %v1746_v1 }
 0x419   :  { %v1945_v31 = vsel %vm16_vm0, %v1899_v40, 0.0  ;;  %v1554_v16 = vadd.f32 %v1553_v6, %v1552_v42 }
 0x41a   :  { %v1946_v35 = vadd.f32 %v1945_v31, %v1944_v3  ;;  %v1519_v52 = vpop.permute.xlu0 %1518 }
 0x41b   :  { %v1556_v40 = vadd.f32 %v1555_v30, %v1554_v16  ;;  %v1959_v30 = vsel %vm16_vm0, %v3726_v51, 0.0 }
 0x41c   :  { %v2099_v48 = vpop.permute.xlu1 %2098  ;;  %v1948_v12 = vadd.f32 %v1947_v36, %v1946_v35 }
 0x41d   :  { %v2145_v5 = vsel %vm16_vm0, %v2099_v48, 0.0  ;;  %v1558_v48 = vadd.f32 %v1557_v62, %v1556_v40 }
 0x420   :  { %v1703_v58 = vpop.permute.xlu1 %1702 }
 0x421   :  { %v1749_v55 = vsel %vm16_vm0, %v1703_v58, 0.0  ;;  %v2144_v58 = vadd.f32 %v2143_v50, %v2142_v13  ;;  %v1565_v13 = vsel %vm16_vm0, %v1519_v52, 0.0 }
 0x422   :  { %v1750_v27 = vadd.f32 %v1749_v55, %v1748_v47 }
 0x423   :  { %v2146_v8 = vadd.f32 %v2145_v5, %v2144_v58  ;;  %v1763_v5 = vsel %vm16_vm0, %v1717_v45, 0.0 }
 0x424   :  { %v3688_v18 = vpop.permute.xlu1 %1902  ;;  %v1752_v7 = vadd.f32 %v1751_v22, %v1750_v27 }
 0x425   :  { %v1949_v19 = vsel %vm16_vm0, %v3688_v18, 0.0  ;;  %v1559_v18 = vsel %vm16_vm0, %v3531_v41, 0.0 }
 0x426   :  { %v1950_v2 = vadd.f32 %v1949_v19, %v1948_v12  ;;  %v1560_v11 = vadd.f32 %v1559_v18, %v1558_v48 }
 0x428   :  { %v3692_v17 = vpop.permute.xlu1 %2102  ;;  %v1952_v1 = vadd.f32 %v1951_v14, %v1950_v2 }
 0x429   :  { %v2149_v34 = vsel %vm16_vm0, %v3692_v17, 0.0 }
 0x42c   :  { %v1707_v4 = vpop.permute.xlu1 %1706 }
 0x42d   :  { %v1753_v38 = vsel %vm16_vm0, %v1707_v4, 0.0  ;;  %v2148_v4 = vadd.f32 %v2147_v43, %v2146_v8 }
 0x42e   :  { %v1754_v57 = vadd.f32 %v1753_v38, %v1752_v7  ;;  %v2159_v7 = vsel %vm16_vm0, %v3741_v28, 0.0 }
 0x42f   :  { %v2150_v56 = vadd.f32 %v2149_v34, %v2148_v4 }
 0x430   :  { %v3700_v44 = vpop.permute.xlu1 %1906  ;;  %v1756_v17 = vadd.f32 %v1755_v26, %v1754_v57 }
 0x431   :  { %v1953_v20 = vsel %vm16_vm0, %v3700_v44, 0.0  ;;  %v1562_v44 = vadd.f32 %v1561_v53, %v1560_v11  ;;  %v2152_v6 = vadd.f32 %v2151_v39, %v2150_v56 }
 0x432   :  { %v1954_v29 = vadd.f32 %v1953_v20, %v1952_v1 }
 0x434   :  { %v3711_v9 = vpop.permute.xlu1 %2106 }
 0x435   :  { %v2153_v63 = vsel %vm16_vm0, %v3711_v9, 0.0  ;;  %v1563_v9 = vsel %vm16_vm0, %v3537_v25, 0.0 }
 0x436   :  { %v2154_v31 = vadd.f32 %v2153_v63, %v2152_v6  ;;  %v1564_v3 = vadd.f32 %v1563_v9, %v1562_v44 }
 0x438   :  { %v1711_v37 = vpop.permute.xlu1 %1710  ;;  %v1566_v16 = vadd.f32 %v1565_v13, %v1564_v3  ;;  %v2156_v35 = vadd.f32 %v2155_v0, %v2154_v31 }
 0x439   :  { %v1757_v60 = vsel %vm16_vm0, %v1711_v37, 0.0  ;;  %v1955_v37 = vsel %vm16_vm0, %v3690_v15, 0.0 }
 0x43a   :  { %v1758_v41 = vadd.f32 %v1757_v60, %v1756_v17  ;;  %v1956_v46 = vadd.f32 %v1955_v37, %v1954_v29 }
 0x43c   :  { %v1911_v21 = vpop.permute.xlu1 %1910  ;;  %v1760_v55 = vadd.f32 %v1759_v49, %v1758_v41 }
 0x43d   :  { %v1957_v59 = vsel %vm16_vm0, %v1911_v21, 0.0 }
 0x43e   :  { %v1958_v47 = vadd.f32 %v1957_v59, %v1956_v46 }
 0x440   :  { %v2111_v61 = vpop.permute.xlu1 %2110  ;;  %v1960_v22 = vadd.f32 %v1959_v30, %v1958_v47 }
 0x441   :  { %v2157_v21 = vsel %vm16_vm0, %v2111_v61, 0.0 }
 0x442   :  { %v2158_v36 = vadd.f32 %v2157_v21, %v2156_v35  ;;  %v3887_v35 = vlaneseq }
 0x444   :  { %v1715_v33 = vpop.permute.xlu1 %1714  ;;  %v2160_v45 = vadd.f32 %v2159_v7, %v2158_v36 }
 0x445   :  { %v1761_v10 = vsel %vm16_vm0, %v1715_v33, 0.0 }
 0x446   :  { %v1762_v15 = vadd.f32 %v1761_v10, %v1760_v55 }
 0x448   :  { %v1915_v54 = vpop.permute.xlu1 %1914  ;;  %v1764_v32 = vadd.f32 %v1763_v5, %v1762_v15  ;;  %v2184_v5 = vstv %s2222_s17 }
 0x449   :  { %v1961_v25 = vsel %vm16_vm0, %v1915_v54, 0.0 }
 0x44a   :  { %v1962_v38 = vadd.f32 %v1961_v25, %v1960_v22  ;;  %v2187_v25 = vstv %s2224_s21 }
 0x44c   :  { %v2115_v24 = vpop.permute.xlu1 %2114 }
 0x44d   :  { %v2161_v33 = vsel %vm16_vm0, %v2115_v24, 0.0 }
 0x44e   :  { %v2162_v34 = vadd.f32 %v2161_v33, %v2160_v45 }
 0x450   :  { %v1917_v42 = vpop.permute.xlu1 %1916  ;;  %v1719_v23 = vpop.permute.xlu0 %1718 }
 0x451   :  { %v1765_v40 = vsel %vm16_vm0, %v1719_v23, 0.0  ;;  %v1963_v61 = vsel %vm16_vm0, %v1917_v42, 0.0 }
 0x452   :  { %v1766_v51 = vadd.f32 %v1765_v40, %v1764_v32  ;;  %v1964_v2 = vadd.f32 %v1963_v61, %v1962_v38 }
 0x454   :  { %v2117_v27 = vpop.permute.xlu1 %2116  ;;  %v1521_v50 = vpop.permute.xlu0 %1520 }
 0x455   :  { %v1567_v58 = vsel %vm16_vm0, %v1521_v50, 0.0  ;;  %v2163_v43 = vsel %vm16_vm0, %v2117_v27, 0.0  ;;  %v2179_v27 = vand.u32 127, %v3887_v35  ;;  %v2181_v50 = vstv %s2220_s1 }
 0x456   :  { %v1568_v19 = vadd.f32 %v1567_v58, %v1566_v16  ;;  %v2164_v26 = vadd.f32 %v2163_v43, %v2162_v34  ;;  %v2190_v58 = vstv %s2226_s22 }
 0x457   :  { %vm2180_vm1 = vcmp.eq.s32.totalorder %v2179_v27, 0  ;;  %vm2183_vm2 = vcmp.eq.s32.totalorder %v2179_v27, 1  ;;  %vm2186_vm3 = vcmp.eq.s32.totalorder %v2179_v27, 2  ;;  %vm2189_vm4 = vcmp.eq.s32.totalorder %v2179_v27, 3 }
 0x458   :  { %v1919_v8 = vpop.permute.xlu1 %1918  ;;  %1569 = vadd.xlane.f32.xlu0 %v1568_v19  ;;  %v1721_v12 = vpop.permute.xlu0 %1720  ;;  %v2182_v40 = vsel %vm2180_vm1, %v2181_v50, 0.0  ;;  %vm2192_vm5 = vcmp.eq.s32.totalorder %v2179_v27, 4  ;;  %vm2195_vm6 = vcmp.eq.s32.totalorder %v2179_v27, 5  ;;  %vm2198_vm7 = vcmp.eq.s32.totalorder %v2179_v27, 6 }
 0x459   :  { %v1965_v62 = vsel %vm16_vm0, %v1919_v8, 0.0  ;;  %v1767_v48 = vsel %vm16_vm0, %v1721_v12, 0.0  ;;  %v2185_v36 = vsel %vm2183_vm2, %v2184_v5, %v2182_v40  ;;  %vm2201_vm8 = vcmp.eq.s32.totalorder %v2179_v27, 7 }
 0x45a   :  { %v1768_v57 = vadd.f32 %v1767_v48, %v1766_v51  ;;  %v1966_v18 = vadd.f32 %v1965_v62, %v1964_v2  ;;  %v2188_v32 = vsel %vm2186_vm3, %v2187_v25, %v2185_v36 }
 0x45b   :  { %v2191_v61 = vsel %vm2189_vm4, %v2190_v58, %v2188_v32 }
 0x45c   :  { %v2119_v4 = vpop.permute.xlu1 %2118  ;;  %1769 = vadd.xlane.f32.xlu1 %v1768_v57  ;;  %v1921_v54 = vpop.permute.xlu0 %1920 }
 0x45d   :  { %v2165_v14 = vsel %vm16_vm0, %v2119_v4, 0.0  ;;  %v1967_v28 = vsel %vm16_vm0, %v1921_v54, 0.0 }
 0x45e   :  { %v1968_v20 = vadd.f32 %v1967_v28, %v1966_v18  ;;  %v2166_v60 = vadd.f32 %v2165_v14, %v2164_v26 }
 0x460   :  { %v2121_v11 = vpop.permute.xlu1 %2120  ;;  %1969 = vadd.xlane.f32.xlu0 %v1968_v20 }
 0x461   :  { %v2167_v56 = vsel %vm16_vm0, %v2121_v11, 0.0 }
 0x462   :  { %v2168_v1 = vadd.f32 %v2167_v56, %v2166_v60 }
 0x464   :  { %2169 = vadd.xlane.f32.xlu0 %v2168_v1 }
 0x4e5   :  { %v1570_v17 = vpop.xlane.xlu0 %1569 }
 0x4e6   :  { %v1571_v52 = vrot.slane %v1570_v17, 4 }
 0x4e8   :  { %v1572_v29 = vadd.f32 %v1571_v52, %v1570_v17 }
 0x4e9   :  { %v1770_v41 = vpop.xlane.xlu1 %1769 }
 0x4ea   :  { %v1573_v24 = vrot.slane %v1572_v29, 2  ;;  %v1771_v53 = vrot.slane %v1770_v41, 4 }
 0x4ec   :  { %v1772_v39 = vadd.f32 %v1771_v53, %v1770_v41  ;;  %v1574_v63 = vadd.f32 %v1573_v24, %v1572_v29 }
 0x4ed   :  { %v1970_v44 = vpop.xlane.xlu0 %1969 }
 0x4ee   :  { %v1773_v6 = vrot.slane %v1772_v39, 2  ;;  %v1971_v37 = vrot.slane %v1970_v44, 4  ;;  %v1575_v49 = vrot.slane %v1574_v63, 1 }
 0x4f0   :  { %v1774_v59 = vadd.f32 %v1773_v6, %v1772_v39  ;;  %v1972_v10 = vadd.f32 %v1971_v37, %v1970_v44  ;;  %v1576_v31 = vadd.f32 %v1575_v49, %v1574_v63 }
 0x4f1   :  { %v2170_v46 = vpop.xlane.xlu0 %2169 }
 0x4f2   :  { %v1973_v55 = vrot.slane %v1972_v10, 2  ;;  %v2171_v42 = vrot.slane %v2170_v46, 4  ;;  %2227 = vpush %v1576_v31  ;;  %v1775_v23 = vrot.slane %v1774_v59, 1 }
 0x4f4   :  { %v2172_v9 = vadd.f32 %v2171_v42, %v2170_v46  ;;  %v1776_v13 = vadd.f32 %v1775_v23, %v1774_v59  ;;  %v1974_v3 = vadd.f32 %v1973_v55, %v1972_v10 }
 0x4f6   :  { %v2173_v47 = vrot.slane %v2172_v9, 2  ;;  %2229 = vpush %v1776_v13  ;;  %v1975_v15 = vrot.slane %v1974_v3, 1 }
 0x4f8   :  { %v2174_v0 = vadd.f32 %v2173_v47, %v2172_v9  ;;  %v1976_v21 = vadd.f32 %v1975_v15, %v1974_v3 }
 0x4fa   :  { %2231 = vpush %v1976_v21  ;;  %v2175_v30 = vrot.slane %v2174_v0, 1 }
 0x4fc   :  { %v2176_v16 = vadd.f32 %v2175_v30, %v2174_v0 }
 0x4fe   :  { %2233 = vpush %v2176_v16 }
 0x523   :  { %s2228_s23 = spop %2227 }
 0x524   :  { %v2193_v22 = vstv %s2228_s23 }
 0x525   :  { %v2194_v51 = vsel %vm2192_vm5, %v2193_v22, %v2191_v61 }
 0x527   :  { %s2230_s24 = spop %2229 }
 0x528   :  { %v2196_v19 = vstv %s2230_s24 }
 0x529   :  { %v2197_v8 = vsel %vm2195_vm6, %v2196_v19, %v2194_v51 }
 0x52b   :  { %s2232_s25 = spop %2231 }
 0x52c   :  { %v2199_v38 = vstv %s2232_s25 }
 0x52d   :  { %v2200_v12 = vsel %vm2198_vm7, %v2199_v38, %v2197_v8 }
 0x52f   :  { %s2234_s27 = spop %2233 }
 0x530   :  { %v2202_v7 = vstv %s2234_s27 }
 0x531   :  { %v2203_v33 = vsel %vm2201_vm8, %v2202_v7, %v2200_v12 }
 0x532   :  { %2204 = vst [vmem:[#allocation7] sm:$0xff] %v2203_v33 }
 0x533   :  { %2286 = shalt.err (!%p2283_p4)
}
 0x534   :  { %s2287_s3 = scalar_lea.hbm %s3817_s2, 128 }
 0x535   :  { %p2288_p5 = scmp.ne.s32.totalorder %s3817_s2, %s2287_s3  ;;  %p2291_p6 = scmp.lt.u32.totalorder %s2287_s3, %s3817_s2 }
 0x537   :  { %p2293_p7 = pnand %p2291_p6, %p2288_p5 }
 0x539   :  { %2296 = shalt.err (!%p2293_p7)
}
 0x53a   :  { %2214 = dma.vmem_to_hbm [thread:$0]  %s2212_s0, 128, %s3817_s2, [#allocation8]  }
 0x53b   :  { %2297 = dma.done.wait [#allocation8], 128  }
 0x53c   :  { %2298 = vsyncadd [#allocation8], 4294967168 }
 0x53d   :  { %2218 = vsyncpa [#allocation8], 1 }

</bundles_post_ra>
